<compile_context>
chip_gen: v6e
topology: v6e:2x2x1
jax: 0.10.0
libtpu: 0.0.40
codegen_flags: <defaults>
</compile_context>

<pallas_src>
import functools

import jax
import jax.numpy as jnp
import numpy as np
from jax import lax
from jax.experimental import pallas as pl
from jax.experimental.pallas import tpu as pltpu


def _largest_divisor_leq(n, k):
    k = max(1, min(n, k))
    while n % k != 0:
        k -= 1
    return k


def _num_tensorcores():
    """Best-effort count of TensorCores reachable via grid 'parallel' sharding."""
    try:
        kind = jax.devices()[0].device_kind.lower()
    except Exception:
        return 1
    for tag in ("v4", "v5p", "v7", "7x"):   # dual-TensorCore / megacore chips
        if tag in kind:
            return 2
    return 1                                 # v5e / v6e: single TensorCore


def conv_lstm_forward(x, wconv, bconv, wci, wcf, wco, *, padding=(1, 1),
                      activation="tanh", time_chunk=8, num_cores=None,
                      convx_dtype=jnp.bfloat16):
    """ConvLSTM forward.  x: (B, Cin, T, H, W) f32 -> (B, Cout, T, H, W) f32."""
    B, Cin, T, Hh, Ww = x.shape
    Cout4, Cio, KH, KW = wconv.shape
    Cout = Cout4 // 4
    PH, PW = padding
    assert Cio == Cin + Cout
    # Spatial size must be preserved by the conv (as in the MovingMNIST model).
    assert KH == 2 * PH + 1 and KW == 2 * PW + 1
    assert Cout % 8 == 0, "Cout must be a multiple of 8 (sublane gate slicing)"

    act = jnp.tanh if activation == "tanh" else (lambda v: jnp.maximum(v, 0.0))

    HW = Hh * Ww
    K9C = KH * KW * Cout
    C4 = 4 * Cout

    # ---- generation-aware batch split: only split when >1 TensorCore exists ----
    ntc = _num_tensorcores() if num_cores is None else int(num_cores)
    nb = ntc if (ntc > 1 and B >= ntc and B % ntc == 0) else 1
    BB = B // nb
    NPIX = BB * HW                             # pixels-in-lanes extent
    assert NPIX % 128 == 0, (
        "batch_block * H * W must be a multiple of 128 for the lane-dense layout")
    # TODO(synk): production MovingMNIST shapes (B=16, 64x64, Cout=64) need spatial
    # tiling over H (1-row halo) so streamed blocks fit v7x's 64 MiB VMEM.

    # ---- time chunking: as large as the streamed-block VMEM budget allows ----
    cx_bytes = jnp.dtype(convx_dtype).itemsize
    per_step_stream = 2 * (C4 * NPIX * cx_bytes) + 2 * (Cout * NPIX * 4)
    TC = _largest_divisor_leq(T, time_chunk)
    while TC > 1 and per_step_stream * TC > 12 * 2**20:
        TC = _largest_divisor_leq(T, TC - 1)
    nt = T // TC

    # ---- hoisted, fully parallel input-path convolution (non-recurrent) ----
    # conv(cat([X,H])) == conv(X, W_x) + conv(H, W_h); the X part + bias is
    # precomputed for all T outside the serial recurrence.
    w_x = wconv[:, :Cin]                       # (4C, Cin, KH, KW)
    w_h = wconv[:, Cin:]                       # (4C, Cout, KH, KW)
    xb = jnp.transpose(x, (2, 0, 1, 3, 4)).reshape(T * B, Cin, Hh, Ww)
    convx = jax.lax.conv_general_dilated(
        xb, w_x, window_strides=(1, 1), padding=[(PH, PH), (PW, PW)],
        dimension_numbers=("NCHW", "OIHW", "NCHW"),
        precision=jax.lax.Precision.HIGHEST)
    convx = convx + bconv[None, :, None, None]             # bias folded here
    # (T*B, 4C, H, W) -> (nb*T, 4C, NPIX): gate channels on sublanes, pixels in
    # lanes (lane index = b_local*HW + y*W + x).  Streamed as bf16.
    convx_k = (convx.reshape(T, nb, BB, C4, HW)
               .transpose(1, 0, 3, 2, 4)
               .reshape(nb * T, C4, NPIX)
               .astype(convx_dtype))

    # Recurrent-path weight (4C, KH*KW*Cout); column order = tap*Cout + c, matching
    # the im2col^T row ordering.
    w_h_kT = (jnp.transpose(w_h, (0, 2, 3, 1))
              .reshape(C4, K9C)
              .astype(jnp.bfloat16))

    # Peephole weights: pixels-in-lanes (Cout, NPIX), tiled over the batch block.
    def _peep(w):
        return jnp.tile(w.reshape(Cout, HW).astype(jnp.float32), (1, BB))
    wci_k, wcf_k, wco_k = _peep(wci), _peep(wcf), _peep(wco)

    # Per-tap edge-validity masks for the roll-based im2col.  The mask pattern is
    # periodic per image (period HW), so it also handles batch folding and the
    # circular wrap of the lane roll.  Built once on the host.
    ys = np.arange(Hh)[:, None]
    xs = np.arange(Ww)[None, :]
    mk = []
    for kh in range(KH):
        for kw in range(KW):
            dh, dw = kh - PH, kw - PW
            valid = ((ys + dh >= 0) & (ys + dh < Hh) &
                     (xs + dw >= 0) & (xs + dw < Ww))
            mk.append(np.tile(valid.reshape(-1).astype(np.float32), BB))
    masks = jnp.asarray(np.stack(mk), dtype=jnp.float32)    # (KH*KW, NPIX)

    def kernel(cx_ref, w_ref, mask_ref, wci_ref, wcf_ref, wco_ref,
               out_ref, h_ref, c_ref, imcol_ref):
        # Reset the recurrent state at the start of each batch block's time sweep.
        # Correct because the grid is (batch, time) with time the innermost,
        # sequential ("arbitrary") axis and scratch persists across grid steps.
        @pl.when(pl.program_id(1) == 0)
        def _init():
            h_ref[...] = jnp.zeros_like(h_ref)
            c_ref[...] = jnp.zeros_like(c_ref)

        def step(tt, carry):
            # ---- im2col^T via XLU lane rolls + edge masks (no strided copies).
            # imcol^T[tap*Cout + c, p] = H_prev[c, p + dh*W + dw], zero outside.
            h_prev = h_ref[...]                               # (Cout, NPIX) f32
            for kh in range(KH):
                for kw in range(KW):
                    tap = kh * KW + kw
                    s = (kh - PH) * Ww + (kw - PW)            # flat pixel shift
                    if s == 0:
                        shifted = h_prev
                    else:
                        # out[p] = h_prev[(p + s) mod NPIX]  (wrap zeroed by mask)
                        shifted = pltpu.roll(h_prev, shift=(-s) % NPIX, axis=1)
                    imcol_ref[tap * Cout:(tap + 1) * Cout, :] = (
                        (shifted * mask_ref[tap:tap + 1, :]).astype(jnp.bfloat16))

            # ---- recurrent conv as ONE deep MXU matmul, pixels-in-lanes:
            # (4C=128, K9C) @ (K9C, NPIX>=256), bf16 operands, f32 accumulate.
            conv = jnp.dot(w_ref[...], imcol_ref[...],
                           preferred_element_type=jnp.float32)    # (4C, NPIX)
            conv = conv + cx_ref[tt].astype(jnp.float32)          # + conv_x (+bias)

            # ---- gates: aligned sublane slices; full-lane-width f32 VPU math.
            c_prev = c_ref[...]                                   # (Cout, NPIX)
            i_c = conv[0 * Cout:1 * Cout]
            f_c = conv[1 * Cout:2 * Cout]
            g_c = conv[2 * Cout:3 * Cout]
            o_c = conv[3 * Cout:4 * Cout]
            input_gate = jax.nn.sigmoid(i_c + wci_ref[...] * c_prev)
            forget_gate = jax.nn.sigmoid(f_c + wcf_ref[...] * c_prev)
            c_new = forget_gate * c_prev + input_gate * act(g_c)
            output_gate = jax.nn.sigmoid(o_c + wco_ref[...] * c_new)
            h_new = output_gate * act(c_new)

            c_ref[...] = c_new
            out_ref[tt] = h_new                                   # lane-dense store
            h_ref[...] = h_new                                    # carried H state
            return carry

        # Visible loop (bounded live ranges); cx_ref[tt]/out_ref[tt] use dynamic
        # leading-axis indexing.  TODO(synk): sweep fori_loop unroll on real HW.
        lax.fori_loop(0, TC, step, 0)

    # Rough VMEM budget: double-buffered streamed blocks + resident operands + scratch.
    vmem_est = (per_step_stream * TC
                + 2 * (C4 * K9C * 2)                   # recurrent weight (bf16)
                + 2 * (((KH * KW + 7) // 8) * 8 * NPIX * 4)   # masks
                + 2 * 3 * (Cout * NPIX * 4)            # peepholes
                + Cout * NPIX * (4 + 4)                # H, C state scratch
                + K9C * NPIX * 2)                      # im2col^T scratch
    vmem_limit = int(min(48 * 2**20, max(24 * 2**20, 2 * vmem_est)))

    out_k = pl.pallas_call(
        kernel,
        out_shape=jax.ShapeDtypeStruct((nb * T, Cout, NPIX), jnp.float32),
        grid_spec=pltpu.PrefetchScalarGridSpec(
            num_scalar_prefetch=0,
            grid=(nb, nt),
            in_specs=[
                pl.BlockSpec((TC, C4, NPIX), lambda b, t: (b * nt + t, 0, 0)),
                pl.BlockSpec((C4, K9C), lambda b, t: (0, 0)),
                pl.BlockSpec((KH * KW, NPIX), lambda b, t: (0, 0)),
                pl.BlockSpec((Cout, NPIX), lambda b, t: (0, 0)),
                pl.BlockSpec((Cout, NPIX), lambda b, t: (0, 0)),
                pl.BlockSpec((Cout, NPIX), lambda b, t: (0, 0)),
            ],
            out_specs=pl.BlockSpec((TC, Cout, NPIX),
                                   lambda b, t: (b * nt + t, 0, 0)),
            scratch_shapes=[
                pltpu.VMEM((Cout, NPIX), jnp.float32),    # H state (rolled in f32)
                pltpu.VMEM((Cout, NPIX), jnp.float32),    # C state
                pltpu.VMEM((K9C, NPIX), jnp.bfloat16),    # im2col^T (MXU operand)
            ],
        ),
        compiler_params=pltpu.CompilerParams(
            dimension_semantics=("parallel", "arbitrary"),   # time stays sequential
            vmem_limit_bytes=vmem_limit),
    )(convx_k, w_h_kT, masks, wci_k, wcf_k, wco_k)

    # (nb*T, Cout, NPIX) -> PyTorch layout (B, Cout, T, H, W).
    out = (out_k.reshape(nb, T, Cout, BB, Hh, Ww)
           .transpose(0, 3, 2, 1, 4, 5)
           .reshape(B, Cout, T, Hh, Ww))
    return out


def conv_lstm_reference(x, wconv, bconv, wci, wcf, wco, *, padding=(1, 1),
                        activation="tanh"):
    """Pure-JAX reference mirroring the PyTorch module (NCHW)."""
    B, Cin, T, Hh, Ww = x.shape
    Cout = wconv.shape[0] // 4
    PH, PW = padding
    act = jnp.tanh if activation == "tanh" else (lambda v: jnp.maximum(v, 0.0))
    H = jnp.zeros((B, Cout, Hh, Ww), jnp.float32)
    C = jnp.zeros((B, Cout, Hh, Ww), jnp.float32)
    outs = []
    for t in range(T):
        xt = x[:, :, t]
        inp = jnp.concatenate([xt, H], axis=1)
        conv = jax.lax.conv_general_dilated(
            inp, wconv, window_strides=(1, 1), padding=[(PH, PH), (PW, PW)],
            dimension_numbers=("NCHW", "OIHW", "NCHW"),
            precision=jax.lax.Precision.HIGHEST)
        conv = conv + bconv[None, :, None, None]
        i_c, f_c, g_c, o_c = jnp.split(conv, 4, axis=1)
        I = jax.nn.sigmoid(i_c + wci[None] * C)
        F = jax.nn.sigmoid(f_c + wcf[None] * C)
        C = F * C + I * act(g_c)
        O = jax.nn.sigmoid(o_c + wco[None] * C)
        H = O * act(C)
        outs.append(H)
    return jnp.stack(outs, axis=2)


if __name__ == "__main__":
    # Small shapes consistent with the module: X is (B, Cin, T, H, W).
    B, Cin, T, Hh, Ww = 2, 4, 8, 16, 16
    Cout, K = 32, 3

    key = jax.random.PRNGKey(0)
    k1, k2, k3, k4, k5, k6 = jax.random.split(key, 6)
    x = jax.random.normal(k1, (B, Cin, T, Hh, Ww), jnp.float32)
    # Deterministic synthetic parameters (shapes per ConvLSTMCell.__init__).
    wconv = 0.1 * jax.random.normal(k2, (4 * Cout, Cin + Cout, K, K), jnp.float32)
    bconv = 0.1 * jax.random.normal(k3, (4 * Cout,), jnp.float32)
    wci = 0.1 * jax.random.normal(k4, (Cout, Hh, Ww), jnp.float32)
    wcf = 0.1 * jax.random.normal(k5, (Cout, Hh, Ww), jnp.float32)
    wco = 0.1 * jax.random.normal(k6, (Cout, Hh, Ww), jnp.float32)

    run = jax.jit(functools.partial(conv_lstm_forward,
                                    padding=(1, 1), activation="tanh"))
    out = jax.block_until_ready(run(x, wconv, bconv, wci, wcf, wco))
    assert out.shape == (B, Cout, T, Hh, Ww)

    ref = conv_lstm_reference(x, wconv, bconv, wci, wcf, wco,
                              padding=(1, 1), activation="tanh")
    # bf16 recurrent-path operands + bf16-streamed conv_x vs. f32 HIGHEST reference.
    np.testing.assert_allclose(np.asarray(out), np.asarray(ref),
                               atol=3e-2, rtol=3e-2)
    print("KERNEL_OK")
</pallas_src>

<mosaic_0001>
module attributes {stable_mosaic.version = 11 : i64} {
  func.func @kernel(%arg0: i32, %arg1: i32, %arg2: memref<8x128x512xbf16, #tpu.memory_space<vmem>>, %arg3: memref<128x288xbf16, #tpu.memory_space<vmem>>, %arg4: memref<9x512xf32, #tpu.memory_space<vmem>>, %arg5: memref<32x512xf32, #tpu.memory_space<vmem>>, %arg6: memref<32x512xf32, #tpu.memory_space<vmem>>, %arg7: memref<32x512xf32, #tpu.memory_space<vmem>>, %arg8: memref<8x32x512xf32, #tpu.memory_space<vmem>>, %arg9: memref<32x512xf32, #tpu.memory_space<vmem>>, %arg10: memref<32x512xf32, #tpu.memory_space<vmem>>, %arg11: memref<288x512xbf16, #tpu.memory_space<vmem>>) attributes {dimension_semantics = [#tpu.dimension_semantics<parallel>, #tpu.dimension_semantics<arbitrary>], iteration_bounds = array<i64: 1, 1>, scalar_prefetch = 0 : i64, scratch_operands = 3 : i64, tpu.core_type = #tpu.core_type<tc>, window_params = [{transform_indices = @transform_0, window_bounds = array<i64: 8, 128, 512>}, {pipeline_mode = #tpu.pipeline_mode<synchronous>, transform_indices = @transform_1, window_bounds = array<i64: 128, 288>}, {pipeline_mode = #tpu.pipeline_mode<synchronous>, transform_indices = @transform_2, window_bounds = array<i64: 9, 512>}, {pipeline_mode = #tpu.pipeline_mode<synchronous>, transform_indices = @transform_3, window_bounds = array<i64: 32, 512>}, {pipeline_mode = #tpu.pipeline_mode<synchronous>, transform_indices = @transform_4, window_bounds = array<i64: 32, 512>}, {pipeline_mode = #tpu.pipeline_mode<synchronous>, transform_indices = @transform_5, window_bounds = array<i64: 32, 512>}, {transform_indices = @transform_6, window_bounds = array<i64: 8, 32, 512>}]} {
    %c0_i32 = arith.constant 0 : i32
    %0 = arith.cmpi eq, %arg1, %c0_i32 : i32
    %1 = arith.extui %0 : i1 to i32
    %c0_i32_0 = arith.constant 0 : i32
    %2 = arith.cmpi ne, %1, %c0_i32_0 : i32
    scf.if %2 {
      %cst = arith.constant 0.000000e+00 : f32
      %4 = vector.broadcast %cst : f32 to vector<32x512xf32>
      %c0 = arith.constant 0 : index
      %c0_3 = arith.constant 0 : index
      %5 = vector.load %arg9[%c0, %c0_3] : memref<32x512xf32, #tpu.memory_space<vmem>>, vector<32x512xf32>
      tpu.vector_store %arg9[%c0, %c0_3], %4 {strides = array<i32>} : memref<32x512xf32, #tpu.memory_space<vmem>>, vector<32x512xf32>,
      %cst_4 = arith.constant 0.000000e+00 : f32
      %6 = vector.broadcast %cst_4 : f32 to vector<32x512xf32>
      %c0_5 = arith.constant 0 : index
      %c0_6 = arith.constant 0 : index
      %7 = vector.load %arg10[%c0_5, %c0_6] : memref<32x512xf32, #tpu.memory_space<vmem>>, vector<32x512xf32>
      tpu.vector_store %arg10[%c0_5, %c0_6], %6 {strides = array<i32>} : memref<32x512xf32, #tpu.memory_space<vmem>>, vector<32x512xf32>,
    } else {
    }
    %c0_i32_1 = arith.constant 0 : i32
    %c8_i32 = arith.constant 8 : i32
    %3 = arith.addi %c0_i32_1, %c8_i32 : i32
    %c1_i32 = arith.constant 1 : i32
    scf.for %arg12 = %c0_i32_1 to %3 step %c1_i32  : i32 {
      %c0 = arith.constant 0 : index
      %c0_3 = arith.constant 0 : index
      %4 = vector.load %arg9[%c0, %c0_3] : memref<32x512xf32, #tpu.memory_space<vmem>>, vector<32x512xf32>
      %c17_i32 = arith.constant 17 : i32
      %5 = tpu.dynamic_rotate %4 by %c17_i32 dim 1 : vector<32x512xf32>, i32 -> vector<32x512xf32>
      %c0_4 = arith.constant 0 : index
      %c0_5 = arith.constant 0 : index
      %6 = vector.load %arg4[%c0_4, %c0_5] : memref<9x512xf32, #tpu.memory_space<vmem>>, vector<1x512xf32>
      %7 = vector.broadcast %6 : vector<1x512xf32> to vector<32x512xf32>
      %8 = arith.mulf %5, %7 : vector<32x512xf32>
      %9 = arith.truncf %8 : vector<32x512xf32> to vector<32x512xbf16>
      %c0_6 = arith.constant 0 : index
      %c0_7 = arith.constant 0 : index
      %10 = vector.load %arg11[%c0_6, %c0_7] : memref<288x512xbf16, #tpu.memory_space<vmem>>, vector<32x512xbf16>
      tpu.vector_store %arg11[%c0_6, %c0_7], %9 {strides = array<i32>} : memref<288x512xbf16, #tpu.memory_space<vmem>>, vector<32x512xbf16>,
      %c16_i32 = arith.constant 16 : i32
      %11 = tpu.dynamic_rotate %4 by %c16_i32 dim 1 : vector<32x512xf32>, i32 -> vector<32x512xf32>
      %c1 = arith.constant 1 : index
      %c0_8 = arith.constant 0 : index
      %12 = vector.load %arg4[%c1, %c0_8] : memref<9x512xf32, #tpu.memory_space<vmem>>, vector<1x512xf32>
      %13 = vector.broadcast %12 : vector<1x512xf32> to vector<32x512xf32>
      %14 = arith.mulf %11, %13 : vector<32x512xf32>
      %15 = arith.truncf %14 : vector<32x512xf32> to vector<32x512xbf16>
      %c32 = arith.constant 32 : index
      %c0_9 = arith.constant 0 : index
      %16 = vector.load %arg11[%c32, %c0_9] : memref<288x512xbf16, #tpu.memory_space<vmem>>, vector<32x512xbf16>
      tpu.vector_store %arg11[%c32, %c0_9], %15 {strides = array<i32>} : memref<288x512xbf16, #tpu.memory_space<vmem>>, vector<32x512xbf16>,
      %c15_i32 = arith.constant 15 : i32
      %17 = tpu.dynamic_rotate %4 by %c15_i32 dim 1 : vector<32x512xf32>, i32 -> vector<32x512xf32>
      %c2 = arith.constant 2 : index
      %c0_10 = arith.constant 0 : index
      %18 = vector.load %arg4[%c2, %c0_10] : memref<9x512xf32, #tpu.memory_space<vmem>>, vector<1x512xf32>
      %19 = vector.broadcast %18 : vector<1x512xf32> to vector<32x512xf32>
      %20 = arith.mulf %17, %19 : vector<32x512xf32>
      %21 = arith.truncf %20 : vector<32x512xf32> to vector<32x512xbf16>
      %c64 = arith.constant 64 : index
      %c0_11 = arith.constant 0 : index
      %22 = vector.load %arg11[%c64, %c0_11] : memref<288x512xbf16, #tpu.memory_space<vmem>>, vector<32x512xbf16>
      tpu.vector_store %arg11[%c64, %c0_11], %21 {strides = array<i32>} : memref<288x512xbf16, #tpu.memory_space<vmem>>, vector<32x512xbf16>,
      %c1_i32_12 = arith.constant 1 : i32
      %23 = tpu.dynamic_rotate %4 by %c1_i32_12 dim 1 : vector<32x512xf32>, i32 -> vector<32x512xf32>
      %c3 = arith.constant 3 : index
      %c0_13 = arith.constant 0 : index
      %24 = vector.load %arg4[%c3, %c0_13] : memref<9x512xf32, #tpu.memory_space<vmem>>, vector<1x512xf32>
      %25 = vector.broadcast %24 : vector<1x512xf32> to vector<32x512xf32>
      %26 = arith.mulf %23, %25 : vector<32x512xf32>
      %27 = arith.truncf %26 : vector<32x512xf32> to vector<32x512xbf16>
      %c96 = arith.constant 96 : index
      %c0_14 = arith.constant 0 : index
      %28 = vector.load %arg11[%c96, %c0_14] : memref<288x512xbf16, #tpu.memory_space<vmem>>, vector<32x512xbf16>
      tpu.vector_store %arg11[%c96, %c0_14], %27 {strides = array<i32>} : memref<288x512xbf16, #tpu.memory_space<vmem>>, vector<32x512xbf16>,
      %c4 = arith.constant 4 : index
      %c0_15 = arith.constant 0 : index
      %29 = vector.load %arg4[%c4, %c0_15] : memref<9x512xf32, #tpu.memory_space<vmem>>, vector<1x512xf32>
      %30 = vector.broadcast %29 : vector<1x512xf32> to vector<32x512xf32>
      %31 = arith.mulf %4, %30 : vector<32x512xf32>
      %32 = arith.truncf %31 : vector<32x512xf32> to vector<32x512xbf16>
      %c128 = arith.constant 128 : index
      %c0_16 = arith.constant 0 : index
      %33 = vector.load %arg11[%c128, %c0_16] : memref<288x512xbf16, #tpu.memory_space<vmem>>, vector<32x512xbf16>
      tpu.vector_store %arg11[%c128, %c0_16], %32 {strides = array<i32>} : memref<288x512xbf16, #tpu.memory_space<vmem>>, vector<32x512xbf16>,
      %c511_i32 = arith.constant 511 : i32
      %34 = tpu.dynamic_rotate %4 by %c511_i32 dim 1 : vector<32x512xf32>, i32 -> vector<32x512xf32>
      %c5 = arith.constant 5 : index
      %c0_17 = arith.constant 0 : index
      %35 = vector.load %arg4[%c5, %c0_17] : memref<9x512xf32, #tpu.memory_space<vmem>>, vector<1x512xf32>
      %36 = vector.broadcast %35 : vector<1x512xf32> to vector<32x512xf32>
      %37 = arith.mulf %34, %36 : vector<32x512xf32>
      %38 = arith.truncf %37 : vector<32x512xf32> to vector<32x512xbf16>
      %c160 = arith.constant 160 : index
      %c0_18 = arith.constant 0 : index
      %39 = vector.load %arg11[%c160, %c0_18] : memref<288x512xbf16, #tpu.memory_space<vmem>>, vector<32x512xbf16>
      tpu.vector_store %arg11[%c160, %c0_18], %38 {strides = array<i32>} : memref<288x512xbf16, #tpu.memory_space<vmem>>, vector<32x512xbf16>,
      %c497_i32 = arith.constant 497 : i32
      %40 = tpu.dynamic_rotate %4 by %c497_i32 dim 1 : vector<32x512xf32>, i32 -> vector<32x512xf32>
      %c6 = arith.constant 6 : index
      %c0_19 = arith.constant 0 : index
      %41 = vector.load %arg4[%c6, %c0_19] : memref<9x512xf32, #tpu.memory_space<vmem>>, vector<1x512xf32>
      %42 = vector.broadcast %41 : vector<1x512xf32> to vector<32x512xf32>
      %43 = arith.mulf %40, %42 : vector<32x512xf32>
      %44 = arith.truncf %43 : vector<32x512xf32> to vector<32x512xbf16>
      %c192 = arith.constant 192 : index
      %c0_20 = arith.constant 0 : index
      %45 = vector.load %arg11[%c192, %c0_20] : memref<288x512xbf16, #tpu.memory_space<vmem>>, vector<32x512xbf16>
      tpu.vector_store %arg11[%c192, %c0_20], %44 {strides = array<i32>} : memref<288x512xbf16, #tpu.memory_space<vmem>>, vector<32x512xbf16>,
      %c496_i32 = arith.constant 496 : i32
      %46 = tpu.dynamic_rotate %4 by %c496_i32 dim 1 : vector<32x512xf32>, i32 -> vector<32x512xf32>
      %c7 = arith.constant 7 : index
      %c0_21 = arith.constant 0 : index
      %47 = vector.load %arg4[%c7, %c0_21] : memref<9x512xf32, #tpu.memory_space<vmem>>, vector<1x512xf32>
      %48 = vector.broadcast %47 : vector<1x512xf32> to vector<32x512xf32>
      %49 = arith.mulf %46, %48 : vector<32x512xf32>
      %50 = arith.truncf %49 : vector<32x512xf32> to vector<32x512xbf16>
      %c224 = arith.constant 224 : index
      %c0_22 = arith.constant 0 : index
      %51 = vector.load %arg11[%c224, %c0_22] : memref<288x512xbf16, #tpu.memory_space<vmem>>, vector<32x512xbf16>
      tpu.vector_store %arg11[%c224, %c0_22], %50 {strides = array<i32>} : memref<288x512xbf16, #tpu.memory_space<vmem>>, vector<32x512xbf16>,
      %c495_i32 = arith.constant 495 : i32
      %52 = tpu.dynamic_rotate %4 by %c495_i32 dim 1 : vector<32x512xf32>, i32 -> vector<32x512xf32>
      %c8 = arith.constant 8 : index
      %c0_23 = arith.constant 0 : index
      %53 = vector.load %arg4[%c8, %c0_23] : memref<9x512xf32, #tpu.memory_space<vmem>>, vector<1x512xf32>
      %54 = vector.broadcast %53 : vector<1x512xf32> to vector<32x512xf32>
      %55 = arith.mulf %52, %54 : vector<32x512xf32>
      %56 = arith.truncf %55 : vector<32x512xf32> to vector<32x512xbf16>
      %c256 = arith.constant 256 : index
      %c0_24 = arith.constant 0 : index
      %57 = vector.load %arg11[%c256, %c0_24] : memref<288x512xbf16, #tpu.memory_space<vmem>>, vector<32x512xbf16>
      tpu.vector_store %arg11[%c256, %c0_24], %56 {strides = array<i32>} : memref<288x512xbf16, #tpu.memory_space<vmem>>, vector<32x512xbf16>,
      %c0_25 = arith.constant 0 : index
      %c0_26 = arith.constant 0 : index
      %58 = vector.load %arg3[%c0_25, %c0_26] : memref<128x288xbf16, #tpu.memory_space<vmem>>, vector<128x288xbf16>
      %c0_27 = arith.constant 0 : index
      %c0_28 = arith.constant 0 : index
      %59 = vector.load %arg11[%c0_27, %c0_28] : memref<288x512xbf16, #tpu.memory_space<vmem>>, vector<288x512xbf16>
      %cst = arith.constant dense<0.000000e+00> : vector<128x512xf32>
      %60 = tpu.matmul %58, %59, %cst {dimension_numbers = #tpu.dot_dimension_numbers<[1], [0], [0], [1], [0, 0, 1, 1], [], []>} : vector<128x288xbf16>, vector<288x512xbf16>, vector<128x512xf32> -> vector<128x512xf32>
      %61 = arith.index_cast %arg12 : i32 to index
      %c0_29 = arith.constant 0 : index
      %c0_30 = arith.constant 0 : index
      %62 = vector.load %arg2[%61, %c0_29, %c0_30] : memref<8x128x512xbf16, #tpu.memory_space<vmem>>, vector<1x128x512xbf16>
      %63 = vector.shape_cast %62 : vector<1x128x512xbf16> to vector<128x512xbf16>
      %64 = arith.extf %63 : vector<128x512xbf16> to vector<128x512xf32>
      %65 = arith.addf %60, %64 : vector<128x512xf32>
      %c0_31 = arith.constant 0 : index
      %c0_32 = arith.constant 0 : index
      %66 = vector.load %arg10[%c0_31, %c0_32] : memref<32x512xf32, #tpu.memory_space<vmem>>, vector<32x512xf32>
      %67 = vector.extract_strided_slice %65 {offsets = [0, 0], sizes = [32, 512], strides = [1, 1]} : vector<128x512xf32> to vector<32x512xf32>
      %68 = vector.extract_strided_slice %65 {offsets = [32, 0], sizes = [32, 512], strides = [1, 1]} : vector<128x512xf32> to vector<32x512xf32>
      %69 = vector.extract_strided_slice %65 {offsets = [64, 0], sizes = [32, 512], strides = [1, 1]} : vector<128x512xf32> to vector<32x512xf32>
      %70 = vector.extract_strided_slice %65 {offsets = [96, 0], sizes = [32, 512], strides = [1, 1]} : vector<128x512xf32> to vector<32x512xf32>
      %c0_33 = arith.constant 0 : index
      %c0_34 = arith.constant 0 : index
      %71 = vector.load %arg5[%c0_33, %c0_34] : memref<32x512xf32, #tpu.memory_space<vmem>>, vector<32x512xf32>
      %72 = arith.mulf %71, %66 : vector<32x512xf32>
      %73 = arith.addf %67, %72 : vector<32x512xf32>
      %74 = arith.negf %73 : vector<32x512xf32>
      %75 = math.exp %74 : vector<32x512xf32>
      %cst_35 = arith.constant 1.000000e+00 : f32
      %76 = vector.broadcast %cst_35 : f32 to vector<32x512xf32>
      %77 = arith.addf %76, %75 : vector<32x512xf32>
      %78 = arith.divf %76, %77 : vector<32x512xf32>
      %c0_36 = arith.constant 0 : index
      %c0_37 = arith.constant 0 : index
      %79 = vector.load %arg6[%c0_36, %c0_37] : memref<32x512xf32, #tpu.memory_space<vmem>>, vector<32x512xf32>
      %80 = arith.mulf %79, %66 : vector<32x512xf32>
      %81 = arith.addf %68, %80 : vector<32x512xf32>
      %82 = arith.negf %81 : vector<32x512xf32>
      %83 = math.exp %82 : vector<32x512xf32>
      %cst_38 = arith.constant 1.000000e+00 : f32
      %84 = vector.broadcast %cst_38 : f32 to vector<32x512xf32>
      %85 = arith.addf %84, %83 : vector<32x512xf32>
      %86 = arith.divf %84, %85 : vector<32x512xf32>
      %87 = arith.mulf %86, %66 : vector<32x512xf32>
      %88 = math.tanh %69 : vector<32x512xf32>
      %89 = arith.mulf %78, %88 : vector<32x512xf32>
      %90 = arith.addf %87, %89 : vector<32x512xf32>
      %c0_39 = arith.constant 0 : index
      %c0_40 = arith.constant 0 : index
      %91 = vector.load %arg7[%c0_39, %c0_40] : memref<32x512xf32, #tpu.memory_space<vmem>>, vector<32x512xf32>
      %92 = arith.mulf %91, %90 : vector<32x512xf32>
      %93 = arith.addf %70, %92 : vector<32x512xf32>
      %94 = arith.negf %93 : vector<32x512xf32>
      %95 = math.exp %94 : vector<32x512xf32>
      %cst_41 = arith.constant 1.000000e+00 : f32
      %96 = vector.broadcast %cst_41 : f32 to vector<32x512xf32>
      %97 = arith.addf %96, %95 : vector<32x512xf32>
      %98 = arith.divf %96, %97 : vector<32x512xf32>
      %99 = math.tanh %90 : vector<32x512xf32>
      %100 = arith.mulf %98, %99 : vector<32x512xf32>
      %c0_42 = arith.constant 0 : index
      %c0_43 = arith.constant 0 : index
      %101 = vector.load %arg10[%c0_42, %c0_43] : memref<32x512xf32, #tpu.memory_space<vmem>>, vector<32x512xf32>
      tpu.vector_store %arg10[%c0_42, %c0_43], %90 {strides = array<i32>} : memref<32x512xf32, #tpu.memory_space<vmem>>, vector<32x512xf32>,
      %102 = arith.index_cast %arg12 : i32 to index
      %c0_44 = arith.constant 0 : index
      %c0_45 = arith.constant 0 : index
      %103 = vector.load %arg8[%102, %c0_44, %c0_45] : memref<8x32x512xf32, #tpu.memory_space<vmem>>, vector<1x32x512xf32>
      %104 = vector.shape_cast %103 : vector<1x32x512xf32> to vector<32x512xf32>
      %105 = vector.shape_cast %100 : vector<32x512xf32> to vector<1x32x512xf32>
      tpu.vector_store %arg8[%102, %c0_44, %c0_45], %105 {strides = array<i32>} : memref<8x32x512xf32, #tpu.memory_space<vmem>>, vector<1x32x512xf32>,
      %c0_46 = arith.constant 0 : index
      %c0_47 = arith.constant 0 : index
      %106 = vector.load %arg9[%c0_46, %c0_47] : memref<32x512xf32, #tpu.memory_space<vmem>>, vector<32x512xf32>
      tpu.vector_store %arg9[%c0_46, %c0_47], %100 {strides = array<i32>} : memref<32x512xf32, #tpu.memory_space<vmem>>, vector<32x512xf32>,
    }
    %c8_i32_2 = arith.constant 8 : i32
    return
  }
  func.func @transform_0(%arg0: i32, %arg1: i32) -> (i32, i32, i32) {
    %c1_i32 = arith.constant 1 : i32
    %0 = arith.muli %arg0, %c1_i32 : i32
    %1 = arith.addi %0, %arg1 : i32
    %c0_i32 = arith.constant 0 : i32
    %c0_i32_0 = arith.constant 0 : i32
    %c0_i32_1 = arith.constant 0 : i32
    return %1, %c0_i32, %c0_i32_0 : i32, i32, i32
  }
  func.func @transform_1(%arg0: i32, %arg1: i32) -> (i32, i32) {
    %c0_i32 = arith.constant 0 : i32
    %c0_i32_0 = arith.constant 0 : i32
    %c0_i32_1 = arith.constant 0 : i32
    return %c0_i32, %c0_i32_0 : i32, i32
  }
  func.func @transform_2(%arg0: i32, %arg1: i32) -> (i32, i32) {
    %c0_i32 = arith.constant 0 : i32
    %c0_i32_0 = arith.constant 0 : i32
    %c0_i32_1 = arith.constant 0 : i32
    return %c0_i32, %c0_i32_0 : i32, i32
  }
  func.func @transform_3(%arg0: i32, %arg1: i32) -> (i32, i32) {
    %c0_i32 = arith.constant 0 : i32
    %c0_i32_0 = arith.constant 0 : i32
    %c0_i32_1 = arith.constant 0 : i32
    return %c0_i32, %c0_i32_0 : i32, i32
  }
  func.func @transform_4(%arg0: i32, %arg1: i32) -> (i32, i32) {
    %c0_i32 = arith.constant 0 : i32
    %c0_i32_0 = arith.constant 0 : i32
    %c0_i32_1 = arith.constant 0 : i32
    return %c0_i32, %c0_i32_0 : i32, i32
  }
  func.func @transform_5(%arg0: i32, %arg1: i32) -> (i32, i32) {
    %c0_i32 = arith.constant 0 : i32
    %c0_i32_0 = arith.constant 0 : i32
    %c0_i32_1 = arith.constant 0 : i32
    return %c0_i32, %c0_i32_0 : i32, i32
  }
  func.func @transform_6(%arg0: i32, %arg1: i32) -> (i32, i32, i32) {
    %c1_i32 = arith.constant 1 : i32
    %0 = arith.muli %arg0, %c1_i32 : i32
    %1 = arith.addi %0, %arg1 : i32
    %c0_i32 = arith.constant 0 : i32
    %c0_i32_0 = arith.constant 0 : i32
    %c0_i32_1 = arith.constant 0 : i32
    return %1, %c0_i32, %c0_i32_0 : i32, i32, i32
  }
}

</mosaic_0001>

<bundles_post_ra>
// kernel: conv_lstm_forward.1
= control target key start
LH: loop header
LB: loop body
LE: loop exit
PB: predicated region body
PF: predicated region fallthrough
CT: control target
= control target key end

     0   :  { %v3898_v0 = vmov 0.0   ;;  %s3943_s21 = smov 0   ;;  %s5862_s0 = inlined_call_operand.vmem [shape: bf16[8,128,512], index: 0, kind: input, shape index: {}]   ;;  %s5863_s1 = inlined_call_operand.vmem [shape: bf16[128,288], index: 1, kind: input, shape index: {}]   ;;  %s5864_s2 = inlined_call_operand.vmem [shape: f32[9,512], index: 2, kind: input, shape index: {}]   ;;  %s5865_s3 = inlined_call_operand.vmem [shape: f32[32,512], index: 3, kind: input, shape index: {}]   ;;  %s5866_s4 = inlined_call_operand.vmem [shape: f32[32,512], index: 4, kind: input, shape index: {}]   ;;  %s5867_s5 = inlined_call_operand.vmem [shape: f32[32,512], index: 5, kind: input, shape index: {}]   ;;  %s5868_s6 = inlined_call_operand.vmem [shape: f32[8,32,512], index: 6, kind: output, shape index: {}]  }
   0x1   :  { %69 = vst [vmem:[#allocation2 + $0x30] sm:$0xff] %v3898_v0  ;;  %70 = vst [vmem:[#allocation2] sm:$0xff] %v3898_v0 }
   0x2   :  { %71 = vst [vmem:[#allocation2 + $0x58] sm:$0xff] %v3898_v0  ;;  %72 = vst [vmem:[#allocation2 + $0x18] sm:$0xff] %v3898_v0 }
   0x3   :  { %73 = vst [vmem:[#allocation2 + $0x50] sm:$0xff] %v3898_v0  ;;  %74 = vst [vmem:[#allocation2 + $0x68] sm:$0xff] %v3898_v0 }
   0x4   :  { %75 = vst [vmem:[#allocation2 + $0x8] sm:$0xff] %v3898_v0  ;;  %76 = vst [vmem:[#allocation2 + $0x48] sm:$0xff] %v3898_v0 }
   0x5   :  { %77 = vst [vmem:[#allocation2 + $0x40] sm:$0xff] %v3898_v0  ;;  %78 = vst [vmem:[#allocation2 + $0x20] sm:$0xff] %v3898_v0 }
   0x6   :  { %79 = vst [vmem:[#allocation2 + $0x10] sm:$0xff] %v3898_v0  ;;  %80 = vst [vmem:[#allocation2 + $0x38] sm:$0xff] %v3898_v0 }
   0x7   :  { %81 = vst [vmem:[#allocation2 + $0x60] sm:$0xff] %v3898_v0  ;;  %82 = vst [vmem:[#allocation2 + $0x70] sm:$0xff] %v3898_v0 }
   0x8   :  { %83 = vst [vmem:[#allocation2 + $0x78] sm:$0xff] %v3898_v0  ;;  %84 = vst [vmem:[#allocation2 + $0x28] sm:$0xff] %v3898_v0 }
   0x9   :  { %85 = vst [vmem:[#allocation3 + $0x28] sm:$0xff] %v3898_v0  ;;  %86 = vst [vmem:[#allocation3 + $0x68] sm:$0xff] %v3898_v0 }
   0xa   :  { %87 = vst [vmem:[#allocation3 + $0x10] sm:$0xff] %v3898_v0  ;;  %88 = vst [vmem:[#allocation3 + $0x40] sm:$0xff] %v3898_v0 }
   0xb   :  { %89 = vst [vmem:[#allocation3 + $0x48] sm:$0xff] %v3898_v0  ;;  %90 = vst [vmem:[#allocation3 + $0x30] sm:$0xff] %v3898_v0 }
   0xc   :  { %91 = vst [vmem:[#allocation3 + $0x70] sm:$0xff] %v3898_v0  ;;  %92 = vst [vmem:[#allocation3 + $0x38] sm:$0xff] %v3898_v0 }
   0xd   :  { %93 = vst [vmem:[#allocation3 + $0x20] sm:$0xff] %v3898_v0  ;;  %94 = vst [vmem:[#allocation3 + $0x78] sm:$0xff] %v3898_v0 }
   0xe   :  { %95 = vst [vmem:[#allocation3 + $0x18] sm:$0xff] %v3898_v0  ;;  %96 = vst [vmem:[#allocation3 + $0x58] sm:$0xff] %v3898_v0 }
   0xf   :  { %97 = vst [vmem:[#allocation3] sm:$0xff] %v3898_v0  ;;  %98 = vst [vmem:[#allocation3 + $0x8] sm:$0xff] %v3898_v0 }
  0x10   :  { %99 = vst [vmem:[#allocation3 + $0x60] sm:$0xff] %v3898_v0  ;;  %100 = vst [vmem:[#allocation3 + $0x50] sm:$0xff] %v3898_v0 }
  0x11 LB: > { %v3948_v1 = vld [vmem:[#allocation2 + $0x20] sm:$0xff]  ;;  %s3899_s22 = smov 1   ;;  %v3956_v3 = vld [vmem:[#allocation2 + $0x70] sm:$0xff]  ;;  %v3964_v5 = vld [vmem:[#allocation2 + $0x28] sm:$0xff]  ;;  %s3900_s23 = smov 15   ;;  %v155_v15 = vlaneseq  ;;  %vm2054_vm7 = vcmask 261120   ;;  %s3896_s21 = sphi %s3943_s21, %s106_s21  }
  0x12   : > { %v3950_v2 = vld [vmem:[#allocation2 + $0x40] sm:$0xff]  ;;  %568 = vrot.lane.b32.xlu1 %v3948_v1, %s3899_s22  ;;  %v3966_v6 = vld [vmem:[#allocation2 + $0x38] sm:$0xff]  ;;  %v3968_v7 = vld [vmem:[#allocation2 + $0x50] sm:$0xff]  ;;  %s3901_s24 = smov 16   ;;  %s3902_s25 = smov 17  }
  0x13   : > { %560 = vrot.lane.b32.xlu0 %v3950_v2, %s3899_s22  ;;  %v3958_v4 = vld [vmem:[#allocation2 + $0x60] sm:$0xff]  ;;  %v3974_v8 = vld [vmem:[#allocation2 + $0x30] sm:$0xff]  ;;  %v3980_v9 = vld [vmem:[#allocation2 + $0x68] sm:$0xff]  ;;  %s3903_s26 = smov 112   ;;  %v4088_v16 = vshrl.u32 %v155_v15, 7  ;;  %v4094_v19 = vand.u32 127, %v155_v15 }
  0x14   : > { %v3982_v10 = vld [vmem:[#allocation2] sm:$0xff]  ;;  %v3988_v11 = vld [vmem:[#allocation2 + $0x48] sm:$0xff]  ;;  %v3990_v12 = vld [vmem:[#allocation2 + $0x18] sm:$0xff]  ;;  %s3904_s29 = smov 111   ;;  %s3905_s30 = smov 113  }
  0x15   : > { %v4072_v13 = vld [vmem:[#allocation2 + $0x78] sm:$0xff]  ;;  %v4074_v14 = vld [vmem:[#allocation2 + $0x10] sm:$0xff]  ;;  %v4090_v17 = vld [vmem:[#allocation2 + $0x8] sm:$0xff]  ;;  %v4101_v20 = vsub.s32 1, %v4088_v16  ;;  %vm588_vm0 = vcmp.lt.s32.totalorder %v4094_v19, 1  ;;  %v4118_v25 = vsub.s32 0, %v4088_v16 }
  0x16   : > { %570 = vrot.lane.b32.xlu1 %v3956_v3, %s3899_s22  ;;  %v4092_v18 = vld [vmem:[#allocation2 + $0x58] sm:$0xff]  ;;  %vm444_vm1 = vcmp.lt.s32.totalorder %v4094_v19, 15  ;;  %vm300_vm2 = vcmp.lt.s32.totalorder %v4094_v19, 16  ;;  %s3907_s11 = smov 127   ;;  %vm157_vm3 = vcmp.lt.s32.totalorder %v4094_v19, 17  ;;  %vm1115_vm4 = vcmp.lt.s32.totalorder %v4094_v19, 112 }
  0x17   : > { %562 = vrot.lane.b32.xlu0 %v3958_v4, %s3899_s22  ;;  %v4106_v21 = vld [vmem:[%s5864_s2 + $0x3] ss:$8 sm:$0xf]  ;;  %v4183_v56 = vld [vmem:[%s5864_s2 + $0x2] ss:$8 sm:$0xf] }
  0x18   : > { %v615_v24 = vrot.slane %v4106_v21, %v4101_v20  ;;  %v611_v32 = vrot.slane %v4106_v21, %v4118_v25  ;;  %v471_v60 = vrot.slane %v4183_v56, %v4101_v20  ;;  %vm1259_vm5 = vcmp.lt.s32.totalorder %v4094_v19, 111  ;;  %s3485_s27 = sshll.u32 %s3896_s21, 8  ;;  %s3486_s19 = sshll.u32 %s3896_s21, 7 }
  0x19   : > { %vm971_vm6 = vcmp.lt.s32.totalorder %v4094_v19, 113  ;;  %vm827_vm8 = vcmp.lt.s32.totalorder %v4094_v19, 127  ;;  %s106_s21 = sadd.s32 1, %s3896_s21  }
  0x1a   : > { %586 = vrot.lane.b32.xlu1 %v3964_v5, %s3899_s22  ;;  %p103_p0 = scmp.ge.s32.totalorder %s106_s21, 8  }
  0x1b   : > { %584 = vrot.lane.b32.xlu0 %v3966_v6, %s3899_s22 }
  0x1e   : > { %558 = vrot.lane.b32.xlu1 %v3968_v7, %s3899_s22 }
  0x1f   : > { %556 = vrot.lane.b32.xlu0 %v3974_v8, %s3899_s22 }
  0x22   : > { %566 = vrot.lane.b32.xlu1 %v3980_v9, %s3899_s22 }
  0x23   : > { %564 = vrot.lane.b32.xlu0 %v3982_v10, %s3899_s22 }
  0x26   : > { %582 = vrot.lane.b32.xlu1 %v3988_v11, %s3899_s22 }
  0x27   : > { %580 = vrot.lane.b32.xlu0 %v3990_v12, %s3899_s22 }
  0x2a   : > { %418 = vrot.lane.b32.xlu1 %v3958_v4, %s3900_s23 }
  0x2b   : > { %416 = vrot.lane.b32.xlu0 %v3950_v2, %s3900_s23 }
  0x2e   : > { %426 = vrot.lane.b32.xlu1 %v3956_v3, %s3900_s23 }
  0x2f   : > { %424 = vrot.lane.b32.xlu0 %v3948_v1, %s3900_s23 }
  0x32   : > { %442 = vrot.lane.b32.xlu1 %v3964_v5, %s3900_s23 }
  0x33   : > { %440 = vrot.lane.b32.xlu0 %v3966_v6, %s3900_s23 }
  0x36   : > { %414 = vrot.lane.b32.xlu1 %v3968_v7, %s3900_s23 }
  0x37   : > { %412 = vrot.lane.b32.xlu0 %v3974_v8, %s3900_s23 }
  0x3a   : > { %422 = vrot.lane.b32.xlu1 %v3980_v9, %s3900_s23 }
  0x3b   : > { %420 = vrot.lane.b32.xlu0 %v3982_v10, %s3900_s23 }
  0x3e   : > { %438 = vrot.lane.b32.xlu1 %v3988_v11, %s3900_s23 }
  0x3f   : > { %436 = vrot.lane.b32.xlu0 %v3990_v12, %s3900_s23 }
  0x42   : > { %274 = vrot.lane.b32.xlu1 %v3958_v4, %s3901_s24 }
  0x43   : > { %272 = vrot.lane.b32.xlu0 %v3950_v2, %s3901_s24 }
  0x46   : > { %282 = vrot.lane.b32.xlu1 %v3956_v3, %s3901_s24 }
  0x47   : > { %280 = vrot.lane.b32.xlu0 %v3948_v1, %s3901_s24 }
  0x4a   : > { %298 = vrot.lane.b32.xlu1 %v3964_v5, %s3901_s24 }
  0x4b   : > { %296 = vrot.lane.b32.xlu0 %v3966_v6, %s3901_s24 }
  0x4e   : > { %270 = vrot.lane.b32.xlu1 %v3968_v7, %s3901_s24 }
  0x4f   : > { %268 = vrot.lane.b32.xlu0 %v3974_v8, %s3901_s24 }
  0x52   : > { %278 = vrot.lane.b32.xlu1 %v3980_v9, %s3901_s24 }
  0x53   : > { %276 = vrot.lane.b32.xlu0 %v3982_v10, %s3901_s24 }
  0x56   : > { %294 = vrot.lane.b32.xlu1 %v3988_v11, %s3901_s24 }
  0x57   : > { %292 = vrot.lane.b32.xlu0 %v3990_v12, %s3901_s24 }
  0x5a   : > { %129 = vrot.lane.b32.xlu1 %v3958_v4, %s3902_s25 }
  0x5b   : > { %127 = vrot.lane.b32.xlu0 %v3950_v2, %s3902_s25 }
  0x5e   : > { %137 = vrot.lane.b32.xlu1 %v3956_v3, %s3902_s25 }
  0x5f   : > { %135 = vrot.lane.b32.xlu0 %v3948_v1, %s3902_s25 }
  0x62   : > { %153 = vrot.lane.b32.xlu1 %v3964_v5, %s3902_s25 }
  0x63   : > { %151 = vrot.lane.b32.xlu0 %v3966_v6, %s3902_s25 }
  0x66   : > { %125 = vrot.lane.b32.xlu1 %v3968_v7, %s3902_s25 }
  0x67   : > { %123 = vrot.lane.b32.xlu0 %v3974_v8, %s3902_s25 }
  0x6a   : > { %133 = vrot.lane.b32.xlu1 %v3980_v9, %s3902_s25 }
  0x6b   : > { %131 = vrot.lane.b32.xlu0 %v3982_v10, %s3902_s25 }
  0x6e   : > { %149 = vrot.lane.b32.xlu1 %v3988_v11, %s3902_s25 }
  0x6f   : > { %147 = vrot.lane.b32.xlu0 %v3990_v12, %s3902_s25 }
  0x72   : > { %1097 = vrot.lane.b32.xlu1 %v3956_v3, %s3903_s26 }
  0x73   : > { %1095 = vrot.lane.b32.xlu0 %v3948_v1, %s3903_s26 }
  0x76   : > { %1105 = vrot.lane.b32.xlu1 %v4072_v13, %s3903_s26 }
  0x77   : > { %1103 = vrot.lane.b32.xlu0 %v4074_v14, %s3903_s26 }
  0x7a   : > { %1089 = vrot.lane.b32.xlu1 %v3958_v4, %s3903_s26 }
  0x7b   : > { %1087 = vrot.lane.b32.xlu0 %v3950_v2, %s3903_s26 }
  0x7e   : > { %1093 = vrot.lane.b32.xlu1 %v3980_v9, %s3903_s26 }
  0x7f   : > { %1091 = vrot.lane.b32.xlu0 %v3982_v10, %s3903_s26 }
  0x82   : > { %1101 = vrot.lane.b32.xlu1 %v4090_v17, %s3903_s26 }
  0x83   : > { %1099 = vrot.lane.b32.xlu0 %v4092_v18, %s3903_s26 }
  0x84   : > { %v4108_v22 = vpop.permute.xlu1 %568 }
  0x85   : > { %v561_v23 = vpop.permute.xlu0 %560 }
  0x86   : > { %1241 = vrot.lane.b32.xlu1 %v3956_v3, %s3904_s29  ;;  %v599_v26 = vsel %vm588_vm0, %v561_v23, %v4108_v22 }
  0x87   : > { %1239 = vrot.lane.b32.xlu0 %v3948_v1, %s3904_s29  ;;  %v637_v30 = vmul.f32 %v615_v24, %v599_v26 }
  0x88   : > { %v4123_v27 = vpop.permute.xlu1 %570 }
  0x89   : > { %v563_v28 = vpop.permute.xlu0 %562 }
  0x8a   : > { %v600_v29 = vsel %vm588_vm0, %v563_v28, %v4123_v27  ;;  %1249 = vrot.lane.b32.xlu1 %v4072_v13, %s3904_s29 }
  0x8b   : > { %1247 = vrot.lane.b32.xlu0 %v4074_v14, %s3904_s29  ;;  %v641_v31 = vmul.f32 %v615_v24, %v600_v29 }
  0x8c   : > { %v4134_v33 = vpop.permute.xlu1 %586 }
  0x8d   : > { %v4136_v34 = vpop.permute.xlu0 %584  ;;  %v3516_v35 = vpack.c.bf16 %v641_v31, %v637_v30  ;;  %v604_v36 = vsel %vm588_vm0, %v4134_v33, %v563_v28 }
  0x8e   : > { %v603_v37 = vsel %vm588_vm0, %v4136_v34, %v561_v23  ;;  %1085 = vrot.lane.b32.xlu1 %v3968_v7, %s3903_s26  ;;  %v640_v39 = vmul.f32 %v611_v32, %v604_v36  ;;  %v5869_v36 = vmov 0  }
  0x8f   : > { %2079 = vmatprep.subr.bf16.mxu0 %v3516_v35  ;;  %v636_v38 = vmul.f32 %v611_v32, %v603_v37  ;;  %1083 = vrot.lane.b32.xlu0 %v3974_v8, %s3903_s26 }
  0x90   : > { %v559_v40 = vpop.permute.xlu1 %558  ;;  %2224 = vmatprep.mubr.bf16.mxu1 %v5869_v36 }
  0x91   : > { %v557_v41 = vpop.permute.xlu0 %556  ;;  %v3515_v42 = vpack.c.bf16 %v640_v39, %v636_v38 }
  0x92   : > { %1233 = vrot.lane.b32.xlu1 %v3958_v4, %s3904_s29 }
  0x93   : > { %2080 = vmatpush1.bf16.msra.mxu0 %v3515_v42  ;;  %1231 = vrot.lane.b32.xlu0 %v3950_v2, %s3904_s29 }
  0x94   : > { %v4152_v43 = vpop.permute.xlu1 %566 }
  0x95   : > { %v4154_v44 = vpop.permute.xlu0 %564  ;;  %v598_v45 = vsel %vm588_vm0, %v559_v40, %v4152_v43 }
  0x96   : > { %v597_v46 = vsel %vm588_vm0, %v557_v41, %v4154_v44  ;;  %v633_v47 = vmul.f32 %v615_v24, %v598_v45  ;;  %953 = vrot.lane.b32.xlu1 %v3956_v3, %s3905_s30 }
  0x97   : > { %v629_v48 = vmul.f32 %v615_v24, %v597_v46  ;;  %951 = vrot.lane.b32.xlu0 %v3948_v1, %s3905_s30  ;;  %v467_v24 = vrot.slane %v4183_v56, %v4118_v25 }
  0x98   : > { %v4166_v49 = vpop.permute.xlu1 %582 }
  0x99   : > { %v4168_v50 = vpop.permute.xlu0 %580  ;;  %v3512_v51 = vpack.c.bf16 %v633_v47, %v629_v48  ;;  %v602_v52 = vsel %vm588_vm0, %v4166_v49, %v559_v40 }
  0x9a   : > { %v601_v53 = vsel %vm588_vm0, %v4168_v50, %v557_v41  ;;  %v632_v54 = vmul.f32 %v611_v32, %v602_v52  ;;  %961 = vrot.lane.b32.xlu1 %v4072_v13, %s3905_s30 }
  0x9b   : > { %v628_v55 = vmul.f32 %v611_v32, %v601_v53  ;;  %2081 = vmatprep.subr.bf16.mxu0 %v3512_v51  ;;  %959 = vrot.lane.b32.xlu0 %v4074_v14, %s3905_s30 }
  0x9c   : > { %v419_v57 = vpop.permute.xlu1 %418 }
  0x9d   : > { %v417_v58 = vpop.permute.xlu0 %416  ;;  %v3511_v59 = vpack.c.bf16 %v632_v54, %v628_v55 }
  0x9e   : > { %1237 = vrot.lane.b32.xlu1 %v3980_v9, %s3904_s29 }
  0x9f   : > { %2082 = vmatpush1.bf16.msra.mxu0 %v3511_v59  ;;  %1235 = vrot.lane.b32.xlu0 %v3982_v10, %s3904_s29 }
  0xa0   : > { %v4192_v61 = vpop.permute.xlu1 %426 }
  0xa1   : > { %v4194_v62 = vpop.permute.xlu0 %424  ;;  %v456_v63 = vsel %vm444_vm1, %v419_v57, %v4192_v61 }
  0xa2   : > { %v455_v0 = vsel %vm444_vm1, %v417_v58, %v4194_v62  ;;  %v497_v15 = vmul.f32 %v471_v60, %v456_v63  ;;  %1245 = vrot.lane.b32.xlu1 %v4090_v17, %s3904_s29 }
  0xa3   : > { %v493_v23 = vmul.f32 %v471_v60, %v455_v0  ;;  %1243 = vrot.lane.b32.xlu0 %v4092_v18, %s3904_s29 }
  0xa4   : > { %v4208_v26 = vpop.permute.xlu1 %442 }
  0xa5   : > { %v4210_v28 = vpop.permute.xlu0 %440  ;;  %v3508_v29 = vpack.c.bf16 %v497_v15, %v493_v23  ;;  %v460_v30 = vsel %vm444_vm1, %v4208_v26, %v419_v57 }
  0xa6   : > { %v459_v31 = vsel %vm444_vm1, %v4210_v28, %v417_v58  ;;  %v496_v32 = vmul.f32 %v467_v24, %v460_v30  ;;  %945 = vrot.lane.b32.xlu1 %v3958_v4, %s3905_s30  ;;  %v4258_v58 = vld [vmem:[%s5864_s2 + $0x1] ss:$8 sm:$0xf] }
  0xa7   : > { %v492_v35 = vmul.f32 %v467_v24, %v459_v31  ;;  %2083 = vmatprep.subr.bf16.mxu0 %v3508_v29  ;;  %943 = vrot.lane.b32.xlu0 %v3950_v2, %s3905_s30  ;;  %v327_v0 = vrot.slane %v4258_v58, %v4101_v20 }
  0xa8   : > { %v415_v37 = vpop.permute.xlu1 %414 }
  0xa9   : > { %v413_v38 = vpop.permute.xlu0 %412  ;;  %v3507_v39 = vpack.c.bf16 %v496_v32, %v492_v35  ;;  %v323_v32 = vrot.slane %v4258_v58, %v4118_v25 }
  0xaa   : > { %1229 = vrot.lane.b32.xlu1 %v3968_v7, %s3904_s29 }
  0xab   : > { %2084 = vmatpush1.bf16.msra.mxu0 %v3507_v39  ;;  %1227 = vrot.lane.b32.xlu0 %v3974_v8, %s3904_s29 }
  0xac   : > { %v4227_v40 = vpop.permute.xlu1 %422 }
  0xad   : > { %v4229_v41 = vpop.permute.xlu0 %420  ;;  %v454_v42 = vsel %vm444_vm1, %v415_v37, %v4227_v40 }
  0xae   : > { %v453_v45 = vsel %vm444_vm1, %v413_v38, %v4229_v41  ;;  %v489_v46 = vmul.f32 %v471_v60, %v454_v42  ;;  %578 = vrot.lane.b32.xlu1 %v4072_v13, %s3899_s22 }
  0xaf   : > { %v485_v47 = vmul.f32 %v471_v60, %v453_v45  ;;  %576 = vrot.lane.b32.xlu0 %v4074_v14, %s3899_s22 }
  0xb0   : > { %v4241_v48 = vpop.permute.xlu1 %438 }
  0xb1   : > { %v4243_v51 = vpop.permute.xlu0 %436  ;;  %v3504_v52 = vpack.c.bf16 %v489_v46, %v485_v47  ;;  %v458_v53 = vsel %vm444_vm1, %v4241_v48, %v415_v37 }
  0xb2   : > { %v457_v54 = vsel %vm444_vm1, %v4243_v51, %v413_v38  ;;  %v488_v55 = vmul.f32 %v467_v24, %v458_v53  ;;  %949 = vrot.lane.b32.xlu1 %v3980_v9, %s3905_s30 }
  0xb3   : > { %v484_v57 = vmul.f32 %v467_v24, %v457_v54  ;;  %2085 = vmatprep.subr.bf16.mxu0 %v3504_v52  ;;  %947 = vrot.lane.b32.xlu0 %v3982_v10, %s3905_s30 }
  0xb4   : > { %v275_v59 = vpop.permute.xlu1 %274 }
  0xb5   : > { %v273_v60 = vpop.permute.xlu0 %272  ;;  %v3503_v63 = vpack.c.bf16 %v488_v55, %v484_v57 }
  0xb6   : > { %957 = vrot.lane.b32.xlu1 %v4090_v17, %s3905_s30 }
  0xb7   : > { %2086 = vmatpush1.bf16.msra.mxu0 %v3503_v63  ;;  %955 = vrot.lane.b32.xlu0 %v4092_v18, %s3905_s30 }
  0xb8   : > { %v4267_v15 = vpop.permute.xlu1 %282 }
  0xb9   : > { %v4269_v23 = vpop.permute.xlu0 %280  ;;  %v312_v24 = vsel %vm300_vm2, %v275_v59, %v4267_v15 }
  0xba   : > { %v311_v29 = vsel %vm300_vm2, %v273_v60, %v4269_v23  ;;  %v353_v30 = vmul.f32 %v327_v0, %v312_v24  ;;  %941 = vrot.lane.b32.xlu1 %v3968_v7, %s3905_s30 }
  0xbb   : > { %v349_v31 = vmul.f32 %v327_v0, %v311_v29  ;;  %939 = vrot.lane.b32.xlu0 %v3974_v8, %s3905_s30 }
  0xbc   : > { %v4283_v35 = vpop.permute.xlu1 %298 }
  0xbd   : > { %v4285_v37 = vpop.permute.xlu0 %296  ;;  %v3500_v38 = vpack.c.bf16 %v353_v30, %v349_v31  ;;  %v316_v39 = vsel %vm300_vm2, %v4283_v35, %v275_v59 }
  0xbe   : > { %v315_v42 = vsel %vm300_vm2, %v4285_v37, %v273_v60  ;;  %v352_v45 = vmul.f32 %v323_v32, %v316_v39  ;;  %574 = vrot.lane.b32.xlu1 %v4090_v17, %s3899_s22 }
  0xbf   : > { %v348_v46 = vmul.f32 %v323_v32, %v315_v42  ;;  %2087 = vmatprep.subr.bf16.mxu0 %v3500_v38  ;;  %572 = vrot.lane.b32.xlu0 %v4092_v18, %s3899_s22  ;;  %v4332_v38 = vld [vmem:[%s5864_s2] ss:$8 sm:$0xf] }
  0xc0   : > { %v271_v47 = vpop.permute.xlu1 %270 }
  0xc1   : > { %v269_v52 = vpop.permute.xlu0 %268  ;;  %v3499_v53 = vpack.c.bf16 %v352_v45, %v348_v46 }
  0xc2   : > { %809 = vrot.lane.b32.xlu1 %v3956_v3, %s3907_s11 }
  0xc3   : > { %2088 = vmatpush1.bf16.msra.mxu0 %v3499_v53  ;;  %807 = vrot.lane.b32.xlu0 %v3948_v1, %s3907_s11 }
  0xc4   : > { %v4301_v54 = vpop.permute.xlu1 %278 }
  0xc5   : > { %v4303_v55 = vpop.permute.xlu0 %276  ;;  %v310_v57 = vsel %vm300_vm2, %v271_v47, %v4301_v54 }
  0xc6   : > { %v309_v59 = vsel %vm300_vm2, %v269_v52, %v4303_v55  ;;  %v345_v60 = vmul.f32 %v327_v0, %v310_v57  ;;  %817 = vrot.lane.b32.xlu1 %v4072_v13, %s3907_s11  ;;  %v179_v57 = vrot.slane %v4332_v38, %v4118_v25 }
  0xc7   : > { %v341_v63 = vmul.f32 %v327_v0, %v309_v59  ;;  %815 = vrot.lane.b32.xlu0 %v4074_v14, %s3907_s11 }
  0xc8   : > { %v4315_v1 = vpop.permute.xlu1 %294 }
  0xc9   : > { %v4317_v3 = vpop.permute.xlu0 %292  ;;  %v3496_v24 = vpack.c.bf16 %v345_v60, %v341_v63  ;;  %v314_v29 = vsel %vm300_vm2, %v4315_v1, %v271_v47 }
  0xca   : > { %v313_v30 = vsel %vm300_vm2, %v4317_v3, %v269_v52  ;;  %v344_v0 = vmul.f32 %v323_v32, %v314_v29  ;;  %801 = vrot.lane.b32.xlu1 %v3958_v4, %s3907_s11  ;;  %v183_v4 = vrot.slane %v4332_v38, %v4101_v20 }
  0xcb   : > { %v340_v31 = vmul.f32 %v323_v32, %v313_v30  ;;  %2089 = vmatprep.subr.bf16.mxu0 %v3496_v24  ;;  %799 = vrot.lane.b32.xlu0 %v3950_v2, %s3907_s11 }
  0xcc   : > { %v130_v39 = vpop.permute.xlu1 %129 }
  0xcd   : > { %v128_v42 = vpop.permute.xlu0 %127  ;;  %v3495_v45 = vpack.c.bf16 %v344_v0, %v340_v31 }
  0xce   : > { %434 = vrot.lane.b32.xlu1 %v4072_v13, %s3900_s23 }
  0xcf   : > { %2090 = vmatpush1.bf16.msra.mxu0 %v3495_v45  ;;  %432 = vrot.lane.b32.xlu0 %v4074_v14, %s3900_s23 }
  0xd0   : > { %v4341_v2 = vpop.permute.xlu1 %137 }
  0xd1   : > { %v4343_v32 = vpop.permute.xlu0 %135  ;;  %v169_v46 = vsel %vm157_vm3, %v130_v39, %v4341_v2 }
  0xd2   : > { %v168_v47 = vsel %vm157_vm3, %v128_v42, %v4343_v32  ;;  %v209_v52 = vmul.f32 %v183_v4, %v169_v46  ;;  %805 = vrot.lane.b32.xlu1 %v3980_v9, %s3907_s11 }
  0xd3   : > { %v205_v53 = vmul.f32 %v183_v4, %v168_v47  ;;  %803 = vrot.lane.b32.xlu0 %v3982_v10, %s3907_s11 }
  0xd4   : > { %v4357_v59 = vpop.permute.xlu1 %153 }
  0xd5   : > { %v4359_v60 = vpop.permute.xlu0 %151  ;;  %v3492_v63 = vpack.c.bf16 %v209_v52, %v205_v53  ;;  %v173_v24 = vsel %vm157_vm3, %v4357_v59, %v130_v39  ;;  %v4378_v39 = vld [vmem:[%s5863_s1 + $0x4] ss:$12 sps:$4 sm:$0xff]  }
  0xd6   : > { %v172_v29 = vsel %vm157_vm3, %v4359_v60, %v128_v42  ;;  %v208_v9 = vmul.f32 %v179_v57, %v173_v24  ;;  %813 = vrot.lane.b32.xlu1 %v4090_v17, %s3907_s11  ;;  %2111 = vmatprep.mubr.bf16.mxu0 %v4378_v39 }
  0xd7   : > { %v204_v30 = vmul.f32 %v179_v57, %v172_v29  ;;  %2091 = vmatprep.subr.bf16.mxu0 %v3492_v63  ;;  %811 = vrot.lane.b32.xlu0 %v4092_v18, %s3907_s11 }
  0xd8   : > { %v126_v10 = vpop.permute.xlu1 %125 }
  0xd9   : > { %v124_v0 = vpop.permute.xlu0 %123  ;;  %v3491_v31 = vpack.c.bf16 %v208_v9, %v204_v30  ;;  %v4412_v30 = vld [vmem:[%s5864_s2 + $0x7] ss:$8 sm:$0xf] }
  0xda   : > { %797 = vrot.lane.b32.xlu1 %v3968_v7, %s3907_s11 }
  0xdb   : > { %2092 = vmatpush1.bf16.msra.mxu0 %v3491_v31  ;;  %795 = vrot.lane.b32.xlu0 %v3974_v8, %s3907_s11 }
  0xdc   : > { %v4380_v42 = vpop.permute.xlu1 %133 }
  0xdd   : > { %v4382_v45 = vpop.permute.xlu0 %131  ;;  %v167_v46 = vsel %vm157_vm3, %v126_v10, %v4380_v42 }
  0xde   : > { %v166_v7 = vsel %vm157_vm3, %v124_v0, %v4382_v45  ;;  %v201_v8 = vmul.f32 %v183_v4, %v167_v46  ;;  %430 = vrot.lane.b32.xlu1 %v4090_v17, %s3900_s23 }
  0xdf   : > { %v197_v47 = vmul.f32 %v183_v4, %v166_v7  ;;  %428 = vrot.lane.b32.xlu0 %v4092_v18, %s3900_s23  ;;  %s5690_s23 = scalar_lea.vmem %s5868_s6, %s3486_s19 }
  0xe0   : > { %v4395_v52 = vpop.permute.xlu1 %149 }
  0xe1   : > { %v4397_v53 = vpop.permute.xlu0 %147  ;;  %v3488_v63 = vpack.c.bf16 %v201_v8, %v197_v47  ;;  %v171_v24 = vsel %vm157_vm3, %v4395_v52, %v126_v10 }
  0xe2   : > { %v170_v29 = vsel %vm157_vm3, %v4397_v53, %v124_v0  ;;  %v200_v4 = vmul.f32 %v179_v57, %v171_v24  ;;  %290 = vrot.lane.b32.xlu1 %v4072_v13, %s3901_s24 }
  0xe3   : > { %v196_v9 = vmul.f32 %v179_v57, %v170_v29  ;;  %2093 = vmatprep.subr.bf16.mxu0 %v3488_v63  ;;  %288 = vrot.lane.b32.xlu0 %v4074_v14, %s3901_s24  ;;  %v1142_v57 = vrot.slane %v4412_v30, %v4101_v20  ;;  %v1138_v29 = vrot.slane %v4412_v30, %v4118_v25 }
  0xe4   : > { %v1098_v31 = vpop.permute.xlu1 %1097 }
  0xe5   : > { %v1096_v10 = vpop.permute.xlu0 %1095  ;;  %v3487_v46 = vpack.c.bf16 %v200_v4, %v196_v9 }
  0xe6   : > { %286 = vrot.lane.b32.xlu1 %v4090_v17, %s3901_s24 }
  0xe7   : > { %2094 = vmatpush1.bf16.msra.mxu0 %v3487_v46  ;;  %284 = vrot.lane.b32.xlu0 %v4092_v18, %s3901_s24 }
  0xe8   : > { %v4421_v0 = vpop.permute.xlu1 %1105 }
  0xe9   : > { %v4423_v7 = vpop.permute.xlu0 %1103  ;;  %v1123_v8 = vsel %vm1115_vm4, %v1098_v31, %v4421_v0 }
  0xea   : > { %5921 = vst [vmem:[#allocation5_spill] sm:$0xff] %v4423_v7  ;;  %v1122_v47 = vsel %vm1115_vm4, %v1096_v10, %v4423_v7  ;;  %v1168_v63 = vmul.f32 %v1142_v57, %v1123_v8  ;;  %145 = vrot.lane.b32.xlu1 %v4072_v13, %s3902_s25 }
  0xeb   : > { %v1164_v24 = vmul.f32 %v1142_v57, %v1122_v47  ;;  %143 = vrot.lane.b32.xlu0 %v4074_v14, %s3902_s25 }
  0xec   : > { %v4437_v4 = vpop.permute.xlu1 %1089 }
  0xed   : > { %5922 = vst [vmem:[#allocation6_spill] sm:$0xff] %v4437_v4  ;;  %v4439_v9 = vpop.permute.xlu0 %1087  ;;  %v3548_v46 = vpack.c.bf16 %v1168_v63, %v1164_v24  ;;  %v1127_v36 = vsel %vm1115_vm4, %v4437_v4, %v1098_v31 }
  0xee   : > { %5923 = vst [vmem:[#allocation7_spill] sm:$0xff] %v4439_v9  ;;  %v1126_v8 = vsel %vm1115_vm4, %v4439_v9, %v1096_v10  ;;  %v1167_v13 = vmul.f32 %v1138_v29, %v1127_v36  ;;  %141 = vrot.lane.b32.xlu1 %v4090_v17, %s3902_s25 }
  0xef   : > { %v1163_v47 = vmul.f32 %v1138_v29, %v1126_v8  ;;  %2095 = vmatprep.subr.bf16.mxu0 %v3548_v46  ;;  %139 = vrot.lane.b32.xlu0 %v4092_v18, %s3902_s25  ;;  %v4472_v46 = vld [vmem:[%s5864_s2 + $0x20] ss:$8 sm:$0xf] }
  0xf0   : > { %v1094_v14 = vpop.permute.xlu1 %1093  ;;  %5926 = vst [vmem:[#allocation10_spill] sm:$0xff] %v4472_v46 }
  0xf1   : > { %v1092_v7 = vpop.permute.xlu0 %1091  ;;  %v3547_v63 = vpack.c.bf16 %v1167_v13, %v1163_v47 }
  0xf2   : > { %1113 = vrot.lane.b32.xlu1 %v3964_v5, %s3903_s26 }
  0xf3   : > { %2096 = vmatpush2.bf16.msra.mxu0 %v3547_v63  ;;  %1111 = vrot.lane.b32.xlu0 %v3966_v6, %s3903_s26 }
  0xf4   : > { %v4455_v31 = vpop.permute.xlu1 %1101 }
  0xf5   : > { %5924 = vst [vmem:[#allocation8_spill] sm:$0xff] %v4455_v31  ;;  %v4457_v36 = vpop.permute.xlu0 %1099  ;;  %v1121_v17 = vsel %vm1115_vm4, %v1094_v14, %v4455_v31 }
  0xf6   : > { %5925 = vst [vmem:[#allocation9_spill] sm:$0xff] %v4457_v36  ;;  %v1120_v18 = vsel %vm1115_vm4, %v1092_v7, %v4457_v36  ;;  %v1160_v10 = vmul.f32 %v1142_v57, %v1121_v17  ;;  %1109 = vrot.lane.b32.xlu1 %v3988_v11, %s3903_s26 }
  0xf7   : > { %v1156_v24 = vmul.f32 %v1142_v57, %v1120_v18  ;;  %1107 = vrot.lane.b32.xlu0 %v3990_v12, %s3903_s26  ;;  %v1286_v57 = vrot.slane %v4472_v46, %v4101_v20 }
  0xf8   : > { %v1242_v8 = vpop.permute.xlu1 %1241 }
  0xf9   : > { %v1240_v13 = vpop.permute.xlu0 %1239  ;;  %v3544_v47 = vpack.c.bf16 %v1160_v10, %v1156_v24 }
  0xfa   : > { %969 = vrot.lane.b32.xlu1 %v3964_v5, %s3905_s30 }
  0xfb   : > { %2097 = vmatprep.subr.bf16.mxu0 %v3544_v47  ;;  %967 = vrot.lane.b32.xlu0 %v3966_v6, %s3905_s30 }
  0xfc   : > { %v4481_v63 = vpop.permute.xlu1 %1249 }
  0xfd   : > { %5927 = vst [vmem:[#allocation11_spill] sm:$0xff] %v4481_v63  ;;  %v4483_v17 = vpop.permute.xlu0 %1247  ;;  %v1267_v18 = vsel %vm1259_vm5, %v1242_v8, %v4481_v63 }
  0xfe   : > { %5928 = vst [vmem:[#allocation12_spill] sm:$0xff] %v4483_v17  ;;  %v1266_v10 = vsel %vm1259_vm5, %v1240_v13, %v4483_v17  ;;  %965 = vrot.lane.b32.xlu1 %v3988_v11, %s3905_s30  ;;  %v1312_v47 = vmul.f32 %v1286_v57, %v1267_v18  ;;  %v1282_v18 = vrot.slane %v4472_v46, %v4118_v25 }
  0xff   : > { %v1308_v24 = vmul.f32 %v1286_v57, %v1266_v10  ;;  %963 = vrot.lane.b32.xlu0 %v3990_v12, %s3905_s30  ;;  %s5133_s30 = scalar_lea.vmem %s5862_s0, %s3485_s27 }
 0x100   : > { %v4495_v36 = vpop.permute.xlu1 %1085 }
 0x101   : > { %v3556_v31 = vpack.c.bf16 %v1312_v47, %v1308_v24  ;;  %v1125_v9 = vsel %vm1115_vm4, %v4495_v36, %v1094_v14  ;;  %v4500_v63 = vpop.permute.xlu0 %1083 }
 0x102   : > { %5929 = vst [vmem:[#allocation13_spill] sm:$0xff] %v4500_v63  ;;  %v1159_v4 = vmul.f32 %v1138_v29, %v1125_v9  ;;  %v1124_v17 = vsel %vm1115_vm4, %v4500_v63, %v1092_v7  ;;  %825 = vrot.lane.b32.xlu1 %v3964_v5, %s3907_s11  ;;  %v4581_v63 = vsub.s32 3, %v4088_v16 }
 0x103   : > { %2204 = vmatprep.subr.bf16.mxu1 %v3556_v31  ;;  %v1155_v10 = vmul.f32 %v1138_v29, %v1124_v17  ;;  %823 = vrot.lane.b32.xlu0 %v3966_v6, %s3907_s11 }
 0x104   : > { %v4511_v24 = vpop.permute.xlu1 %1233 }
 0x105   : > { %5930 = vst [vmem:[#allocation14_spill] sm:$0xff] %v4511_v24  ;;  %v1271_v9 = vsel %vm1259_vm5, %v4511_v24, %v1242_v8  ;;  %v4516_v14 = vpop.permute.xlu0 %1231  ;;  %v3543_v7 = vpack.c.bf16 %v1159_v4, %v1155_v10  ;;  %v4528_v8 = vld [vmem:[%s5864_s2 + $0x6] ss:$8 sm:$0xf] }
 0x106   : > { %5931 = vst [vmem:[#allocation15_spill] sm:$0xff] %v4516_v14  ;;  %v1311_v47 = vmul.f32 %v1282_v18, %v1271_v9  ;;  %v1270_v31 = vsel %vm1259_vm5, %v4516_v14, %v1240_v13  ;;  %821 = vrot.lane.b32.xlu1 %v3988_v11, %s3907_s11  ;;  %v4535_v13 = vrot.slane %v4528_v8, %v4101_v20 }
 0x107   : > { %v1307_v29 = vmul.f32 %v1282_v18, %v1270_v31  ;;  %819 = vrot.lane.b32.xlu0 %v3990_v12, %s3907_s11  ;;  %2098 = vmatpush2.bf16.msra.mxu0 %v3543_v7 }
 0x108   : > { %v954_v17 = vpop.permute.xlu1 %953 }
 0x109   : > { %v952_v4 = vpop.permute.xlu0 %951  ;;  %v3555_v10 = vpack.c.bf16 %v1311_v47, %v1307_v29 }
 0x10a   : > { %1257 = vrot.lane.b32.xlu1 %v3964_v5, %s3904_s29 }
 0x10b   : > { %1255 = vrot.lane.b32.xlu0 %v3966_v6, %s3904_s29  ;;  %2205 = vmatpush1.bf16.msra.mxu1 %v3555_v10 }
 0x10c   : > { %v4539_v9 = vpop.permute.xlu1 %961 }
 0x10d   : > { %5932 = vst [vmem:[#allocation16_spill] sm:$0xff] %v4539_v9  ;;  %v979_v7 = vsel %vm971_vm6, %v954_v17, %v4539_v9  ;;  %v4544_v47 = vpop.permute.xlu0 %959 }
 0x10e   : > { %5933 = vst [vmem:[#allocation17_spill] sm:$0xff] %v4544_v47  ;;  %v1024_v5 = vmul.f32 %v4535_v13, %v979_v7  ;;  %v978_v31 = vsel %vm971_vm6, %v952_v4, %v4544_v47  ;;  %1253 = vrot.lane.b32.xlu1 %v3988_v11, %s3904_s29 }
 0x10f   : > { %v1020_v6 = vmul.f32 %v4535_v13, %v978_v31  ;;  %1251 = vrot.lane.b32.xlu0 %v3990_v12, %s3904_s29  ;;  %v994_v12 = vrot.slane %v4528_v8, %v4118_v25 }
 0x110   : > { %v1238_v29 = vpop.permute.xlu1 %1237 }
 0x111   : > { %v1236_v10 = vpop.permute.xlu0 %1235  ;;  %v3540_v14 = vpack.c.bf16 %v1024_v5, %v1020_v6 }
 0x113   : > { %2099 = vmatprep.subr.bf16.mxu0 %v3540_v14 }
 0x114   : > { %v4555_v24 = vpop.permute.xlu1 %1245 }
 0x115   : > { %5934 = vst [vmem:[#allocation18_spill] sm:$0xff] %v4555_v24  ;;  %v1265_v7 = vsel %vm1259_vm5, %v1238_v29, %v4555_v24  ;;  %v4560_v46 = vpop.permute.xlu0 %1243 }
 0x116   : > { %5935 = vst [vmem:[#allocation19_spill] sm:$0xff] %v4560_v46  ;;  %v1304_v47 = vmul.f32 %v1286_v57, %v1265_v7  ;;  %v1264_v11 = vsel %vm1259_vm5, %v1236_v10, %v4560_v46  ;;  %v4578_v46 = vsub.s32 2, %v4088_v16 }
 0x117   : > { %v1300_v31 = vmul.f32 %v1286_v57, %v1264_v11 }
 0x118   : > { %v4567_v9 = vpop.permute.xlu1 %945  ;;  %v619_v16 = vrot.slane %v4106_v21, %v4578_v46 }
 0x119   : > { %v983_v14 = vsel %vm971_vm6, %v4567_v9, %v954_v17  ;;  %v4572_v5 = vpop.permute.xlu0 %943  ;;  %v3552_v6 = vpack.c.bf16 %v1304_v47, %v1300_v31 }
 0x11a   : > { %5936 = vst [vmem:[#allocation20_spill] sm:$0xff] %v4572_v5  ;;  %v1023_v24 = vmul.f32 %v994_v12, %v983_v14  ;;  %v982_v7 = vsel %vm971_vm6, %v4572_v5, %v952_v4 }
 0x11b   : > { %v1019_v57 = vmul.f32 %v994_v12, %v982_v7  ;;  %2206 = vmatprep.subr.bf16.mxu1 %v3552_v6  ;;  %v623_v6 = vrot.slane %v4106_v21, %v4581_v63 }
 0x11c   : > { %v4583_v11 = vpop.permute.xlu1 %1229 }
 0x11d   : > { %5937 = vst [vmem:[#allocation21_spill] sm:$0xff] %v4583_v11  ;;  %v1269_v17 = vsel %vm1259_vm5, %v4583_v11, %v1238_v29  ;;  %v4588_v47 = vpop.permute.xlu0 %1227  ;;  %v3539_v31 = vpack.c.bf16 %v1023_v24, %v1019_v57 }
 0x11e   : > { %5938 = vst [vmem:[#allocation22_spill] sm:$0xff] %v4588_v47  ;;  %v1303_v14 = vmul.f32 %v1282_v18, %v1269_v17  ;;  %v1268_v4 = vsel %vm1259_vm5, %v4588_v47, %v1236_v10 }
 0x11f   : > { %v1299_v7 = vmul.f32 %v1282_v18, %v1268_v4  ;;  %2100 = vmatpush2.bf16.msra.mxu0 %v3539_v31 }
 0x120   : > { %v579_v5 = vpop.permute.xlu1 %578 }
 0x121   : > { %v592_v29 = vsel %vm588_vm0, %v579_v5, %v4134_v33  ;;  %v596_v24 = vsel %vm588_vm0, %v4123_v27, %v579_v5  ;;  %v577_v57 = vpop.permute.xlu0 %576  ;;  %v3551_v17 = vpack.c.bf16 %v1303_v14, %v1299_v7  ;;  %v4612_v33 = vld [vmem:[%s5863_s1 + $0x8] ss:$12 sps:$4 sm:$0xff]  }
 0x122   : > { %v642_v10 = vmul.f32 %v619_v16, %v596_v24  ;;  %v643_v47 = vmul.f32 %v623_v6, %v592_v29  ;;  %v591_v11 = vsel %vm588_vm0, %v577_v57, %v4136_v34  ;;  %v595_v21 = vsel %vm588_vm0, %v4108_v22, %v577_v57  ;;  %5939 = vst [vmem:[#allocation23_spill] sm:$0xff] %v4612_v33  ;;  %v4631_v24 = vld [vmem:[%s5863_s1 + $0x20] ss:$12 sps:$4 sm:$0xff]  }
 0x123   : > { %v638_v18 = vmul.f32 %v619_v16, %v595_v21  ;;  %v639_v31 = vmul.f32 %v623_v6, %v591_v11  ;;  %2207 = vmatpush1.bf16.msra.mxu1 %v3551_v17  ;;  %v5940_v34 = vmov 0   ;;  %5941 = vst [vmem:[#allocation24_spill] sm:$0xff] %v4631_v24 }
 0x124   : > { %v950_v27 = vpop.permute.xlu1 %949 }
 0x125   : > { %v3517_v5 = vpack.c.bf16 %v642_v10, %v638_v18  ;;  %v948_v14 = vpop.permute.xlu0 %947  ;;  %v3518_v4 = vpack.c.bf16 %v643_v47, %v639_v31 }
 0x126   : > { %3347 = vmatmul.mubr.msk.bf16.vlgmr.msra.gmra.mxu1 %vm2054_vm7, %v4612_v33 }
 0x127   : > { %2305 = vmatprep.subr.bf16.mxu1 %v3518_v4  ;;  %2234 = vmatprep.mubr.bf16.mxu1 %v5940_v34 }
 0x128   : > { %2306 = vmatpush1.bf16.msra.mxu1 %v3517_v5  ;;  %v4617_v22 = vpop.permute.xlu1 %957 }
 0x129   : > { %v977_v7 = vsel %vm971_vm6, %v950_v27, %v4617_v22  ;;  %v4622_v11 = vpop.permute.xlu0 %955 }
 0x12a   : > { %v1016_v29 = vmul.f32 %v4535_v13, %v977_v7  ;;  %v976_v47 = vsel %vm971_vm6, %v948_v14, %v4622_v11 }
 0x12b   : > { %v1012_v57 = vmul.f32 %v4535_v13, %v976_v47 }
 0x12c   : > { %v4634_v17 = vpop.permute.xlu1 %941 }
 0x12d   : > { %v981_v10 = vsel %vm971_vm6, %v4634_v17, %v950_v27  ;;  %v4639_v21 = vpop.permute.xlu0 %939  ;;  %v3536_v18 = vpack.c.bf16 %v1016_v29, %v1012_v57 }
 0x12e   : > { %v1015_v31 = vmul.f32 %v994_v12, %v981_v10  ;;  %v980_v5 = vsel %vm971_vm6, %v4639_v21, %v948_v14  ;;  %3348 = vmatmul.mubr.msk.bf16.gmra.mxu1 %vm2054_vm7, %v4631_v24 }
 0x12f   : > { %v1011_v4 = vmul.f32 %v994_v12, %v980_v5  ;;  %2101 = vmatprep.subr.bf16.mxu0 %v3536_v18  ;;  %2244 = vmatprep.mubr.bf16.mxu1 %v5940_v34 }
 0x130   : > { %v575_v13 = vpop.permute.xlu1 %574 }
 0x131   : > { %v590_v27 = vsel %vm588_vm0, %v575_v13, %v4166_v49  ;;  %v594_v7 = vsel %vm588_vm0, %v4152_v43, %v575_v13  ;;  %v573_v29 = vpop.permute.xlu0 %572  ;;  %v3535_v47 = vpack.c.bf16 %v1015_v31, %v1011_v4  ;;  %v4662_v49 = vld [vmem:[%s5863_s1 + $0x38] ss:$12 sps:$4 sm:$0xff]  }
 0x132   : > { %v634_v57 = vmul.f32 %v619_v16, %v594_v7  ;;  %v635_v14 = vmul.f32 %v623_v6, %v590_v27  ;;  %v589_v12 = vsel %vm588_vm0, %v573_v29, %v4168_v50  ;;  %v593_v10 = vsel %vm588_vm0, %v4154_v44, %v573_v29  ;;  %5942 = vst [vmem:[#allocation25_spill] sm:$0xff] %v4662_v49  ;;  %v4667_v43 = vld [vmem:[%s5864_s2 + $0x5] ss:$8 sm:$0xf] }
 0x133   : > { %v630_v18 = vmul.f32 %v619_v16, %v593_v10  ;;  %v631_v5 = vmul.f32 %v623_v6, %v589_v12  ;;  %2102 = vmatpush2.bf16.msra.mxu0 %v3535_v47  ;;  %v854_v44 = vrot.slane %v4667_v43, %v4101_v20  ;;  %v850_v47 = vrot.slane %v4667_v43, %v4118_v25 }
 0x134   : > { %v810_v31 = vpop.permute.xlu1 %809 }
 0x135   : > { %v3513_v4 = vpack.c.bf16 %v634_v57, %v630_v18  ;;  %v808_v50 = vpop.permute.xlu0 %807  ;;  %v3514_v13 = vpack.c.bf16 %v635_v14, %v631_v5  ;;  %v4690_v57 = vld [vmem:[%s5863_s1 + $0x50] ss:$12 sps:$4 sm:$0xff]  }
 0x136   : > { %3349 = vmatmul.mubr.msk.bf16.gmra.mxu1 %vm2054_vm7, %v4662_v49  ;;  %5944 = vst [vmem:[#allocation27_spill] sm:$0xff] %v4690_v57 }
 0x137   : > { %2307 = vmatprep.subr.bf16.mxu1 %v3514_v13  ;;  %2254 = vmatprep.mubr.bf16.mxu1 %v5940_v34 }
 0x138   : > { %2308 = vmatpush1.bf16.msra.mxu1 %v3513_v4  ;;  %v4675_v16 = vpop.permute.xlu1 %817 }
 0x139   : > { %v835_v6 = vsel %vm827_vm8, %v810_v31, %v4675_v16  ;;  %v4680_v27 = vpop.permute.xlu0 %815 }
 0x13a   : > { %5943 = vst [vmem:[#allocation26_spill] sm:$0xff] %v4680_v27  ;;  %v880_v7 = vmul.f32 %v854_v44, %v835_v6  ;;  %v834_v29 = vsel %vm827_vm8, %v808_v50, %v4680_v27  ;;  %v4704_v6 = vrot.slane %v4183_v56, %v4578_v46 }
 0x13b   : > { %v876_v14 = vmul.f32 %v854_v44, %v834_v29  ;;  %v4708_v29 = vrot.slane %v4183_v56, %v4581_v63 }
 0x13c   : > { %v4692_v12 = vpop.permute.xlu1 %801 }
 0x13d   : > { %5945 = vst [vmem:[#allocation28_spill] sm:$0xff] %v4692_v12  ;;  %v839_v10 = vsel %vm827_vm8, %v4692_v12, %v810_v31  ;;  %v4697_v18 = vpop.permute.xlu0 %799  ;;  %v3532_v5 = vpack.c.bf16 %v880_v7, %v876_v14 }
 0x13e   : > { %5946 = vst [vmem:[#allocation29_spill] sm:$0xff] %v4697_v18  ;;  %v879_v4 = vmul.f32 %v850_v47, %v839_v10  ;;  %v838_v13 = vsel %vm827_vm8, %v4697_v18, %v808_v50  ;;  %3350 = vmatmul.mubr.msk.bf16.gmra.mxu1 %vm2054_vm7, %v4690_v57  ;;  %v3872_v18 = vld [vmem:[#allocation2 + $0x60] sm:$0xff] }
 0x13f   : > { %v875_v31 = vmul.f32 %v850_v47, %v838_v13  ;;  %2103 = vmatprep.subr.bf16.mxu0 %v3532_v5  ;;  %2264 = vmatprep.mubr.bf16.mxu1 %v5940_v34 }
 0x140   : > { %v435_v7 = vpop.permute.xlu1 %434 }
 0x141   : > { %v448_v50 = vsel %vm444_vm1, %v435_v7, %v4208_v26  ;;  %v452_v14 = vsel %vm444_vm1, %v4192_v61, %v435_v7  ;;  %v433_v10 = vpop.permute.xlu0 %432  ;;  %v3531_v49 = vpack.c.bf16 %v879_v4, %v875_v31  ;;  %v4730_v26 = vld [vmem:[%s5863_s1 + $0x68] ss:$12 sps:$4 sm:$0xff]  }
 0x142   : > { %v498_v56 = vmul.f32 %v4704_v6, %v452_v14  ;;  %v499_v24 = vmul.f32 %v4708_v29, %v448_v50  ;;  %v447_v5 = vsel %vm444_vm1, %v433_v10, %v4210_v28  ;;  %v451_v13 = vsel %vm444_vm1, %v4194_v62, %v433_v10  ;;  %5947 = vst [vmem:[#allocation30_spill] sm:$0xff] %v4730_v26  ;;  %v4737_v7 = vld [vmem:[%s5864_s2 + $0x4] ss:$8 sm:$0xf] }
 0x143   : > { %v494_v61 = vmul.f32 %v4704_v6, %v451_v13  ;;  %v495_v4 = vmul.f32 %v4708_v29, %v447_v5  ;;  %2104 = vmatpush2.bf16.msra.mxu0 %v3531_v49  ;;  %v710_v62 = vrot.slane %v4737_v7, %v4101_v20  ;;  %v4759_v20 = vld [vmem:[%s5863_s1 + $0x80] ss:$12 sps:$4 sm:$0xff]  }
 0x144   : > { %v806_v31 = vpop.permute.xlu1 %805  ;;  %5950 = vst [vmem:[#allocation33_spill] sm:$0xff] %v4759_v20 }
 0x145   : > { %v3509_v28 = vpack.c.bf16 %v498_v56, %v494_v61  ;;  %v804_v50 = vpop.permute.xlu0 %803  ;;  %v3510_v14 = vpack.c.bf16 %v499_v24, %v495_v4  ;;  %v706_v24 = vrot.slane %v4737_v7, %v4118_v25  ;;  %v3869_v4 = vld [vmem:[#allocation2 + $0x20] sm:$0xff] }
 0x146   : > { %3351 = vmatmul.mubr.msk.bf16.gmra.mxu1 %vm2054_vm7, %v4730_v26 }
 0x147   : > { %2309 = vmatprep.subr.bf16.mxu1 %v3510_v14  ;;  %2274 = vmatprep.mubr.bf16.mxu1 %v5940_v34  ;;  %v3870_v14 = vld [vmem:[#allocation2 + $0x70] sm:$0xff]  ;;  %v735_v27 = vmul.f32 %v3872_v18, %v706_v24  ;;  %v335_v18 = vrot.slane %v4258_v58, %v4581_v63 }
 0x148   : > { %2310 = vmatpush1.bf16.msra.mxu1 %v3509_v28  ;;  %v4744_v49 = vpop.permute.xlu1 %813  ;;  %v732_v28 = vmul.f32 %v3869_v4, %v710_v62  ;;  %v736_v26 = vmul.f32 %v3870_v14, %v710_v62  ;;  %v3874_v14 = vld [vmem:[#allocation2 + $0x68] sm:$0xff] }
 0x149   : > { %5948 = vst [vmem:[#allocation31_spill] sm:$0xff] %v4744_v49  ;;  %v833_v10 = vsel %vm827_vm8, %v806_v31, %v4744_v49  ;;  %v4749_v5 = vpop.permute.xlu0 %811 }
 0x14a   : > { %5949 = vst [vmem:[#allocation32_spill] sm:$0xff] %v4749_v5  ;;  %v872_v56 = vmul.f32 %v854_v44, %v833_v10  ;;  %v832_v13 = vsel %vm827_vm8, %v804_v50, %v4749_v5  ;;  %v3871_v5 = vld [vmem:[#allocation2 + $0x40] sm:$0xff]  ;;  %v3524_v4 = vpack.c.bf16 %v736_v26, %v732_v28 }
 0x14b   : > { %v868_v61 = vmul.f32 %v854_v44, %v832_v13  ;;  %v731_v49 = vmul.f32 %v3871_v5, %v706_v24  ;;  %v3873_v5 = vld [vmem:[#allocation2] sm:$0xff] }
 0x14c   : > { %v4761_v57 = vpop.permute.xlu1 %797 }
 0x14d   : > { %v837_v25 = vsel %vm827_vm8, %v4761_v57, %v806_v31  ;;  %v4766_v10 = vpop.permute.xlu0 %795  ;;  %v3528_v33 = vpack.c.bf16 %v872_v56, %v868_v61  ;;  %v331_v56 = vrot.slane %v4258_v58, %v4578_v46  ;;  %v724_v61 = vmul.f32 %v3873_v5, %v710_v62 }
 0x14e   : > { %v871_v12 = vmul.f32 %v850_v47, %v837_v25  ;;  %v836_v44 = vsel %vm827_vm8, %v4766_v10, %v804_v50  ;;  %3352 = vmatmul.mubr.msk.bf16.gmra.mxu1 %vm2054_vm7, %v4759_v20  ;;  %v728_v25 = vmul.f32 %v3874_v14, %v710_v62  ;;  %v3523_v28 = vpack.c.bf16 %v735_v27, %v731_v49 }
 0x14f   : > { %v867_v13 = vmul.f32 %v850_v47, %v836_v44  ;;  %2105 = vmatprep.subr.bf16.mxu0 %v3528_v33  ;;  %2284 = vmatprep.mubr.bf16.mxu1 %v5940_v34 }
 0x150   : > { %v431_v31 = vpop.permute.xlu1 %430 }
 0x151   : > { %v446_v50 = vsel %vm444_vm1, %v431_v31, %v4241_v48  ;;  %v450_v33 = vsel %vm444_vm1, %v4227_v40, %v431_v31  ;;  %v429_v47 = vpop.permute.xlu0 %428  ;;  %v3527_v26 = vpack.c.bf16 %v871_v12, %v867_v13  ;;  %v4795_v48 = vld [vmem:[%s5863_s1 + $0x98] ss:$12 sps:$4 sm:$0xff]   ;;  %v3875_v12 = vld [vmem:[#allocation2 + $0x30] sm:$0xff] }
 0x152   : > { %v490_v44 = vmul.f32 %v4704_v6, %v450_v33  ;;  %v491_v20 = vmul.f32 %v4708_v29, %v446_v50  ;;  %v445_v58 = vsel %vm444_vm1, %v429_v47, %v4243_v51  ;;  %v449_v62 = vsel %vm444_vm1, %v4229_v41, %v429_v47  ;;  %v3876_v13 = vld [vmem:[#allocation2 + $0x50] sm:$0xff] }
 0x153   : > { %v486_v40 = vmul.f32 %v4704_v6, %v449_v62  ;;  %v487_v27 = vmul.f32 %v4708_v29, %v445_v58  ;;  %2106 = vmatpush2.bf16.msra.mxu0 %v3527_v26  ;;  %v723_v49 = vmul.f32 %v3875_v12, %v706_v24  ;;  %v727_v31 = vmul.f32 %v3876_v13, %v706_v24 }
 0x154   : > { %v291_v5 = vpop.permute.xlu1 %290  ;;  %2107 = vmatprep.subr.bf16.mxu0 %v3524_v4  ;;  %v3520_v51 = vpack.c.bf16 %v728_v25, %v724_v61  ;;  %v187_v25 = vrot.slane %v4332_v38, %v4578_v46 }
 0x155   : > { %v3505_v14 = vpack.c.bf16 %v490_v44, %v486_v40  ;;  %v304_v41 = vsel %vm300_vm2, %v291_v5, %v4283_v35  ;;  %v308_v50 = vsel %vm300_vm2, %v4267_v15, %v291_v5  ;;  %v289_v6 = vpop.permute.xlu0 %288  ;;  %v3506_v33 = vpack.c.bf16 %v491_v20, %v487_v27  ;;  %v4849_v5 = vld [vmem:[%s5863_s1 + $0xb0] ss:$12 sps:$4 sm:$0xff]  }
 0x156   : > { %v354_v29 = vmul.f32 %v331_v56, %v308_v50  ;;  %v355_v47 = vmul.f32 %v335_v18, %v304_v41  ;;  %v303_v24 = vsel %vm300_vm2, %v289_v6, %v4285_v37  ;;  %v307_v4 = vsel %vm300_vm2, %v4269_v23, %v289_v6  ;;  %3353 = vmatmul.mubr.msk.bf16.gmra.mxu1 %vm2054_vm7, %v4795_v48 }
 0x157   : > { %v350_v35 = vmul.f32 %v331_v56, %v307_v4  ;;  %v351_v61 = vmul.f32 %v335_v18, %v303_v24  ;;  %2108 = vmatpush2.bf16.msra.mxu0 %v3523_v28  ;;  %2311 = vmatprep.subr.bf16.mxu1 %v3506_v33  ;;  %v3519_v15 = vpack.c.bf16 %v727_v31, %v723_v49  ;;  %v4838_v49 = vld [vmem:[%s5863_s1 + $0x1c] ss:$12 sps:$4 sm:$0xff]  }
 0x158   : > { %2312 = vmatpush1.bf16.msra.mxu1 %v3505_v14  ;;  %v287_v20 = vpop.permute.xlu1 %286  ;;  %2109 = vmatprep.subr.bf16.mxu0 %v3520_v51  ;;  %v191_v37 = vrot.slane %v4332_v38, %v4581_v63  ;;  %v1146_v33 = vrot.slane %v4412_v30, %v4578_v46 }
 0x159   : > { %v3501_v26 = vpack.c.bf16 %v354_v29, %v350_v35  ;;  %v302_v23 = vsel %vm300_vm2, %v287_v20, %v4315_v1  ;;  %v306_v28 = vsel %vm300_vm2, %v4301_v54, %v287_v20  ;;  %v285_v44 = vpop.permute.xlu0 %284  ;;  %v3502_v58 = vpack.c.bf16 %v355_v47, %v351_v61  ;;  %2294 = vmatprep.mubr.bf16.mxu1 %v5940_v34  ;;  %v4833_v1 = vld [vmem:[%s5863_s1] ss:$12 sps:$4 sm:$0xff]  }
 0x15a   : > { %v346_v62 = vmul.f32 %v331_v56, %v306_v28  ;;  %v347_v40 = vmul.f32 %v335_v18, %v302_v23  ;;  %v301_v27 = vsel %vm300_vm2, %v285_v44, %v4317_v3  ;;  %v305_v38 = vsel %vm300_vm2, %v4303_v55, %v285_v44  ;;  %v5951_v28 = vld [vmem:[#allocation6_spill] sm:$0xff] }
 0x15b   : > { %v342_v54 = vmul.f32 %v331_v56, %v305_v38  ;;  %v343_v12 = vmul.f32 %v335_v18, %v301_v27  ;;  %2110 = vmatpush2.bf16.msra.mxu0 %v3519_v15  ;;  %2313 = vmatprep.subr.bf16.mxu1 %v3502_v58  ;;  %v1150_v29 = vrot.slane %v4412_v30, %v4581_v63  ;;  %v5953_v27 = vld [vmem:[#allocation7_spill] sm:$0xff] }
 0x15c   : > { %2314 = vmatpush1.bf16.msra.mxu1 %v3501_v26  ;;  %v146_v3 = vpop.permute.xlu1 %145  ;;  %v4886_v26 = vld [vmem:[%s5863_s1 + $0x34] ss:$12 sps:$4 sm:$0xff]  }
 0x15d   : > { %v3497_v13 = vpack.c.bf16 %v346_v62, %v342_v54  ;;  %v161_v55 = vsel %vm157_vm3, %v146_v3, %v4357_v59  ;;  %v165_v31 = vsel %vm157_vm3, %v4341_v2, %v146_v3  ;;  %v144_v56 = vpop.permute.xlu0 %143  ;;  %v3498_v18 = vpack.c.bf16 %v347_v40, %v343_v12  ;;  %v5952_v62 = vld [vmem:[#allocation5_spill] sm:$0xff] }
 0x15e   : > { %v210_v51 = vmul.f32 %v187_v25, %v165_v31  ;;  %v211_v14 = vmul.f32 %v191_v37, %v161_v55  ;;  %v160_v41 = vsel %vm157_vm3, %v144_v56, %v4359_v60  ;;  %v164_v59 = vsel %vm157_vm3, %v4343_v32, %v144_v56  ;;  %2112 = vmatmul.mubr.bf16.vlgmr.msra.gmra.mxu0 %v4833_v1  ;;  %v5954_v31 = vld [vmem:[#allocation8_spill] sm:$0xff] }
 0x15f   : > { %v206_v2 = vmul.f32 %v187_v25, %v164_v59  ;;  %v207_v50 = vmul.f32 %v191_v37, %v160_v41  ;;  %2315 = vmatprep.subr.bf16.mxu1 %v3498_v18  ;;  %2121 = vmatprep.mubr.bf16.mxu0 %v4838_v49  ;;  %v1002_v3 = vrot.slane %v4528_v8, %v4578_v46 }
 0x160   : > { %2316 = vmatpush1.bf16.msra.mxu1 %v3497_v13  ;;  %v142_v6 = vpop.permute.xlu1 %141  ;;  %v1006_v13 = vrot.slane %v4528_v8, %v4581_v63 }
 0x161   : > { %v3493_v60 = vpack.c.bf16 %v210_v51, %v206_v2  ;;  %v159_v32 = vsel %vm157_vm3, %v142_v6, %v4395_v52  ;;  %v163_v47 = vsel %vm157_vm3, %v4380_v42, %v142_v6  ;;  %v140_v24 = vpop.permute.xlu0 %139  ;;  %v3494_v4 = vpack.c.bf16 %v211_v14, %v207_v50  ;;  %3354 = vmatmul.mubr.msk.bf16.gmra.mxu1 %vm2054_vm7, %v4849_v5  ;;  %v4880_v52 = vld [vmem:[%s5863_s1 + $0x18] ss:$12 sps:$4 sm:$0xff]  }
 0x162   : > { %v202_v35 = vmul.f32 %v187_v25, %v163_v47  ;;  %v203_v61 = vmul.f32 %v191_v37, %v159_v32  ;;  %v158_v30 = vsel %vm157_vm3, %v140_v24, %v4397_v53  ;;  %v162_v15 = vsel %vm157_vm3, %v4382_v45, %v140_v24  ;;  %2337 = vmatprep.mubr.bf16.mxu1 %v4378_v39  ;;  %v5955_v2 = vld [vmem:[#allocation9_spill] sm:$0xff] }
 0x163   : > { %v198_v42 = vmul.f32 %v187_v25, %v162_v15  ;;  %v199_v20 = vmul.f32 %v191_v37, %v158_v30  ;;  %2317 = vmatprep.subr.bf16.mxu1 %v3494_v4  ;;  %v5956_v6 = vld [vmem:[#allocation13_spill] sm:$0xff] }
 0x164   : > { %2318 = vmatpush1.bf16.msra.mxu1 %v3493_v60  ;;  %v1114_v53 = vpop.permute.xlu1 %1113  ;;  %v4921_v60 = vld [vmem:[%s5863_s1 + $0x30] ss:$12 sps:$4 sm:$0xff]  }
 0x165   : > { %v3489_v23 = vpack.c.bf16 %v202_v35, %v198_v42  ;;  %v1119_v45 = vsel %vm1115_vm4, %v4421_v0, %v1114_v53  ;;  %v1131_v44 = vsel %vm1115_vm4, %v1114_v53, %v5951_v28  ;;  %v1112_v39 = vpop.permute.xlu0 %1111  ;;  %v3490_v25 = vpack.c.bf16 %v203_v61, %v199_v20  ;;  %v5957_v35 = vld [vmem:[#allocation16_spill] sm:$0xff]  ;;  %v5958_v20 = vld [vmem:[#allocation17_spill] sm:$0xff] }
 0x166   : > { %v1169_v37 = vmul.f32 %v1146_v33, %v1119_v45  ;;  %v1170_v58 = vmul.f32 %v1150_v29, %v1131_v44  ;;  %v1118_v40 = vsel %vm1115_vm4, %v5952_v62, %v1112_v39  ;;  %v1130_v38 = vsel %vm1115_vm4, %v1112_v39, %v5953_v27  ;;  %2122 = vmatmul.mubr.bf16.gmra.mxu0 %v4880_v52 }
 0x167   : > { %v1165_v54 = vmul.f32 %v1146_v33, %v1118_v40  ;;  %v1166_v0 = vmul.f32 %v1150_v29, %v1130_v38  ;;  %2319 = vmatprep.subr.bf16.mxu1 %v3490_v25  ;;  %2131 = vmatprep.mubr.bf16.mxu0 %v4886_v26  ;;  %v858_v39 = vrot.slane %v4667_v43, %v4578_v46 }
 0x168   : > { %2320 = vmatpush1.bf16.msra.mxu1 %v3489_v23  ;;  %v1110_v12 = vpop.permute.xlu1 %1109  ;;  %v5959_v23 = vld [vmem:[#allocation20_spill] sm:$0xff]  ;;  %v862_v25 = vrot.slane %v4667_v43, %v4581_v63 }
 0x169   : > { %v3549_v55 = vpack.c.bf16 %v1169_v37, %v1165_v54  ;;  %v1117_v56 = vsel %vm1115_vm4, %v5954_v31, %v1110_v12  ;;  %v1129_v18 = vsel %vm1115_vm4, %v1110_v12, %v4495_v36  ;;  %v1108_v51 = vpop.permute.xlu0 %1107  ;;  %v3550_v14 = vpack.c.bf16 %v1170_v58, %v1166_v0  ;;  %v4926_v36 = vld [vmem:[%s5863_s1 + $0x4c] ss:$12 sps:$4 sm:$0xff]  }
 0x16a   : > { %v1161_v41 = vmul.f32 %v1146_v33, %v1117_v56  ;;  %v1162_v59 = vmul.f32 %v1150_v29, %v1129_v18  ;;  %v1116_v50 = vsel %vm1115_vm4, %v5955_v2, %v1108_v51  ;;  %v1128_v8 = vsel %vm1115_vm4, %v1108_v51, %v5956_v6  ;;  %v5960_v18 = vld [vmem:[#allocation28_spill] sm:$0xff] }
 0x16b   : > { %v1157_v32 = vmul.f32 %v1146_v33, %v1116_v50  ;;  %v1158_v47 = vmul.f32 %v1150_v29, %v1128_v8  ;;  %2321 = vmatprep.subr.bf16.mxu1 %v3550_v14  ;;  %v5962_v50 = vld [vmem:[#allocation29_spill] sm:$0xff] }
 0x16c   : > { %2322 = vmatpush2.bf16.msra.mxu1 %v3549_v55  ;;  %v970_v24 = vpop.permute.xlu1 %969 }
 0x16d   : > { %v3545_v4 = vpack.c.bf16 %v1161_v41, %v1157_v32  ;;  %v975_v61 = vsel %vm971_vm6, %v5957_v35, %v970_v24  ;;  %v987_v30 = vsel %vm971_vm6, %v970_v24, %v4567_v9  ;;  %v968_v15 = vpop.permute.xlu0 %967  ;;  %v3546_v33 = vpack.c.bf16 %v1162_v59, %v1158_v47  ;;  %v5961_v59 = vld [vmem:[#allocation26_spill] sm:$0xff] }
 0x16e   : > { %v1025_v29 = vmul.f32 %v1002_v3, %v975_v61  ;;  %v1026_v42 = vmul.f32 %v1006_v13, %v987_v30  ;;  %v974_v53 = vsel %vm971_vm6, %v5958_v20, %v968_v15  ;;  %v986_v45 = vsel %vm971_vm6, %v968_v15, %v5959_v23  ;;  %2132 = vmatmul.mubr.bf16.gmra.mxu0 %v4921_v60  ;;  %v5963_v24 = vld [vmem:[#allocation10_spill] sm:$0xff]  ;;  %v3877_v61 = vld [vmem:[#allocation2 + $0x38] sm:$0xff] }
 0x16f   : > { %v1021_v28 = vmul.f32 %v1002_v3, %v974_v53  ;;  %v1022_v44 = vmul.f32 %v1006_v13, %v986_v45  ;;  %2323 = vmatprep.subr.bf16.mxu1 %v3546_v33  ;;  %2141 = vmatprep.mubr.bf16.mxu0 %v4926_v36  ;;  %v714_v32 = vrot.slane %v4737_v7, %v4578_v46  ;;  %v3878_v15 = vld [vmem:[#allocation2 + $0x28] sm:$0xff] }
 0x170   : > { %2324 = vmatpush2.bf16.msra.mxu1 %v3545_v4  ;;  %v966_v9 = vpop.permute.xlu1 %965  ;;  %v4988_v4 = vrot.slane %v5963_v24, %v4578_v46  ;;  %v4992_v35 = vrot.slane %v5963_v24, %v4581_v63 }
 0x171   : > { %v3541_v37 = vpack.c.bf16 %v1025_v29, %v1021_v28  ;;  %v973_v58 = vsel %vm971_vm6, %v4617_v22, %v966_v9  ;;  %v985_v62 = vsel %vm971_vm6, %v966_v9, %v4634_v17  ;;  %v964_v40 = vpop.permute.xlu0 %963  ;;  %v3542_v27 = vpack.c.bf16 %v1026_v42, %v1022_v44  ;;  %v4961_v22 = vld [vmem:[%s5863_s1 + $0x48] ss:$12 sps:$4 sm:$0xff]   ;;  %v4966_v17 = vld [vmem:[%s5863_s1 + $0x64] ss:$12 sps:$4 sm:$0xff]   ;;  %v5965_v28 = vld [vmem:[#allocation32_spill] sm:$0xff] }
 0x172   : > { %v1017_v38 = vmul.f32 %v1002_v3, %v973_v58  ;;  %v1018_v54 = vmul.f32 %v1006_v13, %v985_v62  ;;  %v972_v0 = vsel %vm971_vm6, %v4622_v11, %v964_v40  ;;  %v984_v43 = vsel %vm971_vm6, %v964_v40, %v4639_v21  ;;  %v5964_v42 = vld [vmem:[#allocation31_spill] sm:$0xff]  ;;  %v5009_v9 = vld [vmem:[%s5863_s1 + $0x60] ss:$12 sps:$4 sm:$0xff]   ;;  %v5014_v40 = vld [vmem:[%s5863_s1 + $0x7c] ss:$12 sps:$4 sm:$0xff]  }
 0x173   : > { %v1013_v12 = vmul.f32 %v1002_v3, %v972_v0  ;;  %v1014_v55 = vmul.f32 %v1006_v13, %v984_v43  ;;  %2325 = vmatprep.subr.bf16.mxu1 %v3542_v27  ;;  %v718_v11 = vrot.slane %v4737_v7, %v4581_v63  ;;  %v3881_v0 = vld [vmem:[#allocation2 + $0x18] sm:$0xff] }
 0x174   : > { %2326 = vmatpush2.bf16.msra.mxu1 %v3541_v37  ;;  %v826_v31 = vpop.permute.xlu1 %825 }
 0x175   : > { %v3537_v56 = vpack.c.bf16 %v1017_v38, %v1013_v12  ;;  %v831_v21 = vsel %vm827_vm8, %v4675_v16, %v826_v31  ;;  %v843_v3 = vsel %vm827_vm8, %v826_v31, %v5960_v18  ;;  %v824_v13 = vpop.permute.xlu0 %823  ;;  %v3538_v51 = vpack.c.bf16 %v1018_v54, %v1014_v55  ;;  %v3880_v54 = vld [vmem:[#allocation2 + $0x78] sm:$0xff]  ;;  %v3882_v12 = vld [vmem:[#allocation2 + $0x48] sm:$0xff] }
 0x176   : > { %v881_v14 = vmul.f32 %v858_v39, %v831_v21  ;;  %v882_v41 = vmul.f32 %v862_v25, %v843_v3  ;;  %v830_v2 = vsel %vm827_vm8, %v5961_v59, %v824_v13  ;;  %v842_v6 = vsel %vm827_vm8, %v824_v13, %v5962_v50  ;;  %2142 = vmatmul.mubr.bf16.gmra.mxu0 %v4961_v22 }
 0x177   : > { %v877_v8 = vmul.f32 %v858_v39, %v830_v2  ;;  %v878_v16 = vmul.f32 %v862_v25, %v842_v6  ;;  %2327 = vmatprep.subr.bf16.mxu1 %v3538_v51  ;;  %2151 = vmatprep.mubr.bf16.mxu0 %v4966_v17  ;;  %v734_v30 = vmul.f32 %v3877_v61, %v718_v11  ;;  %v3884_v61 = vld [vmem:[#allocation2 + $0x8] sm:$0xff] }
 0x178   : > { %2328 = vmatpush2.bf16.msra.mxu1 %v3537_v56  ;;  %v822_v47 = vpop.permute.xlu1 %821  ;;  %v738_v33 = vmul.f32 %v3878_v15, %v718_v11  ;;  %v726_v43 = vmul.f32 %v3881_v0, %v718_v11  ;;  %v730_v55 = vmul.f32 %v3882_v12, %v718_v11  ;;  %v5967_v56 = vld [vmem:[#allocation14_spill] sm:$0xff]  ;;  %v5969_v11 = vld [vmem:[#allocation15_spill] sm:$0xff] }
 0x179   : > { %v3533_v29 = vpack.c.bf16 %v881_v14, %v877_v8  ;;  %v829_v20 = vsel %vm827_vm8, %v5964_v42, %v822_v47  ;;  %v841_v7 = vsel %vm827_vm8, %v822_v47, %v4761_v57  ;;  %v820_v53 = vpop.permute.xlu0 %819  ;;  %v3534_v46 = vpack.c.bf16 %v882_v41, %v878_v16  ;;  %v3879_v57 = vld [vmem:[#allocation2 + $0x10] sm:$0xff]  ;;  %v5968_v14 = vld [vmem:[#allocation12_spill] sm:$0xff]  ;;  %v5971_v42 = vld [vmem:[#allocation21_spill] sm:$0xff] }
 0x17a   : > { %v873_v23 = vmul.f32 %v858_v39, %v829_v20  ;;  %v874_v45 = vmul.f32 %v862_v25, %v841_v7  ;;  %v828_v63 = vsel %vm827_vm8, %v5965_v28, %v820_v53  ;;  %v840_v44 = vsel %vm827_vm8, %v820_v53, %v4766_v10  ;;  %v3883_v47 = vld [vmem:[#allocation2 + $0x58] sm:$0xff]  ;;  %v5973_v28 = vld [vmem:[#allocation22_spill] sm:$0xff] }
 0x17b   : > { %v869_v37 = vmul.f32 %v858_v39, %v828_v63  ;;  %v870_v58 = vmul.f32 %v862_v25, %v840_v44  ;;  %2329 = vmatprep.subr.bf16.mxu1 %v3534_v46  ;;  %v733_v62 = vmul.f32 %v3879_v57, %v714_v32  ;;  %v3526_v38 = vpack.c.bf16 %v738_v33, %v734_v30  ;;  %v5966_v39 = vld [vmem:[#allocation11_spill] sm:$0xff]  ;;  %v5970_v33 = vld [vmem:[#allocation18_spill] sm:$0xff]  ;;  %v3606_v44 = vld [vmem:[%s5863_s1 + $0x78] ss:$12 sps:$4 sm:$0xff]  }
 0x17c   : > { %2330 = vmatpush2.bf16.msra.mxu1 %v3533_v29  ;;  %v1258_v27 = vpop.permute.xlu1 %1257  ;;  %v737_v10 = vmul.f32 %v3880_v54, %v714_v32  ;;  %v3522_v16 = vpack.c.bf16 %v730_v55, %v726_v43  ;;  %v725_v24 = vmul.f32 %v3883_v47, %v714_v32  ;;  %v729_v30 = vmul.f32 %v3884_v61, %v714_v32  ;;  %v3607_v57 = vld [vmem:[%s5863_s1 + $0x94] ss:$12 sps:$4 sm:$0xff]  }
 0x17d   : > { %v3529_v31 = vpack.c.bf16 %v873_v23, %v869_v37  ;;  %v1263_v25 = vsel %vm1259_vm5, %v5966_v39, %v1258_v27  ;;  %v1275_v21 = vsel %vm1259_vm5, %v1258_v27, %v5967_v56  ;;  %v1256_v18 = vpop.permute.xlu0 %1255  ;;  %v3530_v3 = vpack.c.bf16 %v874_v45, %v870_v58  ;;  %v5972_v45 = vld [vmem:[#allocation19_spill] sm:$0xff] }
 0x17e   : > { %v1313_v13 = vmul.f32 %v4988_v4, %v1263_v25  ;;  %v1314_v51 = vmul.f32 %v4992_v35, %v1275_v21  ;;  %v1262_v41 = vsel %vm1259_vm5, %v5968_v14, %v1256_v18  ;;  %v1274_v59 = vsel %vm1259_vm5, %v1256_v18, %v5969_v11  ;;  %2152 = vmatmul.mubr.bf16.gmra.mxu0 %v5009_v9  ;;  %v5140_v14 = vld [vmem:[#allocation3 + $0x28] sm:$0xff]  ;;  %v1480_v11 = vld [vmem:[%s5133_s30 + $0x10] sm:$0xff] }
 0x17f   : > { %v1309_v2 = vmul.f32 %v4988_v4, %v1262_v41  ;;  %v1310_v50 = vmul.f32 %v4992_v35, %v1274_v59  ;;  %2331 = vmatprep.subr.bf16.mxu1 %v3530_v3  ;;  %2161 = vmatprep.mubr.bf16.mxu0 %v5014_v40  ;;  %v3525_v8 = vpack.c.bf16 %v737_v10, %v733_v62  ;;  %v1478_v3 = vld [vmem:[%s5133_s30] sm:$0xff] }
 0x180   : > { %2332 = vmatpush2.bf16.msra.mxu1 %v3529_v31  ;;  %v1254_v6 = vpop.permute.xlu1 %1253  ;;  %v3521_v62 = vpack.c.bf16 %v729_v30, %v725_v24  ;;  %v2547_v41 = vld [vmem:[%s5865_s3] sm:$0xff]  ;;  %v1511_v59 = vunpack.c.h.bf16 %v1478_v3  ;;  %v1514_v24 = vunpack.c.l.bf16 %v1480_v11  ;;  %v5154_v30 = vld [vmem:[#allocation3 + $0x48] sm:$0xff] }
 0x181   : > { %v3557_v15 = vpack.c.bf16 %v1313_v13, %v1309_v2  ;;  %v1261_v29 = vsel %vm1259_vm5, %v5970_v33, %v1254_v6  ;;  %v1273_v20 = vsel %vm1259_vm5, %v1254_v6, %v5971_v42  ;;  %v1252_v7 = vpop.permute.xlu0 %1251  ;;  %2333 = vmatprep.subr.bf16.mxu1 %v3526_v38  ;;  %v3558_v53 = vpack.c.bf16 %v1314_v51, %v1310_v50  ;;  %v3612_v38 = vld [vmem:[%s5863_s1 + $0xa8] ss:$12 sps:$4 sm:$0xff]  }
 0x182   : > { %v1305_v46 = vmul.f32 %v4988_v4, %v1261_v29  ;;  %v1306_v23 = vmul.f32 %v4992_v35, %v1273_v20  ;;  %v1260_v32 = vsel %vm1259_vm5, %v5972_v45, %v1252_v7  ;;  %v1272_v63 = vsel %vm1259_vm5, %v1252_v7, %v5973_v28  ;;  %v5148_v6 = vld [vmem:[#allocation3 + $0x68] sm:$0xff]  ;;  %v5160_v7 = vld [vmem:[#allocation3 + $0x30] sm:$0xff] }
 0x183   : > { %v1301_v37 = vmul.f32 %v4988_v4, %v1260_v32  ;;  %v1302_v58 = vmul.f32 %v4992_v35, %v1272_v63  ;;  %2430 = vmatprep.subr.bf16.mxu0 %v3558_v53  ;;  %v3609_v4 = vld [vmem:[%s5863_s1 + $0x90] ss:$12 sps:$4 sm:$0xff]   ;;  %v3610_v35 = vld [vmem:[%s5863_s1 + $0xac] ss:$12 sps:$4 sm:$0xff]   ;;  %v1510_v51 = vunpack.c.l.bf16 %v1478_v3  ;;  %v2563_v47 = vmul.f32 %v2547_v41, %v5140_v14 }
 0x184   : > { %2334 = vmatpush2.bf16.msra.mxu1 %v3525_v8  ;;  %2431 = vmatpush1.bf16.msra.mxu0 %v3557_v15  ;;  %v2548_v8 = vld [vmem:[%s5865_s3 + $0x8] sm:$0xff]  ;;  %v1515_v20 = vunpack.c.h.bf16 %v1480_v11 }
 0x185   : > { %v3553_v27 = vpack.c.bf16 %v1305_v46, %v1301_v37  ;;  %2335 = vmatprep.subr.bf16.mxu1 %v3522_v16  ;;  %v3554_v19 = vpack.c.bf16 %v1306_v23, %v1302_v58  ;;  %v2564_v42 = vmul.f32 %v2548_v8, %v5148_v6  ;;  %v1482_v46 = vld [vmem:[%s5133_s30 + $0x20] sm:$0xff]  ;;  %v1484_v37 = vld [vmem:[%s5133_s30 + $0x30] sm:$0xff]  ;;  %v5189_v11 = vld [vmem:[#allocation3 + $0x8] sm:$0xff] }
 0x186   : > { %2162 = vmatmul.mubr.bf16.gmra.mxu0 %v3606_v44 }
 0x187   : > { %2432 = vmatprep.subr.bf16.mxu0 %v3554_v19  ;;  %2171 = vmatprep.mubr.bf16.mxu0 %v3607_v57 }
 0x188   : > { %2336 = vmatpush2.bf16.msra.mxu1 %v3521_v62  ;;  %2433 = vmatpush1.bf16.msra.mxu0 %v3553_v27  ;;  %v1518_v62 = vunpack.c.l.bf16 %v1482_v46 }
 0x189   : > { %3559 = vmatprep.subr.bf16.mxu1 %v3558_v53  ;;  %v2552_v53 = vld [vmem:[%s5865_s3 + $0x28] sm:$0xff] }
 0x18b   : > { %2338 = vmatmul.mubr.bf16.vlgmr.msra.gmra.mxu1 %v4833_v1  ;;  %v5974_v1 = vld [vmem:[#allocation23_spill] sm:$0xff] }
 0x18c   : > { %3561 = vmatpush1.bf16.msra.mxu1 %v3557_v15  ;;  %2347 = vmatprep.mubr.bf16.mxu1 %v4838_v49  ;;  %v5975_v49 = vld [vmem:[#allocation24_spill] sm:$0xff]  ;;  %v2551_v15 = vld [vmem:[%s5865_s3 + $0x20] sm:$0xff] }
 0x18d   : > { %3560 = vmatprep.subr.bf16.mxu1 %v3554_v19  ;;  %v1519_v19 = vunpack.c.h.bf16 %v1482_v46 }
 0x18e   : > { %2172 = vmatmul.mubr.bf16.gmra.mxu0 %v3609_v4 }
 0x18f   : > { %2181 = vmatprep.mubr.bf16.mxu0 %v3610_v35 }
 0x190   : > { %3562 = vmatpush1.bf16.msra.mxu1 %v3553_v27  ;;  %v5171_v27 = vld [vmem:[#allocation3 + $0x20] sm:$0xff] }
 0x193   : > { %2348 = vmatmul.mubr.bf16.gmra.mxu1 %v4880_v52  ;;  %v5976_v52 = vld [vmem:[#allocation25_spill] sm:$0xff] }
 0x194   : > { %2357 = vmatprep.mubr.bf16.mxu1 %v4886_v26  ;;  %v5977_v26 = vld [vmem:[#allocation27_spill] sm:$0xff] }
 0x196   : > { %2182 = vmatmul.mubr.bf16.gmra.mxu0 %v3612_v38 }
 0x197   : > { %2450 = vmatprep.mubr.bf16.mxu0 %v5940_v34 }
 0x19b   : > { %2358 = vmatmul.mubr.bf16.gmra.mxu1 %v4921_v60  ;;  %v5978_v60 = vld [vmem:[#allocation30_spill] sm:$0xff] }
 0x19c   : > { %2367 = vmatprep.mubr.bf16.mxu1 %v4926_v36  ;;  %v5979_v36 = vld [vmem:[#allocation33_spill] sm:$0xff] }
 0x19e   : > { %3355 = vmatmul.mubr.msk.bf16.vlgmr.msra.gmra.mxu0 %vm2054_vm7, %v5974_v1 }
 0x19f   : > { %2460 = vmatprep.mubr.bf16.mxu0 %v5940_v34 }
 0x1a3   : > { %2368 = vmatmul.mubr.bf16.gmra.mxu1 %v4961_v22 }
 0x1a4   : > { %2377 = vmatprep.mubr.bf16.mxu1 %v4966_v17 }
 0x1a6   : > { %3356 = vmatmul.mubr.msk.bf16.gmra.mxu0 %vm2054_vm7, %v5975_v49  ;;  %v2555_v49 = vld [vmem:[%s5865_s3 + $0x40] sm:$0xff] }
 0x1a7   : > { %2470 = vmatprep.mubr.bf16.mxu0 %v5940_v34 }
 0x1ab   : > { %2378 = vmatmul.mubr.bf16.gmra.mxu1 %v5009_v9 }
 0x1ac   : > { %2387 = vmatprep.mubr.bf16.mxu1 %v5014_v40 }
 0x1ae   : > { %3357 = vmatmul.mubr.msk.bf16.gmra.mxu0 %vm2054_vm7, %v5976_v52  ;;  %v5176_v52 = vld [vmem:[#allocation3 + $0x78] sm:$0xff] }
 0x1af   : > { %2480 = vmatprep.mubr.bf16.mxu0 %v5940_v34 }
 0x1b3   : > { %2388 = vmatmul.mubr.bf16.gmra.mxu1 %v3606_v44  ;;  %v2567_v44 = vmul.f32 %v2551_v15, %v5154_v30 }
 0x1b4   : > { %2397 = vmatprep.mubr.bf16.mxu1 %v3607_v57  ;;  %v2568_v57 = vmul.f32 %v2552_v53, %v5160_v7 }
 0x1b6   : > { %3358 = vmatmul.mubr.msk.bf16.gmra.mxu0 %vm2054_vm7, %v5977_v26  ;;  %v2556_v26 = vld [vmem:[%s5865_s3 + $0x48] sm:$0xff] }
 0x1b7   : > { %2490 = vmatprep.mubr.bf16.mxu0 %v5940_v34 }
 0x1bb   : > { %2398 = vmatmul.mubr.bf16.gmra.mxu1 %v3609_v4 }
 0x1bc   : > { %2407 = vmatprep.mubr.bf16.mxu1 %v3610_v35 }
 0x1be   : > { %3359 = vmatmul.mubr.msk.bf16.gmra.mxu0 %vm2054_vm7, %v5978_v60 }
 0x1c3   : > { %2408 = vmatmul.mubr.bf16.gmra.mxu1 %v3612_v38 }
 0x1c4   : > { %2500 = vmatprep.mubr.bf16.mxu1 %v5940_v34 }
 0x1cb   : > { %3360 = vmatmul.mubr.msk.bf16.vlgmr.msra.gmra.mxu1 %vm2054_vm7, %v5979_v36 }
 0x1cc   : > { %2510 = vmatprep.mubr.bf16.mxu1 %v5940_v34 }
 0x1d3   : > { %3361 = vmatmul.mubr.msk.bf16.gmra.mxu1 %vm2054_vm7, %v4795_v48 }
 0x1d4   : > { %2520 = vmatprep.mubr.bf16.mxu1 %v5940_v34 }
 0x1db   : > { %3362 = vmatmul.mubr.msk.bf16.gmra.mxu1 %vm2054_vm7, %v4849_v5 }
 0x1e6   : > { %v2226_v22 = vpop.f32.mrf.mxu1 }
 0x1e8   : > { %v2228_v17 = vpop.f32.mrf.mxu1 }
 0x1ea   : > { %v2230_v9 = vpop.f32.mrf.mxu1 }
 0x1ec   : > { %v5099_v40 = vpop.f32.mrf.mxu1 }
 0x1ee   : > { %v5101_v54 = vpop.f32.mrf.mxu1 }
 0x1f0   : > { %v5103_v10 = vpop.f32.mrf.mxu1 }
 0x1f2   : > { %v5105_v0 = vpop.f32.mrf.mxu1 }
 0x1f4   : > { %v5107_v43 = vpop.f32.mrf.mxu1 }
 0x1f6   : > { %v5109_v48 = vpop.f32.mrf.mxu1 }
 0x1f8   : > { %v5111_v34 = vpop.f32.mrf.mxu1 }
 0x1fa   : > { %v5113_v12 = vpop.f32.mrf.mxu1 }
 0x1fc   : > { %v5115_v5 = vpop.f32.mrf.mxu1 }
 0x1fe   : > { %v5117_v55 = vpop.f32.mrf.mxu1 }
 0x200   : > { %v5119_v31 = vpop.f32.mrf.mxu1 }
 0x202   : > { %v5121_v39 = vpop.f32.mrf.mxu1 }
 0x204   : > { %v5123_v25 = vpop.f32.mrf.mxu1 }
 0x206   : > { %v5125_v56 = vpop.f32.mrf.mxu1 }
 0x208   : > { %v5127_v21 = vpop.f32.mrf.mxu1 }
 0x20a   : > { %v5135_v18 = vpop.f32.mrf.mxu1 }
 0x20c   : > { %v5138_v13 = vpop.f32.mrf.mxu1 }
 0x20e   : > { %v5146_v2 = vpop.f32.mrf.mxu1 }
 0x210   : > { %v5166_v23 = vpop.f32.mrf.mxu1 }
 0x212   : > { %v5181_v60 = vpop.f32.mrf.mxu1 }
 0x21e   : > { %v2113_v50 = vpop.f32.mrf.mxu0 }
 0x21f   : > { %v2114_v16 = vadd.f32 %v2113_v50, %v1510_v51  ;;  %v1486_v50 = vld [vmem:[%s5133_s30 + $0x40] sm:$0xff] }
 0x220   : > { %v2115_v61 = vpop.f32.mrf.mxu0 }
 0x221   : > { %v2227_v33 = vadd.f32 %v2226_v22, %v2114_v16  ;;  %v2116_v29 = vadd.f32 %v2115_v61, %v1511_v59  ;;  %v1522_v22 = vunpack.c.l.bf16 %v1484_v37  ;;  %v2560_v59 = vld [vmem:[%s5865_s3 + $0x68] sm:$0xff]  ;;  %v2571_v16 = vmul.f32 %v2555_v49, %v5171_v27 }
 0x222   : > { %v2117_v45 = vpop.f32.mrf.mxu0  ;;  %v1523_v61 = vunpack.c.h.bf16 %v1484_v37  ;;  %v2696_v49 = vld [vmem:[%s5866_s4 + $0x28] sm:$0xff] }
 0x223   : > { %v2579_v32 = vadd.f32 %v2563_v47, %v2227_v33  ;;  %v2229_v28 = vadd.f32 %v2228_v17, %v2116_v29  ;;  %v2118_v63 = vadd.f32 %v2117_v45, %v1514_v24  ;;  %v5183_v17 = vld [vmem:[#allocation3] sm:$0xff]  ;;  %v2572_v24 = vmul.f32 %v2556_v26, %v5176_v52 }
 0x224   : > { %v2119_v58 = vpop.f32.mrf.mxu0  ;;  %v5222_v26 = vld [vmem:[%s5133_s30 + $0x60] sm:$0xff] }
 0x225   : > { %v3363_v4 = vmul.f32 -1.442695, %v2579_v32  ;;  %v2580_v35 = vadd.f32 %v2564_v42, %v2229_v28  ;;  %v2231_v38 = vadd.f32 %v2230_v9, %v2118_v63  ;;  %v2120_v1 = vadd.f32 %v2119_v58, %v1515_v20  ;;  %v2559_v9 = vld [vmem:[%s5865_s3 + $0x60] sm:$0xff]  ;;  %v5201_v42 = vld [vmem:[%s5133_s30 + $0x50] sm:$0xff]  ;;  %v5203_v20 = vpop.f32.mrf.mxu1  ;;  %v2692_v58 = vld [vmem:[%s5866_s4 + $0x8] sm:$0xff] }
 0x226   : > { %v2123_v36 = vpop.f32.mrf.mxu0  ;;  %v2575_v45 = vmul.f32 %v2559_v9, %v5183_v17  ;;  %v2576_v32 = vmul.f32 %v2560_v59, %v5189_v11  ;;  %v1526_v28 = vunpack.c.l.bf16 %v1486_v50 }
 0x227   : > { %3613 = vpow2.f32 %v3363_v4  ;;  %v3364_v3 = vmul.f32 -1.442695, %v2580_v35  ;;  %v2583_v51 = vadd.f32 %v2567_v44, %v2231_v38  ;;  %v2233_v41 = vadd.f32 %v5099_v40, %v2120_v1  ;;  %v2691_v40 = vld [vmem:[%s5866_s4] sm:$0xff] }
 0x228   : > { %v2124_v8 = vadd.f32 %v2123_v36, %v1518_v62  ;;  %v2125_v47 = vpop.f32.mrf.mxu0  ;;  %v1527_v4 = vunpack.c.h.bf16 %v1486_v50  ;;  %v1530_v35 = vunpack.c.l.bf16 %v5201_v42  ;;  %v5224_v36 = vpop.f32.mrf.mxu1 }
 0x229   : > { %3615 = vpow2.f32 %v3364_v3  ;;  %v3367_v15 = vmul.f32 -1.442695, %v2583_v51  ;;  %v2584_v33 = vadd.f32 %v2568_v57, %v2233_v41  ;;  %v2126_v29 = vadd.f32 %v2125_v47, %v1519_v19  ;;  %v2700_v47 = vld [vmem:[%s5866_s4 + $0x48] sm:$0xff] }
 0x22a   : > { %v2237_v53 = vadd.f32 %v5101_v54, %v2124_v8  ;;  %v2127_v46 = vpop.f32.mrf.mxu0  ;;  %v2695_v54 = vld [vmem:[%s5866_s4 + $0x20] sm:$0xff]  ;;  %v2707_v19 = vmul.f32 %v2691_v40, %v5140_v14  ;;  %v2708_v3 = vmul.f32 %v2692_v58, %v5148_v6  ;;  %v1531_v41 = vunpack.c.h.bf16 %v5201_v42 }
 0x22b   : > { %3617 = vpow2.f32 %v3367_v15  ;;  %v3368_v63 = vmul.f32 -1.442695, %v2584_v33  ;;  %v2239_v44 = vadd.f32 %v5103_v10, %v2126_v29  ;;  %v2128_v37 = vadd.f32 %v2127_v46, %v1522_v22  ;;  %v5246_v46 = vpop.f32.mrf.mxu1 }
 0x22c   : > { %v2587_v57 = vadd.f32 %v2571_v16, %v2237_v53  ;;  %v2129_v62 = vpop.f32.mrf.mxu0  ;;  %v2711_v51 = vmul.f32 %v2695_v54, %v5154_v30  ;;  %v2699_v16 = vld [vmem:[%s5866_s4 + $0x40] sm:$0xff]  ;;  %v2712_v15 = vmul.f32 %v2696_v49, %v5160_v7  ;;  %v1534_v33 = vunpack.c.l.bf16 %v5222_v26 }
 0x22d   : > { %3619 = vpow2.f32 %v3368_v63  ;;  %v2588_v38 = vadd.f32 %v2572_v24, %v2239_v44  ;;  %v2241_v10 = vadd.f32 %v5105_v0, %v2128_v37  ;;  %v2130_v1 = vadd.f32 %v2129_v62, %v1523_v61  ;;  %v5237_v24 = vld [vmem:[%s5133_s30 + $0x70] sm:$0xff]  ;;  %v2703_v53 = vld [vmem:[%s5866_s4 + $0x60] sm:$0xff] }
 0x22e   : > { %v3371_v22 = vmul.f32 -1.442695, %v2587_v57  ;;  %v2133_v9 = vpop.f32.mrf.mxu0  ;;  %v2715_v44 = vmul.f32 %v2699_v16, %v5171_v27  ;;  %v5253_v37 = vmul.f32 %v2700_v47, %v5176_v52  ;;  %v1538_v58 = vunpack.c.l.bf16 %v5237_v24  ;;  %v2704_v57 = vld [vmem:[%s5866_s4 + $0x68] sm:$0xff] }
 0x22f   : > { %v3372_v59 = vmul.f32 -1.442695, %v2588_v38  ;;  %v2591_v0 = vadd.f32 %v2575_v45, %v2241_v10  ;;  %v2243_v50 = vadd.f32 %v5107_v43, %v2130_v1  ;;  %v2134_v8 = vadd.f32 %v2133_v9, %v1526_v28  ;;  %v5249_v45 = vld [vmem:[%s5133_s30 + $0x80] sm:$0xff]  ;;  %v5267_v9 = vld [vmem:[%s5133_s30 + $0x90] sm:$0xff] }
 0x230   : > { %3621 = vpow2.f32 %v3371_v22  ;;  %v2135_v61 = vpop.f32.mrf.mxu0  ;;  %v1535_v43 = vunpack.c.h.bf16 %v5222_v26  ;;  %v2719_v10 = vmul.f32 %v2703_v53, %v5183_v17  ;;  %v1539_v1 = vunpack.c.h.bf16 %v5237_v24 }
 0x231   : > { %3623 = vpow2.f32 %v3372_v59  ;;  %v3375_v29 = vmul.f32 -1.442695, %v2591_v0  ;;  %v2592_v40 = vadd.f32 %v2576_v32, %v2243_v50  ;;  %v2247_v42 = vadd.f32 %v5109_v48, %v2134_v8 }
 0x232   : > { %v2136_v28 = vadd.f32 %v2135_v61, %v1527_v4  ;;  %v2137_v63 = vpop.f32.mrf.mxu0  ;;  %v1542_v49 = vunpack.c.l.bf16 %v5249_v45  ;;  %v2720_v8 = vmul.f32 %v2704_v57, %v5189_v11  ;;  %v1543_v16 = vunpack.c.h.bf16 %v5249_v45  ;;  %v2561_v45 = vld [vmem:[%s5865_s3 + $0x70] sm:$0xff] }
 0x233   : > { %3625 = vpow2.f32 %v3375_v29  ;;  %v3376_v48 = vmul.f32 -1.442695, %v2592_v40  ;;  %v2723_v32 = vadd.f32 %v2707_v19, %v2247_v42  ;;  %v2138_v54 = vadd.f32 %v2137_v63, %v1530_v35  ;;  %v5264_v35 = vpop.f32.mrf.mxu1 }
 0x234   : > { %v3614_v62 = vpop.eup %3613  ;;  %v2249_v4 = vadd.f32 %v5111_v34, %v2136_v28  ;;  %v2139_v38 = vpop.f32.mrf.mxu0  ;;  %v1546_v53 = vunpack.c.l.bf16 %v5267_v9  ;;  %v1547_v57 = vunpack.c.h.bf16 %v5267_v9 }
 0x235   : > { %v2643_v26 = vadd.f32 1.0, %v3614_v62  ;;  %3627 = vpow2.f32 %v3376_v48  ;;  %v3379_v22 = vmul.f32 -1.442695, %v2723_v32  ;;  %v2251_v19 = vadd.f32 %v5113_v12, %v2138_v54  ;;  %v5274_v63 = vpop.f32.mrf.mxu1  ;;  %v5277_v48 = vld [vmem:[%s5133_s30 + $0xa0] sm:$0xff] }
 0x236   : > { %v3616_v59 = vpop.eup %3615  ;;  %v2724_v0 = vadd.f32 %v2708_v3, %v2249_v4  ;;  %v2140_v50 = vadd.f32 %v2139_v38, %v1531_v41  ;;  %v2143_v34 = vpop.f32.mrf.mxu0 }
 0x237   : > { %3629 = vrcp.f32 %v2643_v26  ;;  %v2644_v47 = vadd.f32 1.0, %v3616_v59  ;;  %v2727_v24 = vadd.f32 %v2711_v51, %v2251_v19  ;;  %v2144_v61 = vadd.f32 %v2143_v34, %v1534_v33  ;;  %v5283_v9 = vpop.f32.mrf.mxu1 }
 0x238   : > { %v3618_v29 = vpop.eup %3617  ;;  %3631 = vpow2.f32 %v3379_v22  ;;  %v3380_v12 = vmul.f32 -1.442695, %v2724_v0  ;;  %v2253_v40 = vadd.f32 %v5115_v5, %v2140_v50  ;;  %v2145_v42 = vpop.f32.mrf.mxu0  ;;  %v1550_v22 = vunpack.c.l.bf16 %v5277_v48  ;;  %v5286_v0 = vld [vmem:[%s5133_s30 + $0xb0] sm:$0xff] }
 0x239   : > { %3633 = vrcp.f32 %v2644_v47  ;;  %v2647_v3 = vadd.f32 1.0, %v3618_v29  ;;  %v3383_v41 = vmul.f32 -1.442695, %v2727_v24  ;;  %v2257_v28 = vadd.f32 %v5117_v55, %v2144_v61 }
 0x23a   : > { %v3620_v32 = vpop.eup %3619  ;;  %3635 = vpow2.f32 %v3380_v12  ;;  %v2728_v51 = vadd.f32 %v2712_v15, %v2253_v40  ;;  %v2146_v33 = vadd.f32 %v2145_v42, %v1535_v43  ;;  %v2147_v54 = vpop.f32.mrf.mxu0  ;;  %v1551_v34 = vunpack.c.h.bf16 %v5277_v48 }
 0x23b   : > { %3637 = vrcp.f32 %v2647_v3  ;;  %v2648_v5 = vadd.f32 1.0, %v3620_v32  ;;  %v2731_v62 = vadd.f32 %v2715_v44, %v2257_v28  ;;  %v2148_v4 = vadd.f32 %v2147_v54, %v1538_v58  ;;  %v5297_v28 = vpop.f32.mrf.mxu1  ;;  %v5307_v54 = vld [vmem:[%s5133_s30 + $0x18] sm:$0xff] }
 0x23c   : > { %3639 = vpow2.f32 %v3383_v41  ;;  %v3384_v38 = vmul.f32 -1.442695, %v2728_v51  ;;  %v2259_v55 = vadd.f32 %v5119_v31, %v2146_v33  ;;  %v2149_v26 = vpop.f32.mrf.mxu0  ;;  %v5435_v33 = vld [vmem:[#allocation3 + $0x60] sm:$0xff] }
 0x23d   : > { %v3622_v19 = vpop.eup %3621  ;;  %3641 = vrcp.f32 %v2648_v5  ;;  %v3387_v15 = vmul.f32 -1.442695, %v2731_v62  ;;  %v2261_v43 = vadd.f32 %v5121_v39, %v2148_v4  ;;  %v2150_v59 = vadd.f32 %v2149_v26, %v1539_v1  ;;  %v5292_v39 = vld [vmem:[%s5133_s30 + $0x8] sm:$0xff]  ;;  %5992 = vst [vmem:[#allocation10_spill] sm:$0xff] %v5435_v33 }
 0x23e   : > { %v3624_v44 = vpop.eup %3623  ;;  %v2651_v58 = vadd.f32 1.0, %v3622_v19  ;;  %3643 = vpow2.f32 %v3384_v38  ;;  %v2732_v50 = vadd.f32 %v5253_v37, %v2259_v55  ;;  %v2153_v31 = vpop.f32.mrf.mxu0  ;;  %v1554_v37 = vunpack.c.l.bf16 %v5286_v0  ;;  %v5318_v26 = vld [vmem:[%s5133_s30 + $0x28] sm:$0xff] }
 0x23f   : > { %v2652_v47 = vadd.f32 1.0, %v3624_v44  ;;  %3645 = vpow2.f32 %v3387_v15  ;;  %v2735_v24 = vadd.f32 %v2719_v10, %v2261_v43  ;;  %v2263_v61 = vadd.f32 %v5123_v25, %v2150_v59  ;;  %v5300_v10 = vld [vmem:[%s5133_s30 + $0xc0] sm:$0xff]  ;;  %v5321_v43 = vpop.f32.mrf.mxu1  ;;  %v5412_v59 = vld [vmem:[%s5133_s30 + $0x78] sm:$0xff] }
 0x240   : > { %v3626_v1 = vpop.eup %3625  ;;  %3647 = vrcp.f32 %v2651_v58  ;;  %v3388_v29 = vmul.f32 -1.442695, %v2732_v50  ;;  %v2154_v12 = vadd.f32 %v2153_v31, %v1542_v49  ;;  %v2155_v40 = vpop.f32.mrf.mxu0  ;;  %v1555_v55 = vunpack.c.h.bf16 %v5286_v0  ;;  %v5406_v0 = vld [vmem:[#allocation3 + $0x38] sm:$0xff]  ;;  %5988 = vst [vmem:[#allocation20_spill] sm:$0xff] %v5412_v59 }
 0x241   : > { %3649 = vrcp.f32 %v2652_v47  ;;  %v2655_v42 = vadd.f32 1.0, %v3626_v1  ;;  %v3391_v3 = vmul.f32 -1.442695, %v2735_v24  ;;  %v2736_v41 = vadd.f32 %v2720_v8, %v2263_v61  ;;  %v5332_v1 = vld [vmem:[%s5133_s30 + $0xe0] sm:$0xff]  ;;  %5987 = vst [vmem:[#allocation17_spill] sm:$0xff] %v5406_v0  ;;  %v2554_v47 = vld [vmem:[%s5865_s3 + $0x38] sm:$0xff] }
 0x242   : > { %v3628_v25 = vpop.eup %3627  ;;  %3651 = vpow2.f32 %v3388_v29  ;;  %v2267_v32 = vadd.f32 %v5125_v56, %v2154_v12  ;;  %v2156_v49 = vadd.f32 %v2155_v40, %v1543_v16  ;;  %v2157_v51 = vpop.f32.mrf.mxu0  ;;  %v5315_v16 = vld [vmem:[%s5133_s30 + $0xd0] sm:$0xff]  ;;  %v5335_v29 = vld [vmem:[%s5133_s30 + $0x38] sm:$0xff] }
 0x243   : > { %3653 = vrcp.f32 %v2655_v42  ;;  %v2656_v8 = vadd.f32 1.0, %v3628_v25  ;;  %v3392_v5 = vmul.f32 -1.442695, %v2736_v41  ;;  %v2158_v62 = vadd.f32 %v2157_v51, %v1546_v53  ;;  %5980 = vst [vmem:[#allocation6_spill] sm:$0xff] %v5335_v29  ;;  %v2550_v51 = vld [vmem:[%s5865_s3 + $0x18] sm:$0xff] }
 0x244   : > { %v5309_v4 = vpop.eup %3629  ;;  %3655 = vpow2.f32 %v3391_v3  ;;  %v2159_v38 = vpop.f32.mrf.mxu0  ;;  %v2269_v15 = vadd.f32 %v5127_v21, %v2156_v49  ;;  %v5425_v41 = vld [vmem:[#allocation3 + $0x58] sm:$0xff]  ;;  %v6000_v59 = vunpack.c.h.bf16 %v5315_v16 }
 0x245   : > { %v3632_v19 = vpop.eup %3631  ;;  %3657 = vrcp.f32 %v2656_v8  ;;  %v2160_v53 = vadd.f32 %v2159_v38, %v1547_v57  ;;  %v2271_v61 = vadd.f32 %v5135_v18, %v2158_v62  ;;  %v5345_v49 = vpop.f32.mrf.mxu1  ;;  %v5349_v8 = vld [vmem:[%s5133_s30 + $0xf0] sm:$0xff]  ;;  %v5420_v38 = vld [vmem:[#allocation3 + $0x18] sm:$0xff]  ;;  %5990 = vst [vmem:[#allocation26_spill] sm:$0xff] %v5425_v41 }
 0x246   : > { %v5324_v44 = vpop.eup %3633  ;;  %v2787_v58 = vadd.f32 1.0, %v3632_v19  ;;  %3659 = vpow2.f32 %v3392_v5  ;;  %v2163_v50 = vpop.f32.mrf.mxu0  ;;  %5989 = vst [vmem:[#allocation28_spill] sm:$0xff] %v5420_v38 }
 0x247   : > { %v3636_v24 = vpop.eup %3635  ;;  %3661 = vtanh.f32 %v2267_v32  ;;  %v2164_v42 = vadd.f32 %v2163_v50, %v1550_v22  ;;  %v2273_v25 = vadd.f32 %v5138_v13, %v2160_v53 }
 0x248   : > { %v5337_v12 = vpop.eup %3637  ;;  %3663 = vrcp.f32 %v2787_v58  ;;  %v2788_v40 = vadd.f32 1.0, %v3636_v24  ;;  %v2165_v3 = vpop.f32.mrf.mxu0  ;;  %v5362_v58 = vld [vmem:[%s5133_s30 + $0x48] sm:$0xff] }
 0x249   : > { %v3640_v18 = vpop.eup %3639  ;;  %3665 = vtanh.f32 %v2269_v15  ;;  %v2166_v32 = vadd.f32 %v2165_v3, %v1551_v34  ;;  %5981 = vst [vmem:[#allocation5_spill] sm:$0xff] %v5362_v58 }
 0x24a   : > { %v5351_v5 = vpop.eup %3641  ;;  %3667 = vrcp.f32 %v2788_v40  ;;  %v2791_v22 = vadd.f32 1.0, %v3640_v18  ;;  %v2167_v62 = vpop.f32.mrf.mxu0  ;;  %v2277_v40 = vadd.f32 %v5146_v2, %v2164_v42 }
 0x24b   : > { %v3644_v13 = vpop.eup %3643  ;;  %3669 = vtanh.f32 %v2271_v61  ;;  %v2168_v48 = vadd.f32 %v2167_v62, %v1554_v37  ;;  %v5357_v34 = vpop.f32.mrf.mxu1  ;;  %v5366_v61 = vld [vmem:[#allocation3 + $0x10] sm:$0xff]  ;;  %v5372_v62 = vld [vmem:[%s5133_s30 + $0x58] sm:$0xff] }
 0x24c   : > { %v3646_v50 = vpop.eup %3645  ;;  %3671 = vrcp.f32 %v2791_v22  ;;  %v2792_v24 = vadd.f32 1.0, %v3644_v13  ;;  %v2169_v3 = vpop.f32.mrf.mxu0  ;;  %5982 = vst [vmem:[#allocation7_spill] sm:$0xff] %v5366_v61  ;;  %v2549_v37 = vld [vmem:[%s5865_s3 + $0x10] sm:$0xff]  ;;  %5983 = vst [vmem:[#allocation8_spill] sm:$0xff] %v5372_v62  ;;  %v2279_v22 = vadd.f32 %v5166_v23, %v2166_v32  ;;  %v5381_v13 = vld [vmem:[#allocation3 + $0x40] sm:$0xff] }
 0x24d   : > { %v5374_v19 = vpop.eup %3647  ;;  %v2795_v53 = vadd.f32 1.0, %v3646_v50  ;;  %3673 = vtanh.f32 %v2273_v25  ;;  %v2170_v2 = vadd.f32 %v2169_v3, %v1555_v55  ;;  %v5379_v42 = vpop.f32.mrf.mxu1  ;;  %5984 = vst [vmem:[#allocation9_spill] sm:$0xff] %v5381_v13  ;;  %v5391_v55 = vld [vmem:[#allocation3 + $0x70] sm:$0xff]  ;;  %v5397_v50 = vld [vmem:[%s5133_s30 + $0x68] sm:$0xff]  ;;  %v5403_v25 = vmul.f32 %v2549_v37, %v5366_v61  ;;  %v2558_v37 = vld [vmem:[%s5865_s3 + $0x58] sm:$0xff] }
 0x24e   : > { %v5386_v57 = vpop.eup %3649  ;;  %3675 = vrcp.f32 %v2792_v24  ;;  %v2173_v18 = vpop.f32.mrf.mxu0  ;;  %5985 = vst [vmem:[#allocation13_spill] sm:$0xff] %v5391_v55  ;;  %v2553_v32 = vld [vmem:[%s5865_s3 + $0x30] sm:$0xff]  ;;  %5986 = vst [vmem:[#allocation16_spill] sm:$0xff] %v5397_v50  ;;  %v2281_v24 = vadd.f32 %v5181_v60, %v2168_v48  ;;  %v5417_v48 = vmul.f32 %v2550_v51, %v5381_v13 }
 0x24f   : > { %v3652_v3 = vpop.eup %3651  ;;  %3677 = vrcp.f32 %v2795_v53  ;;  %v5400_v15 = vpop.f32.mrf.mxu1  ;;  %v2557_v23 = vld [vmem:[%s5865_s3 + $0x50] sm:$0xff]  ;;  %v2283_v31 = vadd.f32 %v5203_v20, %v2170_v2  ;;  %v5443_v2 = vmul.f32 %v2554_v47, %v5406_v0 }
 0x250   : > { %v5414_v56 = vpop.eup %3653  ;;  %v2796_v53 = vadd.f32 1.0, %v3652_v3  ;;  %3679 = vtanh.f32 %v2277_v40  ;;  %v2175_v60 = vpop.f32.mrf.mxu0  ;;  %v5429_v40 = vmul.f32 %v2553_v32, %v5391_v55  ;;  %v5446_v51 = vld [vmem:[#allocation3 + $0x50] sm:$0xff]  ;;  %v2562_v55 = vld [vmem:[%s5865_s3 + $0x78] sm:$0xff] }
 0x251   : > { %v3656_v21 = vpop.eup %3655  ;;  %3681 = vtanh.f32 %v2279_v22  ;;  %v2345_v3 = vpop.f32.mrf.mxu1  ;;  %5993 = vst [vmem:[#allocation31_spill] sm:$0xff] %v5443_v2  ;;  %5994 = vst [vmem:[#allocation32_spill] sm:$0xff] %v5446_v51  ;;  %v2693_v13 = vld [vmem:[%s5866_s4 + $0x10] sm:$0xff]  ;;  %v5462_v2 = vmul.f32 %v2558_v37, %v5425_v41  ;;  %v5472_v47 = vmul.f32 %v2562_v55, %v5446_v51  ;;  %v5997_v37 = vunpack.c.l.bf16 %v5292_v39  ;;  %v2899_v55 = vld [vmem:[%s5867_s5] sm:$0xff] }
 0x252   : > { %5991 = vst [vmem:[#allocation29_spill] sm:$0xff] %v5429_v40  ;;  %v5440_v62 = vpop.eup %3657  ;;  %3683 = vrcp.f32 %v2796_v53  ;;  %v2799_v20 = vadd.f32 1.0, %v3656_v21  ;;  %v2177_v22 = vpop.f32.mrf.mxu0  ;;  %v5457_v21 = vmul.f32 %v2557_v23, %v5420_v38  ;;  %v5465_v40 = vmul.f32 %v2561_v45, %v5435_v33 }
 0x253   : > { %v3660_v58 = vpop.eup %3659  ;;  %3685 = vtanh.f32 %v2281_v24  ;;  %v5454_v53 = vpop.f32.mrf.mxu1  ;;  %v5480_v45 = vadd.f32 %v5357_v34, %v5997_v37  ;;  %v6001_v37 = vunpack.c.l.bf16 %v5332_v1 }
 0x254   : > { %5995 = vst [vmem:[#allocation11_spill] sm:$0xff] %v5454_v53  ;;  %v3662_v50 = vpop.eup %3661  ;;  %3687 = vrcp.f32 %v2799_v20  ;;  %v2800_v0 = vadd.f32 1.0, %v3660_v58  ;;  %v2179_v29 = vpop.f32.mrf.mxu0  ;;  %v5996_v53 = vunpack.c.l.bf16 %v5300_v10  ;;  %v5475_v20 = vmul.f32 %v2693_v13, %v5366_v61 }
 0x255   : > { %v3664_v24 = vpop.eup %3663  ;;  %3689 = vtanh.f32 %v2283_v31  ;;  %v5469_v38 = vpop.f32.mrf.mxu1  ;;  %v2867_v32 = vmul.f32 %v3662_v50, %v5309_v4  ;;  %v5998_v13 = vunpack.c.h.bf16 %v5300_v10  ;;  %v2180_v34 = vadd.f32 %v2179_v29, %v6000_v59 }
 0x256   : > { %v2174_v23 = vadd.f32 %v2173_v18, %v5996_v53  ;;  %v3666_v58 = vpop.eup %3665  ;;  %3691 = vrcp.f32 %v2800_v0  ;;  %v2835_v31 = vmul.f32 %v3664_v24, %v5140_v14  ;;  %v2183_v18 = vpop.f32.mrf.mxu0  ;;  %v5999_v0 = vunpack.c.l.bf16 %v5315_v16 }
 0x257   : > { %v3668_v53 = vpop.eup %3667  ;;  %v2176_v61 = vadd.f32 %v2175_v60, %v5998_v13  ;;  %v2184_v14 = vadd.f32 %v2183_v18, %v6001_v37  ;;  %v5495_v24 = vpop.f32.mrf.mxu1  ;;  %v6002_v50 = vunpack.c.h.bf16 %v5292_v39  ;;  %v2868_v60 = vmul.f32 %v3666_v58, %v5324_v44  ;;  %v2900_v39 = vld [vmem:[%s5867_s5 + $0x8] sm:$0xff] }
 0x258   : > { %v2178_v51 = vadd.f32 %v2177_v22, %v5999_v0  ;;  %v3670_v4 = vpop.eup %3669  ;;  %v2883_v41 = vadd.f32 %v2867_v32, %v2835_v31  ;;  %v2836_v10 = vmul.f32 %v3668_v53, %v5148_v6  ;;  %v2185_v22 = vpop.f32.mrf.mxu0  ;;  %v2287_v16 = vadd.f32 %v5224_v36, %v2174_v23 }
 0x259   : > { %v5500_v33 = vadd.f32 %v5379_v42, %v6002_v50  ;;  %v3672_v13 = vpop.eup %3671  ;;  %v6003_v59 = vunpack.c.l.bf16 %v5307_v54  ;;  %v6004_v42 = vunpack.c.h.bf16 %v5307_v54  ;;  %v6005_v6 = vunpack.c.h.bf16 %v5332_v1  ;;  %v5519_v58 = vpop.f32.mrf.mxu1  ;;  %v2903_v1 = vld [vmem:[%s5867_s5 + $0x20] sm:$0xff] }
 0x25a   : > { %v3674_v31 = vpop.eup %3673  ;;  %v2915_v36 = vmul.f32 %v2899_v55, %v2883_v41  ;;  %3075 = vst [vmem:[#allocation3 + $0x28] sm:$0xff] %v2883_v41  ;;  %v2884_v23 = vadd.f32 %v2868_v60, %v2836_v10  ;;  %v2871_v18 = vmul.f32 %v3670_v4, %v5337_v12  ;;  %v2187_v53 = vpop.f32.mrf.mxu0  ;;  %v2289_v37 = vadd.f32 %v5246_v46, %v2176_v61 }
 0x25b   : > { %v5508_v29 = vadd.f32 %v5400_v15, %v6003_v59  ;;  %v5515_v32 = vadd.f32 %v2345_v3, %v6004_v42  ;;  %v2186_v44 = vadd.f32 %v2185_v22, %v6005_v6  ;;  %v2839_v15 = vmul.f32 %v3672_v13, %v5154_v30  ;;  %v3676_v0 = vpop.eup %3675  ;;  %v5532_v50 = vpop.f32.mrf.mxu1 }
 0x25c   : > { %v2291_v54 = vadd.f32 %v5264_v35, %v2178_v51  ;;  %v2293_v3 = vadd.f32 %v5274_v63, %v2180_v34  ;;  %v5530_v55 = vadd.f32 %v5283_v9, %v2184_v14  ;;  %v3678_v30 = vpop.eup %3677  ;;  %v2931_v10 = vadd.f32 %v2915_v36, %v2287_v16  ;;  %3076 = vst [vmem:[#allocation3 + $0x68] sm:$0xff] %v2884_v23  ;;  %v2189_v46 = vpop.f32.mrf.mxu0  ;;  %v2907_v36 = vld [vmem:[%s5867_s5 + $0x40] sm:$0xff] }
 0x25d   : > { %3693 = vtanh.f32 %v2883_v41  ;;  %v2916_v12 = vmul.f32 %v2900_v39, %v2884_v23  ;;  %v2887_v4 = vadd.f32 %v2871_v18, %v2839_v15  ;;  %v3680_v61 = vpop.eup %3679  ;;  %v2840_v35 = vmul.f32 %v3676_v0, %v5160_v7  ;;  %v5538_v9 = vpop.f32.mrf.mxu1  ;;  %v2904_v41 = vld [vmem:[%s5867_s5 + $0x28] sm:$0xff] }
 0x25e   : > { %v2872_v51 = vmul.f32 %v3674_v31, %v5351_v5  ;;  %v2843_v60 = vmul.f32 %v3678_v30, %v5171_v27  ;;  %v2299_v63 = vadd.f32 %v5297_v28, %v2186_v44  ;;  %v3682_v34 = vpop.eup %3681  ;;  %v3395_v14 = vmul.f32 -1.442695, %v2931_v10  ;;  %v2452_v59 = vpop.f32.mrf.mxu0 }
 0x25f   : > { %v2932_v22 = vadd.f32 %v2916_v12, %v2289_v37  ;;  %v2919_v13 = vmul.f32 %v2903_v1, %v2887_v4  ;;  %3079 = vst [vmem:[#allocation3 + $0x48] sm:$0xff] %v2887_v4  ;;  %v6006_v16 = vunpack.c.l.bf16 %v5349_v8  ;;  %v3684_v5 = vpop.eup %3683  ;;  %3695 = vtanh.f32 %v2884_v23  ;;  %v5547_v42 = vpop.f32.mrf.mxu1 }
 0x260   : > { %v2888_v27 = vadd.f32 %v2872_v51, %v2840_v35  ;;  %v2875_v28 = vmul.f32 %v3680_v61, %v5374_v19  ;;  %v2876_v39 = vmul.f32 %v3682_v34, %v5386_v57  ;;  %v3686_v6 = vpop.eup %3685  ;;  %3697 = vpow2.f32 %v3395_v14  ;;  %v2454_v18 = vpop.f32.mrf.mxu0  ;;  %v2908_v57 = vld [vmem:[%s5867_s5 + $0x48] sm:$0xff]  ;;  %v2911_v35 = vld [vmem:[%s5867_s5 + $0x60] sm:$0xff] }
 0x261   : > { %v2188_v7 = vadd.f32 %v2187_v53, %v6006_v16  ;;  %v3396_v44 = vmul.f32 -1.442695, %v2932_v22  ;;  %v2935_v31 = vadd.f32 %v2919_v13, %v2291_v54  ;;  %v2844_v15 = vmul.f32 %v3684_v5, %v5176_v52  ;;  %v3688_v53 = vpop.eup %3687  ;;  %v5557_v37 = vpop.f32.mrf.mxu1 }
 0x262   : > { %3699 = vtanh.f32 %v2887_v4  ;;  %v2920_v23 = vmul.f32 %v2904_v41, %v2888_v27  ;;  %3080 = vst [vmem:[#allocation3 + $0x30] sm:$0xff] %v2888_v27  ;;  %v2891_v19 = vadd.f32 %v2875_v28, %v2843_v60  ;;  %v2879_v0 = vmul.f32 %v3686_v6, %v5414_v56  ;;  %v3690_v54 = vpop.eup %3689  ;;  %v2456_v10 = vpop.f32.mrf.mxu0 }
 0x263   : > { %3701 = vpow2.f32 %v3396_v44  ;;  %v3399_v1 = vmul.f32 -1.442695, %v2935_v31  ;;  %v2892_v30 = vadd.f32 %v2876_v39, %v2844_v15  ;;  %v2847_v52 = vmul.f32 %v3688_v53, %v5183_v17  ;;  %v3692_v12 = vpop.eup %3691  ;;  %v5565_v60 = vpop.f32.mrf.mxu1 }
 0x264   : > { %v2936_v4 = vadd.f32 %v2920_v23, %v2293_v3  ;;  %3703 = vtanh.f32 %v2888_v27  ;;  %v2923_v61 = vmul.f32 %v2907_v36, %v2891_v19  ;;  %3083 = vst [vmem:[#allocation3 + $0x20] sm:$0xff] %v2891_v19  ;;  %v6007_v56 = vunpack.c.h.bf16 %v5349_v8  ;;  %v2458_v22 = vpop.f32.mrf.mxu0  ;;  %v2912_v27 = vld [vmem:[%s5867_s5 + $0x68] sm:$0xff] }
 0x265   : > { %3705 = vpow2.f32 %v3399_v1  ;;  %v2924_v34 = vmul.f32 %v2908_v57, %v2892_v30  ;;  %3084 = vst [vmem:[#allocation3 + $0x78] sm:$0xff] %v2892_v30  ;;  %v2895_v14 = vadd.f32 %v2879_v0, %v2847_v52  ;;  %v2848_v17 = vmul.f32 %v3692_v12, %v5189_v11  ;;  %v5570_v16 = vpop.f32.mrf.mxu1 }
 0x266   : > { %v2190_v51 = vadd.f32 %v2189_v46, %v6007_v56  ;;  %v3400_v3 = vmul.f32 -1.442695, %v2936_v4  ;;  %v2939_v13 = vadd.f32 %v2923_v61, %v5530_v55  ;;  %3707 = vtanh.f32 %v2891_v19  ;;  %v2462_v11 = vpop.f32.mrf.mxu0 }
 0x267   : > { %v2880_v41 = vmul.f32 %v3690_v54, %v5440_v62  ;;  %v2940_v5 = vadd.f32 %v2924_v34, %v2299_v63  ;;  %3709 = vtanh.f32 %v2892_v30  ;;  %v2301_v8 = vadd.f32 %v5321_v43, %v2188_v7  ;;  %3087 = vst [vmem:[#allocation3] sm:$0xff] %v2895_v14  ;;  %v5577_v6 = vpop.f32.mrf.mxu1  ;;  %v6010_v30 = vld [vmem:[#allocation29_spill] sm:$0xff] }
 0x268   : > { %v2927_v46 = vmul.f32 %v2911_v35, %v2895_v14  ;;  %3711 = vpow2.f32 %v3400_v3  ;;  %v3403_v28 = vmul.f32 -1.442695, %v2939_v13  ;;  %v2453_v55 = vadd.f32 %v2452_v59, %v5480_v45  ;;  %v2464_v43 = vpop.f32.mrf.mxu0 }
 0x269   : > { %v2896_v39 = vadd.f32 %v2880_v41, %v2848_v17  ;;  %v3404_v62 = vmul.f32 -1.442695, %v2940_v5  ;;  %3713 = vtanh.f32 %v2895_v14  ;;  %v2455_v63 = vadd.f32 %v2454_v18, %v5500_v33  ;;  %v5584_v53 = vpop.f32.mrf.mxu1  ;;  %v6009_v18 = vld [vmem:[#allocation11_spill] sm:$0xff] }
 0x26a   : > { %v2943_v44 = vadd.f32 %v2927_v46, %v2301_v8  ;;  %v5580_v7 = vpop.eup %3693  ;;  %3715 = vpow2.f32 %v3403_v28  ;;  %v2303_v31 = vadd.f32 %v5345_v49, %v2190_v51  ;;  %v2581_v15 = vadd.f32 %v5403_v25, %v2453_v55  ;;  %v2466_v19 = vpop.f32.mrf.mxu0  ;;  %v6012_v17 = vld [vmem:[#allocation31_spill] sm:$0xff] }
 0x26b   : > { %v2928_v36 = vmul.f32 %v2912_v27, %v2896_v39  ;;  %3088 = vst [vmem:[#allocation3 + $0x8] sm:$0xff] %v2896_v39  ;;  %3717 = vpow2.f32 %v3404_v62  ;;  %v2582_v59 = vadd.f32 %v5417_v48, %v2455_v63  ;;  %v2457_v23 = vadd.f32 %v2456_v10, %v5508_v29  ;;  %v5591_v54 = vpop.f32.mrf.mxu1 }
 0x26c   : > { %v3407_v45 = vmul.f32 -1.442695, %v2943_v44  ;;  %v6008_v33 = vunpack.c.l.bf16 %v5318_v26  ;;  %3719 = vtanh.f32 %v2896_v39  ;;  %v3365_v49 = vmul.f32 -1.442695, %v2581_v15  ;;  %v5593_v1 = vpop.eup %3695  ;;  %v2468_v12 = vpop.f32.mrf.mxu0  ;;  %v6016_v15 = vld [vmem:[#allocation5_spill] sm:$0xff] }
 0x26d   : > { %v2944_v0 = vadd.f32 %v2928_v36, %v2303_v31  ;;  %v3366_v25 = vmul.f32 -1.442695, %v2582_v59  ;;  %v2585_v52 = vadd.f32 %v6010_v30, %v2457_v23  ;;  %v2459_v48 = vadd.f32 %v2458_v22, %v5515_v32  ;;  %v3698_v29 = vpop.eup %3697  ;;  %v5600_v56 = vpop.f32.mrf.mxu1  ;;  %v6013_v22 = vld [vmem:[#allocation6_spill] sm:$0xff] }
 0x26e   : > { %v2350_v57 = vadd.f32 %v6009_v18, %v6008_v33  ;;  %3721 = vpow2.f32 %v3407_v45  ;;  %v6011_v10 = vunpack.c.h.bf16 %v5318_v26  ;;  %v2995_v34 = vadd.f32 1.0, %v3698_v29  ;;  %v2472_v13 = vpop.f32.mrf.mxu0  ;;  %v2697_v33 = vld [vmem:[%s5866_s4 + $0x30] sm:$0xff] }
 0x26f   : > { %v3408_v61 = vmul.f32 -1.442695, %v2944_v0  ;;  %3723 = vpow2.f32 %v3365_v49  ;;  %v5602_v51 = vpop.eup %3699  ;;  %v3369_v14 = vmul.f32 -1.442695, %v2585_v52  ;;  %v2586_v3 = vadd.f32 %v6012_v17, %v2459_v48  ;;  %v5609_v8 = vpop.f32.mrf.mxu1 }
 0x270   : > { %v2352_v4 = vadd.f32 %v5469_v38, %v6011_v10  ;;  %v2463_v35 = vadd.f32 %v2462_v11, %v2350_v57  ;;  %3725 = vpow2.f32 %v3366_v25  ;;  %v3702_v32 = vpop.eup %3701  ;;  %v6014_v41 = vunpack.c.l.bf16 %v6013_v22  ;;  %v2474_v55 = vpop.f32.mrf.mxu0  ;;  %v6018_v57 = vld [vmem:[#allocation9_spill] sm:$0xff] }
 0x271   : > { %3727 = vpow2.f32 %v3408_v61  ;;  %v5611_v46 = vpop.eup %3703  ;;  %v2996_v27 = vadd.f32 1.0, %v3702_v32  ;;  %v6015_v11 = vunpack.c.h.bf16 %v6013_v22  ;;  %v3370_v39 = vmul.f32 -1.442695, %v2586_v3  ;;  %v6021_v3 = vld [vmem:[#allocation8_spill] sm:$0xff]  ;;  %v6023_v32 = vld [vmem:[#allocation17_spill] sm:$0xff] }
 0x272   : > { %v2354_v26 = vadd.f32 %v5495_v24, %v6014_v41  ;;  %v2589_v38 = vadd.f32 %v5457_v21, %v2463_v35  ;;  %v2465_v5 = vadd.f32 %v2464_v43, %v2352_v4  ;;  %3729 = vrcp.f32 %v2995_v34  ;;  %v2694_v24 = vld [vmem:[%s5866_s4 + $0x18] sm:$0xff]  ;;  %v3706_v62 = vpop.eup %3705  ;;  %v5620_v43 = vpop.f32.mrf.mxu1  ;;  %v6020_v35 = vld [vmem:[#allocation13_spill] sm:$0xff] }
 0x273   : > { %v2356_v28 = vadd.f32 %v5519_v58, %v6015_v11  ;;  %3731 = vpow2.f32 %v3369_v14  ;;  %v5622_v31 = vpop.eup %3707  ;;  %v2999_v36 = vadd.f32 1.0, %v3706_v62  ;;  %v6017_v58 = vunpack.c.l.bf16 %v6016_v15  ;;  %v2476_v23 = vpop.f32.mrf.mxu0 }
 0x274   : > { %v3373_v21 = vmul.f32 -1.442695, %v2589_v38  ;;  %v2590_v44 = vadd.f32 %v5462_v2, %v2465_v5  ;;  %v2467_v63 = vadd.f32 %v2466_v19, %v2354_v26  ;;  %3733 = vrcp.f32 %v2996_v27  ;;  %v5630_v18 = vpop.eup %3709  ;;  %v5634_v49 = vpop.f32.mrf.mxu1  ;;  %v2702_v26 = vld [vmem:[%s5866_s4 + $0x58] sm:$0xff]  ;;  %v2705_v38 = vld [vmem:[%s5866_s4 + $0x70] sm:$0xff] }
 0x275   : > { %v2360_v45 = vadd.f32 %v5532_v50, %v6017_v58  ;;  %v2469_v59 = vadd.f32 %v2468_v12, %v2356_v28  ;;  %3735 = vpow2.f32 %v3370_v39  ;;  %v2710_v0 = vmul.f32 %v2694_v24, %v6018_v57  ;;  %v2698_v50 = vld [vmem:[%s5866_s4 + $0x38] sm:$0xff]  ;;  %v3712_v25 = vpop.eup %3711  ;;  %v2478_v29 = vpop.f32.mrf.mxu0 }
 0x276   : > { %v3374_v2 = vmul.f32 -1.442695, %v2590_v44  ;;  %v2593_v19 = vadd.f32 %v5465_v40, %v2467_v63  ;;  %3737 = vrcp.f32 %v2999_v36  ;;  %v6019_v30 = vunpack.c.h.bf16 %v6016_v15  ;;  %v2701_v40 = vld [vmem:[%s5866_s4 + $0x50] sm:$0xff]  ;;  %v5646_v10 = vpop.eup %3713  ;;  %v5649_v14 = vpop.f32.mrf.mxu1 }
 0x277   : > { %v2594_v48 = vadd.f32 %v5472_v47, %v2469_v59  ;;  %v2473_v12 = vadd.f32 %v2472_v13, %v2360_v45  ;;  %v3000_v4 = vadd.f32 1.0, %v3712_v25  ;;  %3739 = vpow2.f32 %v3373_v21  ;;  %v3716_v17 = vpop.eup %3715  ;;  %v2482_v41 = vpop.f32.mrf.mxu0  ;;  %v6026_v45 = vld [vmem:[#allocation26_spill] sm:$0xff] }
 0x278   : > { %v2362_v52 = vadd.f32 %v5538_v9, %v6019_v30  ;;  %v3377_v61 = vmul.f32 -1.442695, %v2593_v19  ;;  %v2713_v34 = vmul.f32 %v2697_v33, %v6020_v35  ;;  %v6022_v9 = vunpack.c.l.bf16 %v6021_v3  ;;  %v3718_v5 = vpop.eup %3717  ;;  %v5661_v28 = vpop.f32.mrf.mxu1  ;;  %v6027_v33 = vld [vmem:[#allocation10_spill] sm:$0xff] }
 0x279   : > { %3741 = vpow2.f32 %v3374_v2  ;;  %v2714_v22 = vmul.f32 %v2698_v50, %v6023_v32  ;;  %v3003_v27 = vadd.f32 1.0, %v3716_v17  ;;  %v3378_v11 = vmul.f32 -1.442695, %v2594_v48  ;;  %v2484_v44 = vpop.f32.mrf.mxu0 }
 0x27a   : > { %v2364_v47 = vadd.f32 %v5547_v42, %v6022_v9  ;;  %v2475_v13 = vadd.f32 %v2474_v55, %v2362_v52  ;;  %3743 = vrcp.f32 %v3000_v4  ;;  %v6024_v42 = vld [vmem:[#allocation28_spill] sm:$0xff]  ;;  %v5666_v55 = vpop.eup %3719  ;;  %v3004_v24 = vadd.f32 1.0, %v3718_v5  ;;  %v5672_v58 = vpop.f32.mrf.mxu1 }
 0x27b   : > { %v5664_v39 = vmul.f32 %v2701_v40, %v6024_v42  ;;  %3745 = vpow2.f32 %v3377_v61  ;;  %v2725_v62 = vadd.f32 %v5475_v20, %v2473_v12  ;;  %v3722_v63 = vpop.eup %3721  ;;  %v6025_v36 = vunpack.c.h.bf16 %v6021_v3  ;;  %v6028_v20 = vld [vmem:[#allocation16_spill] sm:$0xff]  ;;  %v2486_v52 = vpop.f32.mrf.mxu0 }
 0x27c   : > { %v2477_v21 = vadd.f32 %v2476_v23, %v2364_v47  ;;  %3747 = vrcp.f32 %v3003_v27  ;;  %v2718_v59 = vmul.f32 %v2702_v26, %v6026_v45  ;;  %v5676_v2 = vmul.f32 %v2705_v38, %v6027_v33  ;;  %v3724_v19 = vpop.eup %3723  ;;  %v5685_v61 = vpop.f32.mrf.mxu1  ;;  %v2706_v42 = vld [vmem:[%s5866_s4 + $0x78] sm:$0xff] }
 0x27d   : > { %v2366_v15 = vadd.f32 %v5557_v37, %v6025_v36  ;;  %3749 = vrcp.f32 %v3004_v24  ;;  %v3007_v50 = vadd.f32 1.0, %v3722_v63  ;;  %v6029_v23 = vunpack.c.l.bf16 %v6028_v20  ;;  %v3726_v48 = vpop.eup %3725  ;;  %v2488_v32 = vpop.f32.mrf.mxu0 }
 0x27e   : > { %v2726_v30 = vadd.f32 %v2710_v0, %v2475_v13  ;;  %v2645_v12 = vadd.f32 1.0, %v3724_v19  ;;  %v6030_v37 = vunpack.c.h.bf16 %v6028_v20  ;;  %3751 = vpow2.f32 %v3378_v11  ;;  %v3728_v17 = vpop.eup %3727  ;;  %v6031_v0 = vld [vmem:[#allocation20_spill] sm:$0xff]  ;;  %v5695_v38 = vpop.f32.mrf.mxu1 }
 0x27f   : > { %v2370_v25 = vadd.f32 %v5565_v60, %v6029_v23  ;;  %v2479_v4 = vadd.f32 %v2478_v29, %v2366_v15  ;;  %3753 = vrcp.f32 %v3007_v50  ;;  %v2646_v3 = vadd.f32 1.0, %v3726_v48  ;;  %v3730_v26 = vpop.eup %3729  ;;  %v5711_v33 = vpop.f32.mrf.mxu0 }
 0x280   : > { %v2372_v40 = vadd.f32 %v5570_v16, %v6030_v37  ;;  %v3381_v9 = vmul.f32 -1.442695, %v2725_v62  ;;  %v2729_v47 = vadd.f32 %v2713_v34, %v2477_v21  ;;  %v3008_v60 = vadd.f32 1.0, %v3728_v17  ;;  %v3732_v5 = vpop.eup %3731  ;;  %v5704_v63 = vpop.f32.mrf.mxu1 }
 0x281   : > { %3755 = vrcp.f32 %v2645_v12  ;;  %v6032_v16 = vunpack.c.l.bf16 %v6031_v0  ;;  %v2483_v13 = vadd.f32 %v2482_v41, %v2370_v25  ;;  %v3059_v34 = vmul.f32 %v3730_v26, %v5580_v7  ;;  %v3734_v24 = vpop.eup %3733 }
 0x282   : > { %3757 = vrcp.f32 %v2646_v3  ;;  %v3382_v27 = vmul.f32 -1.442695, %v2726_v30  ;;  %v2485_v11 = vadd.f32 %v2484_v44, %v2372_v40  ;;  %v2649_v62 = vadd.f32 1.0, %v3732_v5  ;;  %v3736_v36 = vpop.eup %3735  ;;  %v5709_v44 = vld [vmem:[%s5133_s30 + $0x88] sm:$0xff]  ;;  %v5715_v23 = vpop.f32.mrf.mxu1 }
 0x283   : > { %v2374_v29 = vadd.f32 %v5577_v6, %v6032_v16  ;;  %3759 = vrcp.f32 %v3008_v60  ;;  %v6033_v6 = vunpack.c.h.bf16 %v6031_v0  ;;  %v2730_v21 = vadd.f32 %v2714_v22, %v2479_v4  ;;  %3094 = vst [vmem:[%s5690_s23] sm:$0xff] %v3059_v34  ;;  %3110 = vst [vmem:[#allocation2 + $0x30] sm:$0xff] %v3059_v34  ;;  %v3738_v19 = vpop.eup %3737  ;;  %v6034_v22 = vld [vmem:[#allocation32_spill] sm:$0xff] }
 0x284   : > { %v3060_v7 = vmul.f32 %v3734_v24, %v5593_v1  ;;  %3761 = vpow2.f32 %v3381_v9  ;;  %v3385_v15 = vmul.f32 -1.442695, %v2729_v47  ;;  %v2650_v50 = vadd.f32 1.0, %v3736_v36  ;;  %v3740_v25 = vpop.eup %3739  ;;  %v5720_v40 = vpop.f32.mrf.mxu1  ;;  %v1497_v9 = vld [vmem:[%s5133_s30 + $0x98] sm:$0xff] }
 0x285   : > { %v2376_v41 = vadd.f32 %v5584_v53, %v6033_v6  ;;  %v2487_v45 = vadd.f32 %v2486_v52, %v2374_v29  ;;  %3763 = vrcp.f32 %v2649_v62  ;;  %v2733_v53 = vadd.f32 %v5664_v39, %v2483_v13  ;;  %v1499_v62 = vld [vmem:[%s5133_s30 + $0xa8] sm:$0xff] }
 0x286   : > { %v2722_v20 = vmul.f32 %v2706_v42, %v6034_v22  ;;  %3095 = vst [vmem:[%s5690_s23 + $0x8] sm:$0xff] %v3060_v7  ;;  %3111 = vst [vmem:[#allocation2] sm:$0xff] %v3060_v7  ;;  %v3063_v1 = vmul.f32 %v3738_v19, %v5602_v51  ;;  %3765 = vpow2.f32 %v3382_v27  ;;  %v2734_v30 = vadd.f32 %v2718_v59, %v2485_v11  ;;  %v3742_v48 = vpop.eup %3741  ;;  %v2494_v59 = vpop.f32.mrf.mxu0 }
 0x287   : > { %v2489_v52 = vadd.f32 %v2488_v32, %v2376_v41  ;;  %3767 = vrcp.f32 %v2650_v50  ;;  %v2653_v12 = vadd.f32 1.0, %v3740_v25  ;;  %v1544_v37 = vunpack.c.l.bf16 %v5709_v44  ;;  %v3744_v4 = vpop.eup %3743  ;;  %v5727_v0 = vpop.f32.mrf.mxu1  ;;  %v1501_v50 = vld [vmem:[%s5133_s30 + $0xb8] sm:$0xff] }
 0x288   : > { %v3386_v39 = vmul.f32 -1.442695, %v2730_v21  ;;  %3098 = vst [vmem:[%s5690_s23 + $0x20] sm:$0xff] %v3063_v1  ;;  %3114 = vst [vmem:[#allocation2 + $0x50] sm:$0xff] %v3063_v1  ;;  %v2654_v17 = vadd.f32 1.0, %v3742_v48  ;;  %v1545_v3 = vunpack.c.h.bf16 %v5709_v44  ;;  %3769 = vpow2.f32 %v3385_v15  ;;  %v3746_v47 = vpop.eup %3745  ;;  %v2496_v41 = vpop.f32.mrf.mxu0 }
 0x289   : > { %v2737_v51 = vadd.f32 %v5676_v2, %v2487_v45  ;;  %v3064_v32 = vmul.f32 %v3744_v4, %v5611_v46  ;;  %3771 = vrcp.f32 %v2653_v12  ;;  %v3389_v26 = vmul.f32 -1.442695, %v2733_v53  ;;  %v3748_v16 = vpop.eup %3747  ;;  %v5731_v46 = vpop.f32.mrf.mxu1 }
 0x28a   : > { %v2738_v60 = vadd.f32 %v2722_v20, %v2489_v52  ;;  %3773 = vrcp.f32 %v2654_v17  ;;  %v2657_v29 = vadd.f32 1.0, %v3746_v47  ;;  %v3390_v13 = vmul.f32 -1.442695, %v2734_v30  ;;  %v3750_v5 = vpop.eup %3749  ;;  %v2498_v1 = vpop.f32.mrf.mxu0 }
 0x28b   : > { %3099 = vst [vmem:[%s5690_s23 + $0x28] sm:$0xff] %v3064_v32  ;;  %3115 = vst [vmem:[#allocation2 + $0x68] sm:$0xff] %v3064_v32  ;;  %v3067_v2 = vmul.f32 %v3748_v16, %v5622_v31  ;;  %v1548_v34 = vunpack.c.l.bf16 %v1497_v9  ;;  %v1549_v27 = vunpack.c.h.bf16 %v1497_v9  ;;  %3775 = vpow2.f32 %v3386_v39  ;;  %v3752_v11 = vpop.eup %3751  ;;  %v5738_v44 = vpop.f32.mrf.mxu1 }
 0x28c   : > { %v3068_v42 = vmul.f32 %v3750_v5, %v5630_v18  ;;  %3777 = vrcp.f32 %v2657_v29  ;;  %v2380_v24 = vadd.f32 %v5591_v54, %v1544_v37  ;;  %v3393_v6 = vmul.f32 -1.442695, %v2737_v51  ;;  %v3754_v21 = vpop.eup %3753 }
 0x28d   : > { %3102 = vst [vmem:[%s5690_s23 + $0x40] sm:$0xff] %v3067_v2  ;;  %3118 = vst [vmem:[#allocation2 + $0x40] sm:$0xff] %v3067_v2  ;;  %v2658_v31 = vadd.f32 1.0, %v3752_v11  ;;  %v2382_v36 = vadd.f32 %v5600_v56, %v1545_v3  ;;  %3779 = vpow2.f32 %v3389_v26  ;;  %v3394_v7 = vmul.f32 -1.442695, %v2738_v60  ;;  %v2502_v22 = vpop.f32.mrf.mxu1 }
 0x28e   : > { %v5740_v15 = vpop.eup %3755  ;;  %3103 = vst [vmem:[%s5690_s23 + $0x48] sm:$0xff] %v3068_v42  ;;  %3119 = vst [vmem:[#allocation2 + $0x20] sm:$0xff] %v3068_v42  ;;  %v3071_v54 = vmul.f32 %v3754_v21, %v5646_v10  ;;  %3781 = vpow2.f32 %v3390_v13  ;;  %v2493_v18 = vadd.f32 %v5711_v33, %v2380_v24  ;;  %v2384_v19 = vadd.f32 %v5609_v8, %v1548_v34  ;;  %v1503_v21 = vld [vmem:[%s5133_s30 + $0xc8] sm:$0xff] }
 0x28f   : > { %v5745_v45 = vpop.eup %3757  ;;  %3783 = vrcp.f32 %v2658_v31  ;;  %v1552_v56 = vunpack.c.l.bf16 %v1499_v62  ;;  %v2495_v53 = vadd.f32 %v2494_v59, %v2382_v36  ;;  %v1553_v25 = vunpack.c.h.bf16 %v1499_v62  ;;  %v2504_v48 = vpop.f32.mrf.mxu1 }
 0x290   : > { %v3760_v20 = vpop.eup %3759  ;;  %3106 = vst [vmem:[%s5690_s23 + $0x60] sm:$0xff] %v3071_v54  ;;  %3122 = vst [vmem:[#allocation2 + $0x60] sm:$0xff] %v3071_v54  ;;  %3785 = vpow2.f32 %v3393_v6  ;;  %v2386_v33 = vadd.f32 %v5620_v43, %v1549_v27  ;;  %v2497_v52 = vadd.f32 %v2496_v41, %v2384_v19  ;;  %v1556_v37 = vunpack.c.l.bf16 %v1501_v50 }
 0x291   : > { %v3762_v10 = vpop.eup %3761  ;;  %v3072_v30 = vmul.f32 %v3760_v20, %v5666_v55  ;;  %3787 = vpow2.f32 %v3394_v7  ;;  %v2390_v4 = vadd.f32 %v5634_v49, %v1552_v56  ;;  %v2506_v3 = vpop.f32.mrf.mxu1  ;;  %v2392_v55 = vadd.f32 %v5649_v14, %v1553_v25  ;;  %v1505_v56 = vld [vmem:[%s5133_s30 + $0xd8] sm:$0xff] }
 0x292   : > { %v5752_v8 = vpop.eup %3763  ;;  %v2789_v12 = vadd.f32 1.0, %v3762_v10  ;;  %3789 = vtanh.f32 %v2493_v18  ;;  %v2499_v17 = vadd.f32 %v2498_v1, %v2386_v33  ;;  %v1557_v59 = vunpack.c.h.bf16 %v1501_v50  ;;  %v6035_v33 = vld [vmem:[#allocation7_spill] sm:$0xff] }
 0x293   : > { %v3766_v39 = vpop.eup %3765  ;;  %3107 = vst [vmem:[%s5690_s23 + $0x68] sm:$0xff] %v3072_v30  ;;  %3123 = vst [vmem:[#allocation2 + $0x70] sm:$0xff] %v3072_v30  ;;  %3791 = vtanh.f32 %v2495_v53  ;;  %v2503_v47 = vadd.f32 %v2502_v22, %v2390_v4  ;;  %v2508_v32 = vpop.f32.mrf.mxu1  ;;  %v2394_v49 = vadd.f32 %v5661_v28, %v1556_v37  ;;  %v2505_v16 = vadd.f32 %v2504_v48, %v2392_v55  ;;  %v1507_v53 = vld [vmem:[%s5133_s30 + $0xe8] sm:$0xff]  ;;  %v5777_v30 = vld [vmem:[%s5133_s30 + $0xf8] sm:$0xff] }
 0x294   : > { %v5756_v9 = vpop.eup %3767  ;;  %3793 = vrcp.f32 %v2789_v12  ;;  %v2790_v43 = vadd.f32 1.0, %v3766_v39  ;;  %v2396_v27 = vadd.f32 %v5672_v58, %v1557_v59  ;;  %v1560_v18 = vunpack.c.l.bf16 %v1503_v21 }
 0x295   : > { %v3770_v51 = vpop.eup %3769  ;;  %3795 = vtanh.f32 %v2497_v52  ;;  %v2512_v13 = vpop.f32.mrf.mxu1  ;;  %v2507_v14 = vadd.f32 %v2506_v3, %v2394_v49  ;;  %v1561_v25 = vunpack.c.h.bf16 %v1503_v21  ;;  %v1564_v10 = vunpack.c.l.bf16 %v1505_v56  ;;  %v2901_v3 = vld [vmem:[%s5867_s5 + $0x10] sm:$0xff] }
 0x296   : > { %v5759_v26 = vpop.eup %3771  ;;  %3797 = vrcp.f32 %v2790_v43  ;;  %v2793_v60 = vadd.f32 1.0, %v3770_v51  ;;  %v2509_v62 = vadd.f32 %v2508_v32, %v2396_v27  ;;  %v2400_v37 = vadd.f32 %v5685_v61, %v1560_v18 }
 0x297   : > { %v5762_v29 = vpop.eup %3773  ;;  %3799 = vtanh.f32 %v2499_v17  ;;  %v5767_v11 = vpop.f32.mrf.mxu1  ;;  %v1565_v39 = vunpack.c.h.bf16 %v1505_v56  ;;  %v1568_v4 = vunpack.c.l.bf16 %v1507_v53  ;;  %v1569_v17 = vunpack.c.h.bf16 %v1507_v53  ;;  %v2906_v56 = vld [vmem:[%s5867_s5 + $0x38] sm:$0xff] }
 0x298   : > { %v3776_v5 = vpop.eup %3775  ;;  %3801 = vrcp.f32 %v2793_v60  ;;  %v2402_v32 = vadd.f32 %v5695_v38, %v1561_v25  ;;  %v1572_v61 = vunpack.c.l.bf16 %v5777_v30  ;;  %v1573_v60 = vunpack.c.h.bf16 %v5777_v30 }
 0x299   : > { %v5764_v2 = vpop.eup %3777  ;;  %v2794_v34 = vadd.f32 1.0, %v3776_v5  ;;  %3803 = vtanh.f32 %v2503_v47  ;;  %v2516_v31 = vpop.f32.mrf.mxu1  ;;  %v2513_v49 = vadd.f32 %v2512_v13, %v2400_v37  ;;  %v2404_v27 = vadd.f32 %v5704_v63, %v1564_v10 }
 0x29a   : > { %v3780_v42 = vpop.eup %3779  ;;  %3805 = vtanh.f32 %v2505_v16  ;;  %v2902_v16 = vld [vmem:[%s5867_s5 + $0x18] sm:$0xff]  ;;  %v2406_v13 = vadd.f32 %v5715_v23, %v1565_v39  ;;  %v2515_v21 = vadd.f32 %v5767_v11, %v2402_v32  ;;  %v2414_v53 = vadd.f32 %v5731_v46, %v1572_v61 }
 0x29b   : > { %v3782_v28 = vpop.eup %3781  ;;  %3807 = vrcp.f32 %v2794_v34  ;;  %v2797_v24 = vadd.f32 1.0, %v3780_v42  ;;  %v5774_v22 = vpop.f32.mrf.mxu1  ;;  %v2410_v42 = vadd.f32 %v5720_v40, %v1568_v4  ;;  %v3885_v40 = vld [vmem:[#allocation3 + $0x38] sm:$0xff] }
 0x29c   : > { %v5769_v6 = vpop.eup %3783  ;;  %v2798_v41 = vadd.f32 1.0, %v3782_v28  ;;  %3809 = vtanh.f32 %v2507_v14  ;;  %v2412_v28 = vadd.f32 %v5727_v0, %v1569_v17  ;;  %v2519_v46 = vadd.f32 %v5774_v22, %v2406_v13 }
 0x29d   : > { %v3786_v36 = vpop.eup %3785  ;;  %3811 = vrcp.f32 %v2797_v24  ;;  %v5789_v47 = vpop.f32.mrf.mxu1  ;;  %v2905_v24 = vld [vmem:[%s5867_s5 + $0x30] sm:$0xff] }
 0x29e   : > { %v3788_v58 = vpop.eup %3787  ;;  %3813 = vrcp.f32 %v2798_v41  ;;  %v2801_v7 = vadd.f32 1.0, %v3786_v36  ;;  %v2517_v36 = vadd.f32 %v2516_v31, %v2404_v27  ;;  %v2523_v22 = vadd.f32 %v5789_v47, %v2410_v42 }
 0x29f   : > { %v3790_v54 = vpop.eup %3789  ;;  %v2802_v19 = vadd.f32 1.0, %v3788_v58  ;;  %3815 = vtanh.f32 %v2509_v62  ;;  %v2524_v63 = vpop.f32.mrf.mxu1  ;;  %v2416_v47 = vadd.f32 %v5738_v44, %v1573_v60 }
 0x2a0   : > { %v3792_v50 = vpop.eup %3791  ;;  %3817 = vrcp.f32 %v2801_v7  ;;  %v2869_v48 = vmul.f32 %v3790_v54, %v5740_v15 }
 0x2a1   : > { %v3794_v20 = vpop.eup %3793  ;;  %3819 = vrcp.f32 %v2802_v19  ;;  %v2870_v59 = vmul.f32 %v3792_v50, %v5745_v45 }
 0x2a2   : > { %v3796_v1 = vpop.eup %3795  ;;  %v2837_v52 = vmul.f32 %v3794_v20, %v6035_v33 }
 0x2a3   : > { %v3798_v12 = vpop.eup %3797  ;;  %v2873_v38 = vmul.f32 %v3796_v1, %v5752_v8 }
 0x2a4   : > { %v3800_v43 = vpop.eup %3799  ;;  %v5785_v55 = vadd.f32 %v2869_v48, %v2837_v52  ;;  %v2838_v51 = vmul.f32 %v3798_v12, %v6018_v57  ;;  %v2909_v52 = vld [vmem:[%s5867_s5 + $0x50] sm:$0xff]  ;;  %v3887_v48 = vld [vmem:[#allocation3 + $0x58] sm:$0xff] }
 0x2a5   : > { %v3802_v15 = vpop.eup %3801  ;;  %v2874_v0 = vmul.f32 %v3800_v43, %v5756_v9  ;;  %v3886_v9 = vld [vmem:[#allocation3 + $0x18] sm:$0xff] }
 0x2a6   : > { %v3804_v5 = vpop.eup %3803  ;;  %v2917_v14 = vmul.f32 %v2901_v3, %v5785_v55  ;;  %3077 = vst [vmem:[#allocation3 + $0x10] sm:$0xff] %v5785_v55  ;;  %v5799_v57 = vadd.f32 %v2870_v59, %v2838_v51  ;;  %v2841_v45 = vmul.f32 %v3802_v15, %v6020_v35  ;;  %v3888_v59 = vld [vmem:[#allocation3 + $0x60] sm:$0xff] }
 0x2a7   : > { %v3806_v34 = vpop.eup %3805  ;;  %v2877_v7 = vmul.f32 %v3804_v5, %v5759_v26 }
 0x2a8   : > { %v3808_v62 = vpop.eup %3807  ;;  %v2933_v41 = vadd.f32 %v2917_v14, %v2513_v49  ;;  %v2918_v35 = vmul.f32 %v2902_v16, %v5799_v57  ;;  %3078 = vst [vmem:[#allocation3 + $0x40] sm:$0xff] %v5799_v57  ;;  %v5813_v8 = vadd.f32 %v2873_v38, %v2841_v45  ;;  %v2878_v50 = vmul.f32 %v3806_v34, %v5762_v29  ;;  %v2526_v29 = vpop.f32.mrf.mxu1  ;;  %v2913_v49 = vld [vmem:[%s5867_s5 + $0x70] sm:$0xff]  ;;  %v2914_v34 = vld [vmem:[%s5867_s5 + $0x78] sm:$0xff] }
 0x2a9   : > { %v3810_v23 = vpop.eup %3809  ;;  %v2842_v58 = vmul.f32 %v3885_v40, %v3808_v62  ;;  %v3889_v16 = vld [vmem:[#allocation3 + $0x50] sm:$0xff]  ;;  %v2525_v14 = vadd.f32 %v2524_v63, %v2412_v28  ;;  %v2527_v62 = vadd.f32 %v2526_v29, %v2414_v53 }
 0x2aa   : > { %v3812_v54 = vpop.eup %3811  ;;  %v3397_v18 = vmul.f32 -1.442695, %v2933_v41  ;;  %v2934_v19 = vadd.f32 %v2918_v35, %v2515_v21  ;;  %v2921_v11 = vmul.f32 %v2905_v24, %v5813_v8  ;;  %3081 = vst [vmem:[#allocation3 + $0x70] sm:$0xff] %v5813_v8  ;;  %v2881_v25 = vmul.f32 %v3810_v23, %v5764_v2  ;;  %v2910_v2 = vld [vmem:[%s5867_s5 + $0x58] sm:$0xff]  ;;  %v2528_v38 = vpop.f32.mrf.mxu1 }
 0x2ab   : > { %v3814_v31 = vpop.eup %3813  ;;  %v5824_v20 = vadd.f32 %v2874_v0, %v2842_v58  ;;  %v2845_v26 = vmul.f32 %v3886_v9, %v3812_v54  ;;  %v2529_v21 = vadd.f32 %v2528_v38, %v2416_v47 }
 0x2ac   : > { %v3816_v1 = vpop.eup %3815  ;;  %3821 = vpow2.f32 %v3397_v18  ;;  %v3398_v10 = vmul.f32 -1.442695, %v2934_v19  ;;  %v2937_v33 = vadd.f32 %v2921_v11, %v2517_v36  ;;  %v2846_v12 = vmul.f32 %v3887_v48, %v3814_v31 }
 0x2ad   : > { %v3818_v37 = vpop.eup %3817  ;;  %v2922_v39 = vmul.f32 %v2906_v56, %v5824_v20  ;;  %3082 = vst [vmem:[#allocation3 + $0x38] sm:$0xff] %v5824_v20  ;;  %v2893_v4 = vadd.f32 %v2877_v7, %v2845_v26  ;;  %v2882_v17 = vmul.f32 %v3816_v1, %v5769_v6 }
 0x2ae   : > { %v3820_v3 = vpop.eup %3819  ;;  %3823 = vpow2.f32 %v3398_v10  ;;  %v3401_v43 = vmul.f32 -1.442695, %v2937_v33  ;;  %v2894_v51 = vadd.f32 %v2878_v50, %v2846_v12  ;;  %v2849_v15 = vmul.f32 %v3888_v59, %v3818_v37 }
 0x2af   : > { %v2938_v32 = vadd.f32 %v2922_v39, %v2519_v46  ;;  %v2925_v61 = vmul.f32 %v2909_v52, %v2893_v4  ;;  %3085 = vst [vmem:[#allocation3 + $0x18] sm:$0xff] %v2893_v4  ;;  %v2850_v5 = vmul.f32 %v3889_v16, %v3820_v3 }
 0x2b0   : > { %3825 = vpow2.f32 %v3401_v43  ;;  %v2926_v6 = vmul.f32 %v2910_v2, %v2894_v51  ;;  %3086 = vst [vmem:[#allocation3 + $0x58] sm:$0xff] %v2894_v51  ;;  %v2897_v45 = vadd.f32 %v2881_v25, %v2849_v15 }
 0x2b1   : > { %v3402_v27 = vmul.f32 -1.442695, %v2938_v32  ;;  %v2941_v13 = vadd.f32 %v2925_v61, %v2523_v22  ;;  %v2898_v42 = vadd.f32 %v2882_v17, %v2850_v5 }
 0x2b2   : > { %v2942_v24 = vadd.f32 %v2926_v6, %v2525_v14  ;;  %v2929_v41 = vmul.f32 %v2913_v49, %v2897_v45  ;;  %3089 = vst [vmem:[#allocation3 + $0x60] sm:$0xff] %v2897_v45 }
 0x2b3   : > { %3827 = vpow2.f32 %v3402_v27  ;;  %v3405_v28 = vmul.f32 -1.442695, %v2941_v13  ;;  %v2930_v35 = vmul.f32 %v2914_v34, %v2898_v42  ;;  %3090 = vst [vmem:[#allocation3 + $0x50] sm:$0xff] %v2898_v42 }
 0x2b4   : > { %v3406_v63 = vmul.f32 -1.442695, %v2942_v24  ;;  %v2945_v23 = vadd.f32 %v2929_v41, %v2527_v62 }
 0x2b5   : > { %3829 = vpow2.f32 %v3405_v28  ;;  %v2946_v36 = vadd.f32 %v2930_v35, %v2529_v21 }
 0x2b6   : > { %3831 = vpow2.f32 %v3406_v63  ;;  %v3409_v30 = vmul.f32 -1.442695, %v2945_v23 }
 0x2b7   : > { %v3410_v40 = vmul.f32 -1.442695, %v2946_v36 }
 0x2b8   : > { %3833 = vpow2.f32 %v3409_v30 }
 0x2b9   : > { %v3822_v44 = vpop.eup %3821  ;;  %3835 = vpow2.f32 %v3410_v40 }
 0x2ba   : > { %v2997_v60 = vadd.f32 1.0, %v3822_v44  ;;  %3837 = vtanh.f32 %v5785_v55 }
 0x2bb   : > { %v3824_v58 = vpop.eup %3823  ;;  %3839 = vtanh.f32 %v5799_v57 }
 0x2bc   : > { %3841 = vrcp.f32 %v2997_v60  ;;  %v2998_v0 = vadd.f32 1.0, %v3824_v58 }
 0x2bd   : > { %v3826_v7 = vpop.eup %3825  ;;  %3843 = vtanh.f32 %v5813_v8 }
 0x2be   : > { %3845 = vrcp.f32 %v2998_v0  ;;  %v3001_v54 = vadd.f32 1.0, %v3826_v7 }
 0x2bf   : > { %3847 = vtanh.f32 %v5824_v20 }
 0x2c0   : > { %v3828_v18 = vpop.eup %3827  ;;  %3849 = vrcp.f32 %v3001_v54 }
 0x2c1   : > { %v3002_v19 = vadd.f32 1.0, %v3828_v18  ;;  %3851 = vtanh.f32 %v2893_v4 }
 0x2c2   : > { %v3830_v11 = vpop.eup %3829  ;;  %3853 = vtanh.f32 %v2894_v51 }
 0x2c3   : > { %v3832_v56 = vpop.eup %3831  ;;  %3855 = vrcp.f32 %v3002_v19  ;;  %v3005_v55 = vadd.f32 1.0, %v3830_v11 }
 0x2c4   : > { %v3006_v50 = vadd.f32 1.0, %v3832_v56  ;;  %3857 = vtanh.f32 %v2897_v45 }
 0x2c5   : > { %v3834_v57 = vpop.eup %3833  ;;  %3859 = vrcp.f32 %v3005_v55 }
 0x2c6   : > { %v3836_v31 = vpop.eup %3835  ;;  %3861 = vrcp.f32 %v3006_v50  ;;  %v3009_v8 = vadd.f32 1.0, %v3834_v57 }
 0x2c7   : > { %v3838_v53 = vpop.eup %3837  ;;  %v3010_v20 = vadd.f32 1.0, %v3836_v31  ;;  %3863 = vtanh.f32 %v2898_v42 }
 0x2c8   : > { %v3840_v9 = vpop.eup %3839  ;;  %3865 = vrcp.f32 %v3009_v8 }
 0x2c9   : > { %v3842_v26 = vpop.eup %3841  ;;  %3867 = vrcp.f32 %v3010_v20 }
 0x2ca   : > { %v3844_v25 = vpop.eup %3843  ;;  %v3061_v1 = vmul.f32 %v3842_v26, %v3838_v53 }
 0x2cb   : > { %v3846_v10 = vpop.eup %3845 }
 0x2cc   : > { %v3848_v33 = vpop.eup %3847  ;;  %3096 = vst [vmem:[%s5690_s23 + $0x10] sm:$0xff] %v3061_v1  ;;  %3112 = vst [vmem:[#allocation2 + $0x58] sm:$0xff] %v3061_v1  ;;  %v3062_v52 = vmul.f32 %v3846_v10, %v3840_v9 }
 0x2cd   : > { %v3850_v48 = vpop.eup %3849 }
 0x2ce   : > { %v3852_v12 = vpop.eup %3851  ;;  %3097 = vst [vmem:[%s5690_s23 + $0x18] sm:$0xff] %v3062_v52  ;;  %3113 = vst [vmem:[#allocation2 + $0x18] sm:$0xff] %v3062_v52  ;;  %v3065_v29 = vmul.f32 %v3850_v48, %v3844_v25 }
 0x2cf   : > { %v3854_v37 = vpop.eup %3853 }
 0x2d0   : > { %v3856_v46 = vpop.eup %3855  ;;  %3100 = vst [vmem:[%s5690_s23 + $0x30] sm:$0xff] %v3065_v29  ;;  %3116 = vst [vmem:[#allocation2 + $0x8] sm:$0xff] %v3065_v29 }
 0x2d1   : > { %v3858_v39 = vpop.eup %3857  ;;  %v3066_v4 = vmul.f32 %v3856_v46, %v3848_v33 }
 0x2d2   : > { %v3860_v2 = vpop.eup %3859 }
 0x2d3   : > { %v3862_v17 = vpop.eup %3861  ;;  %3101 = vst [vmem:[%s5690_s23 + $0x38] sm:$0xff] %v3066_v4  ;;  %3117 = vst [vmem:[#allocation2 + $0x48] sm:$0xff] %v3066_v4  ;;  %v3069_v3 = vmul.f32 %v3860_v2, %v3852_v12 }
 0x2d4   : > { %v3864_v43 = vpop.eup %3863  ;;  %v3070_v51 = vmul.f32 %v3862_v17, %v3854_v37 }
 0x2d5   : > { %v3866_v59 = vpop.eup %3865  ;;  %3104 = vst [vmem:[%s5690_s23 + $0x50] sm:$0xff] %v3069_v3  ;;  %3120 = vst [vmem:[#allocation2 + $0x10] sm:$0xff] %v3069_v3 }
 0x2d6   : > { %v3868_v15 = vpop.eup %3867  ;;  %3105 = vst [vmem:[%s5690_s23 + $0x58] sm:$0xff] %v3070_v51  ;;  %3121 = vst [vmem:[#allocation2 + $0x38] sm:$0xff] %v3070_v51  ;;  %v3073_v32 = vmul.f32 %v3866_v59, %v3858_v39 }
 0x2d7   : > { %v3074_v22 = vmul.f32 %v3868_v15, %v3864_v43 }
 0x2d8   : > { %3108 = vst [vmem:[%s5690_s23 + $0x70] sm:$0xff] %v3073_v32  ;;  %3124 = vst [vmem:[#allocation2 + $0x78] sm:$0xff] %v3073_v32 }
 0x2d9   : > { %3109 = vst [vmem:[%s5690_s23 + $0x78] sm:$0xff] %v3074_v22  ;;  %3125 = vst [vmem:[#allocation2 + $0x28] sm:$0xff] %v3074_v22 }
 0x2da   :  { %105 = sbr.rel (!%p103_p0) target bundleno = 17 (0x11), region = 72 }

</bundles_post_ra>
